<compile_context>
chip_gen: v5e
topology: v5e:2x2
jax: 0.10.0
libtpu: 0.0.40
codegen_flags: <defaults>
</compile_context>

<pallas_src>
import functools

import jax
import jax.numpy as jnp
import numpy as np
from jax.experimental import pallas as pl
from jax.experimental.pallas import tpu as pltpu


def _make_kernel(H, W, Cx, Ch, K, p):
    Cc = Cx + Ch          # fused input channels (x || h)
    G = 4 * Ch            # gate channels [i | f | c | o]
    KCc = K * Cc          # im2col-over-kw contraction depth
    Hp = H + 2 * p        # padded image rows (kh handled by row offsets)

    # image rows per chunk: target ~128 matmul rows while dividing H evenly
    rb = max(1, min(H, 128 // max(1, W)))
    while H % rb:
        rb -= 1
    RB = rb
    MR = RB * W           # matmul rows per chunk

    def kernel(x_ref, h_ref, c_ref, w_ref, b_ref, ch_ref, cc_ref,
               slab_ref, acc_ref):
        # x_ref   : (1, H, W, Cx)   f32   input, NHWC
        # h_ref   : (1, H, W, Ch)   f32   previous hidden state, NHWC
        # c_ref   : (1, H, W, Ch)   f32   previous cell state, NHWC
        # w_ref   : (K, K*Cc, G)    bf16  fused conv weights (kh, (kw,c), gate)
        # b_ref   : (1, G)          f32   combined bias (bx + bh)
        # ch_ref  : (1, H, W, Ch)   f32   hidden-state output
        # cc_ref  : (1, H, W, Ch)   f32   cell-state output
        # slab_ref: (Hp, W, K*Cc)   bf16  im2col-over-kw slab (VMEM scratch)
        # acc_ref : (MR, G)         f32   gate pre-activation accumulator

        # ---- build the bf16 im2col-over-kw slab once per batch element ----
        # slab[h, w, kw*Cc + c] = padded(x||h)[h, w + kw - p, c]
        if p > 0:
            slab_ref[0:p, :, :] = jnp.zeros((p, W, KCc), jnp.bfloat16)
            slab_ref[p + H:Hp, :, :] = jnp.zeros((p, W, KCc), jnp.bfloat16)
        for kw in range(K):
            s = kw - p                       # column shift for this tap
            lo_dst = max(0, -s)
            lo_src = max(0, s)
            width = W - abs(s)
            base = kw * Cc
            if s < 0:                        # left boundary zeros
                slab_ref[p:p + H, 0:lo_dst, base:base + Cc] = (
                    jnp.zeros((H, lo_dst, Cc), jnp.bfloat16))
            if s > 0:                        # right boundary zeros
                slab_ref[p:p + H, W - s:W, base:base + Cc] = (
                    jnp.zeros((H, s, Cc), jnp.bfloat16))
            # x||h concatenation happens here, in VMEM, cast once to bf16.
            slab_ref[p:p + H, lo_dst:lo_dst + width, base:base + Cx] = (
                x_ref[0, :, lo_src:lo_src + width, :].astype(jnp.bfloat16))
            slab_ref[p:p + H, lo_dst:lo_dst + width, base + Cx:base + Cc] = (
                h_ref[0, :, lo_src:lo_src + width, :].astype(jnp.bfloat16))

        bias = b_ref[...]                                    # (1, G) f32

        # Hoisted gate mask (tanh on the "c" gate lanes [2*Ch, 3*Ch)).
        lane = jax.lax.broadcasted_iota(jnp.int32, (MR, G), 1)
        is_g = (lane >= 2 * Ch) & (lane < 3 * Ch)

        # ---- row-chunked gate matmuls + cell update ----
        for r0 in range(0, H, RB):
            for kh in range(K):
                lhs = slab_ref[r0 + kh:r0 + kh + RB, :, :].reshape(MR, KCc)
                d = jnp.dot(lhs, w_ref[kh],
                            preferred_element_type=jnp.float32)
                if kh == 0:
                    acc_ref[...] = d          # f32 VMEM accumulator (MRB on v7x)
                else:
                    acc_ref[...] += d

            acc = acc_ref[...] + bias                        # (MR, G) f32

            # Single full-width tanh: sigmoid(x) = 0.5*tanh(0.5*x) + 0.5.
            pre = jnp.where(is_g, acc, 0.5 * acc)
            t = jnp.tanh(pre)
            act = jnp.where(is_g, t, 0.5 * t + 0.5)

            i_g = act[:, 0 * Ch:1 * Ch]
            f_g = act[:, 1 * Ch:2 * Ch]
            g_g = act[:, 2 * Ch:3 * Ch]
            o_g = act[:, 3 * Ch:4 * Ch]

            c_prev = c_ref[0, r0:r0 + RB, :, :].reshape(MR, Ch)
            cc = f_g * c_prev + i_g * g_g
            ch = o_g * jnp.tanh(cc)

            cc_ref[0, r0:r0 + RB, :, :] = cc.reshape(RB, W, Ch).astype(cc_ref.dtype)
            ch_ref[0, r0:r0 + RB, :, :] = ch.reshape(RB, W, Ch).astype(ch_ref.dtype)

    return kernel, Hp, RB, MR


@functools.partial(jax.jit, static_argnames=("kernel_size",))
def conv_lstm_cell(x_nchw, h_nchw, c_nchw, wx, wh, bias, *, kernel_size):
    """ConvLSTM cell forward. NCHW inputs (PyTorch convention); returns (ch, cc) NCHW."""
    K = kernel_size
    p = (K - 1) // 2
    B, Cx, H, W = x_nchw.shape
    Ch = h_nchw.shape[1]
    Cc = Cx + Ch
    G = 4 * Ch
    KCc = K * Cc

    # Layout glue only (NCHW is the module's interface); no padding and no
    # x||h concatenation here — both happen inside the kernel's VMEM slab.
    x = jnp.transpose(x_nchw, (0, 2, 3, 1))                  # (B,H,W,Cx) f32
    h = jnp.transpose(h_nchw, (0, 2, 3, 1))                  # (B,H,W,Ch) f32
    c = jnp.transpose(c_nchw, (0, 2, 3, 1))                  # (B,H,W,Ch) f32

    # Fused weights in im2col-over-kw layout: (K, K*Cc, 4*Ch), bf16 operands.
    w = jnp.concatenate([wx, wh], axis=2).reshape(K, KCc, G).astype(jnp.bfloat16)
    b = bias.reshape(1, G).astype(jnp.float32)

    kernel, Hp, RB, MR = _make_kernel(H, W, Cx, Ch, K, p)

    grid_spec = pltpu.PrefetchScalarGridSpec(
        num_scalar_prefetch=0,
        grid=(B,),
        in_specs=[
            pl.BlockSpec((1, H, W, Cx), lambda bb: (bb, 0, 0, 0)),
            pl.BlockSpec((1, H, W, Ch), lambda bb: (bb, 0, 0, 0)),
            pl.BlockSpec((1, H, W, Ch), lambda bb: (bb, 0, 0, 0)),
            pl.BlockSpec((K, KCc, G), lambda bb: (0, 0, 0)),
            pl.BlockSpec((1, G), lambda bb: (0, 0)),
        ],
        out_specs=[
            pl.BlockSpec((1, H, W, Ch), lambda bb: (bb, 0, 0, 0)),
            pl.BlockSpec((1, H, W, Ch), lambda bb: (bb, 0, 0, 0)),
        ],
        scratch_shapes=[
            pltpu.VMEM((Hp, W, KCc), jnp.bfloat16),   # im2col-over-kw slab
            pltpu.VMEM((MR, G), jnp.float32),         # gate accumulator
        ],
    )

    ch_nhwc, cc_nhwc = pl.pallas_call(
        kernel,
        out_shape=(
            jax.ShapeDtypeStruct((B, H, W, Ch), jnp.float32),
            jax.ShapeDtypeStruct((B, H, W, Ch), jnp.float32),
        ),
        grid_spec=grid_spec,
        compiler_params=pltpu.CompilerParams(
            dimension_semantics=("parallel",)),
    )(x, h, c, w, b)

    ch_out = jnp.transpose(ch_nhwc, (0, 3, 1, 2))
    cc_out = jnp.transpose(cc_nhwc, (0, 3, 1, 2))
    return ch_out, cc_out


def _reference_forward(x_nchw, h_nchw, c_nchw, wx, wh, bias, kernel_size,
                       operand_dtype=jnp.float32):
    """Pure-JAX reference mirroring the PyTorch module.

    With operand_dtype=bfloat16 it reproduces the kernel's MXU numerics
    (bf16 operands, f32 accumulation), so a tight tolerance stays meaningful.
    """
    p = (kernel_size - 1) // 2
    x = jnp.transpose(x_nchw, (0, 2, 3, 1)).astype(operand_dtype)
    h = jnp.transpose(h_nchw, (0, 2, 3, 1)).astype(operand_dtype)
    c = jnp.transpose(c_nchw, (0, 2, 3, 1))

    def conv(inp, w):
        return jax.lax.conv_general_dilated(
            inp, w.astype(operand_dtype), window_strides=(1, 1),
            padding=[(p, p), (p, p)],
            dimension_numbers=("NHWC", "HWIO", "NHWC"),
            preferred_element_type=jnp.float32)

    gates = conv(x, wx) + conv(h, wh) + bias.reshape(1, 1, 1, -1)
    Ch = c.shape[-1]
    i_g = jax.nn.sigmoid(gates[..., 0 * Ch:1 * Ch])
    f_g = jax.nn.sigmoid(gates[..., 1 * Ch:2 * Ch])
    g_g = jnp.tanh(gates[..., 2 * Ch:3 * Ch])
    o_g = jax.nn.sigmoid(gates[..., 3 * Ch:4 * Ch])
    cc = f_g * c + i_g * g_g
    ch = o_g * jnp.tanh(cc)
    return (jnp.transpose(ch, (0, 3, 1, 2)),
            jnp.transpose(cc, (0, 3, 1, 2)))


if __name__ == "__main__":
    # Module config (deterministic synthetic params — no checkpoint load)
    B, Cx, Ch, H, W, K = 2, 4, 32, 16, 16, 3

    key = jax.random.PRNGKey(0)
    k_x, k_wx, k_wh, k_bx, k_bh, k_h, k_c = jax.random.split(key, 7)

    # Inputs (NCHW like PyTorch)
    x = jax.random.normal(k_x, (B, Cx, H, W), dtype=jnp.float32)
    h = jax.random.normal(k_h, (B, Ch, H, W), dtype=jnp.float32)
    c = jax.random.normal(k_c, (B, Ch, H, W), dtype=jnp.float32)

    # Fused weights: gates concatenated [i | f | c | o] along output channels,
    # HWIO layout (this is how the 8 separate PyTorch Conv2d weights would be
    # packed at parameter-conversion time).  Both convs add their bias in the
    # PyTorch forward, so the fused bias is bx + bh.
    wx = 0.1 * jax.random.normal(k_wx, (K, K, Cx, 4 * Ch), dtype=jnp.float32)
    wh = 0.1 * jax.random.normal(k_wh, (K, K, Ch, 4 * Ch), dtype=jnp.float32)
    bx = 0.1 * jax.random.normal(k_bx, (4 * Ch,), dtype=jnp.float32)
    bh = 0.1 * jax.random.normal(k_bh, (4 * Ch,), dtype=jnp.float32)
    bias = bx + bh

    ch_out, cc_out = conv_lstm_cell(x, h, c, wx, wh, bias, kernel_size=K)
    jax.block_until_ready((ch_out, cc_out))

    # Check against a reference using the same bf16-operand / f32-accumulate
    # matmul numerics as the kernel.
    ch_ref, cc_ref = _reference_forward(x, h, c, wx, wh, bias, K,
                                        operand_dtype=jnp.bfloat16)
    np.testing.assert_allclose(np.asarray(ch_out), np.asarray(ch_ref),
                               rtol=2e-3, atol=2e-3)
    np.testing.assert_allclose(np.asarray(cc_out), np.asarray(cc_ref),
                               rtol=2e-3, atol=2e-3)

    print("KERNEL_OK")
</pallas_src>

<mosaic_0001>
module attributes {stable_mosaic.version = 11 : i64} {
  func.func @kernel(%arg0: i32, %arg1: memref<1x16x16x4xf32, #tpu.memory_space<vmem>>, %arg2: memref<1x16x16x32xf32, #tpu.memory_space<vmem>>, %arg3: memref<1x16x16x32xf32, #tpu.memory_space<vmem>>, %arg4: memref<3x108x128xbf16, #tpu.memory_space<vmem>>, %arg5: memref<1x128xf32, #tpu.memory_space<vmem>>, %arg6: memref<1x16x16x32xf32, #tpu.memory_space<vmem>>, %arg7: memref<1x16x16x32xf32, #tpu.memory_space<vmem>>, %arg8: memref<18x16x108xbf16, #tpu.memory_space<vmem>>, %arg9: memref<128x128xf32, #tpu.memory_space<vmem>>) attributes {dimension_semantics = [#tpu.dimension_semantics<parallel>], iteration_bounds = array<i64: 2>, scalar_prefetch = 0 : i64, scratch_operands = 2 : i64, tpu.core_type = #tpu.core_type<tc>, window_params = [{transform_indices = @transform_0, window_bounds = array<i64: 1, 16, 16, 4>}, {transform_indices = @transform_1, window_bounds = array<i64: 1, 16, 16, 32>}, {transform_indices = @transform_2, window_bounds = array<i64: 1, 16, 16, 32>}, {pipeline_mode = #tpu.pipeline_mode<synchronous>, transform_indices = @transform_3, window_bounds = array<i64: 3, 108, 128>}, {pipeline_mode = #tpu.pipeline_mode<synchronous>, transform_indices = @transform_4, window_bounds = array<i64: 1, 128>}, {transform_indices = @transform_5, window_bounds = array<i64: 1, 16, 16, 32>}, {transform_indices = @transform_6, window_bounds = array<i64: 1, 16, 16, 32>}]} {
    %cst = arith.constant 0.000000e+00 : bf16
    %0 = vector.broadcast %cst : bf16 to vector<1x16x108xbf16>
    %c0 = arith.constant 0 : index
    %c0_0 = arith.constant 0 : index
    %c0_1 = arith.constant 0 : index
    %1 = vector.load %arg8[%c0, %c0_0, %c0_1] : memref<18x16x108xbf16, #tpu.memory_space<vmem>>, vector<1x16x108xbf16>
    tpu.vector_store %arg8[%c0, %c0_0, %c0_1], %0 {strides = array<i32>} : memref<18x16x108xbf16, #tpu.memory_space<vmem>>, vector<1x16x108xbf16>,
    %cst_2 = arith.constant 0.000000e+00 : bf16
    %2 = vector.broadcast %cst_2 : bf16 to vector<1x16x108xbf16>
    %c17 = arith.constant 17 : index
    %c0_3 = arith.constant 0 : index
    %c0_4 = arith.constant 0 : index
    %3 = vector.load %arg8[%c17, %c0_3, %c0_4] : memref<18x16x108xbf16, #tpu.memory_space<vmem>>, vector<1x16x108xbf16>
    tpu.vector_store %arg8[%c17, %c0_3, %c0_4], %2 {strides = array<i32>} : memref<18x16x108xbf16, #tpu.memory_space<vmem>>, vector<1x16x108xbf16>,
    %cst_5 = arith.constant 0.000000e+00 : bf16
    %4 = vector.broadcast %cst_5 : bf16 to vector<16x1x36xbf16>
    %c1 = arith.constant 1 : index
    %c0_6 = arith.constant 0 : index
    %c0_7 = arith.constant 0 : index
    %5 = vector.load %arg8[%c1, %c0_6, %c0_7] : memref<18x16x108xbf16, #tpu.memory_space<vmem>>, vector<16x1x36xbf16>
    tpu.vector_store %arg8[%c1, %c0_6, %c0_7], %4 {strides = array<i32>} : memref<18x16x108xbf16, #tpu.memory_space<vmem>>, vector<16x1x36xbf16>,
    %c0_8 = arith.constant 0 : index
    %c0_9 = arith.constant 0 : index
    %c0_10 = arith.constant 0 : index
    %c0_11 = arith.constant 0 : index
    %6 = vector.load %arg1[%c0_8, %c0_9, %c0_10, %c0_11] : memref<1x16x16x4xf32, #tpu.memory_space<vmem>>, vector<1x16x15x4xf32>
    %7 = vector.shape_cast %6 : vector<1x16x15x4xf32> to vector<16x15x4xf32>
    %8 = arith.truncf %7 : vector<16x15x4xf32> to vector<16x15x4xbf16>
    %c1_12 = arith.constant 1 : index
    %c1_13 = arith.constant 1 : index
    %c0_14 = arith.constant 0 : index
    %9 = vector.load %arg8[%c1_12, %c1_13, %c0_14] : memref<18x16x108xbf16, #tpu.memory_space<vmem>>, vector<16x15x4xbf16>
    tpu.vector_store %arg8[%c1_12, %c1_13, %c0_14], %8 {strides = array<i32>} : memref<18x16x108xbf16, #tpu.memory_space<vmem>>, vector<16x15x4xbf16>,
    %c0_15 = arith.constant 0 : index
    %c0_16 = arith.constant 0 : index
    %c0_17 = arith.constant 0 : index
    %c0_18 = arith.constant 0 : index
    %10 = vector.load %arg2[%c0_15, %c0_16, %c0_17, %c0_18] : memref<1x16x16x32xf32, #tpu.memory_space<vmem>>, vector<1x16x15x32xf32>
    %11 = vector.shape_cast %10 : vector<1x16x15x32xf32> to vector<16x15x32xf32>
    %12 = arith.truncf %11 : vector<16x15x32xf32> to vector<16x15x32xbf16>
    %c1_19 = arith.constant 1 : index
    %c1_20 = arith.constant 1 : index
    %c4 = arith.constant 4 : index
    %13 = vector.load %arg8[%c1_19, %c1_20, %c4] : memref<18x16x108xbf16, #tpu.memory_space<vmem>>, vector<16x15x32xbf16>
    tpu.vector_store %arg8[%c1_19, %c1_20, %c4], %12 {strides = array<i32>} : memref<18x16x108xbf16, #tpu.memory_space<vmem>>, vector<16x15x32xbf16>,
    %c0_21 = arith.constant 0 : index
    %c0_22 = arith.constant 0 : index
    %c0_23 = arith.constant 0 : index
    %c0_24 = arith.constant 0 : index
    %14 = vector.load %arg1[%c0_21, %c0_22, %c0_23, %c0_24] : memref<1x16x16x4xf32, #tpu.memory_space<vmem>>, vector<1x16x16x4xf32>
    %15 = vector.shape_cast %14 : vector<1x16x16x4xf32> to vector<16x16x4xf32>
    %16 = arith.truncf %15 : vector<16x16x4xf32> to vector<16x16x4xbf16>
    %c1_25 = arith.constant 1 : index
    %c0_26 = arith.constant 0 : index
    %c36 = arith.constant 36 : index
    %17 = vector.load %arg8[%c1_25, %c0_26, %c36] : memref<18x16x108xbf16, #tpu.memory_space<vmem>>, vector<16x16x4xbf16>
    tpu.vector_store %arg8[%c1_25, %c0_26, %c36], %16 {strides = array<i32>} : memref<18x16x108xbf16, #tpu.memory_space<vmem>>, vector<16x16x4xbf16>,
    %c0_27 = arith.constant 0 : index
    %c0_28 = arith.constant 0 : index
    %c0_29 = arith.constant 0 : index
    %c0_30 = arith.constant 0 : index
    %18 = vector.load %arg2[%c0_27, %c0_28, %c0_29, %c0_30] : memref<1x16x16x32xf32, #tpu.memory_space<vmem>>, vector<1x16x16x32xf32>
    %19 = vector.shape_cast %18 : vector<1x16x16x32xf32> to vector<16x16x32xf32>
    %20 = arith.truncf %19 : vector<16x16x32xf32> to vector<16x16x32xbf16>
    %c1_31 = arith.constant 1 : index
    %c0_32 = arith.constant 0 : index
    %c40 = arith.constant 40 : index
    %21 = vector.load %arg8[%c1_31, %c0_32, %c40] : memref<18x16x108xbf16, #tpu.memory_space<vmem>>, vector<16x16x32xbf16>
    tpu.vector_store %arg8[%c1_31, %c0_32, %c40], %20 {strides = array<i32>} : memref<18x16x108xbf16, #tpu.memory_space<vmem>>, vector<16x16x32xbf16>,
    %cst_33 = arith.constant 0.000000e+00 : bf16
    %22 = vector.broadcast %cst_33 : bf16 to vector<16x1x36xbf16>
    %c1_34 = arith.constant 1 : index
    %c15 = arith.constant 15 : index
    %c72 = arith.constant 72 : index
    %23 = vector.load %arg8[%c1_34, %c15, %c72] : memref<18x16x108xbf16, #tpu.memory_space<vmem>>, vector<16x1x36xbf16>
    tpu.vector_store %arg8[%c1_34, %c15, %c72], %22 {strides = array<i32>} : memref<18x16x108xbf16, #tpu.memory_space<vmem>>, vector<16x1x36xbf16>,
    %c0_35 = arith.constant 0 : index
    %c0_36 = arith.constant 0 : index
    %c1_37 = arith.constant 1 : index
    %c0_38 = arith.constant 0 : index
    %24 = vector.load %arg1[%c0_35, %c0_36, %c1_37, %c0_38] : memref<1x16x16x4xf32, #tpu.memory_space<vmem>>, vector<1x16x15x4xf32>
    %25 = vector.shape_cast %24 : vector<1x16x15x4xf32> to vector<16x15x4xf32>
    %26 = arith.truncf %25 : vector<16x15x4xf32> to vector<16x15x4xbf16>
    %c1_39 = arith.constant 1 : index
    %c0_40 = arith.constant 0 : index
    %c72_41 = arith.constant 72 : index
    %27 = vector.load %arg8[%c1_39, %c0_40, %c72_41] : memref<18x16x108xbf16, #tpu.memory_space<vmem>>, vector<16x15x4xbf16>
    tpu.vector_store %arg8[%c1_39, %c0_40, %c72_41], %26 {strides = array<i32>} : memref<18x16x108xbf16, #tpu.memory_space<vmem>>, vector<16x15x4xbf16>,
    %c0_42 = arith.constant 0 : index
    %c0_43 = arith.constant 0 : index
    %c1_44 = arith.constant 1 : index
    %c0_45 = arith.constant 0 : index
    %28 = vector.load %arg2[%c0_42, %c0_43, %c1_44, %c0_45] : memref<1x16x16x32xf32, #tpu.memory_space<vmem>>, vector<1x16x15x32xf32>
    %29 = vector.shape_cast %28 : vector<1x16x15x32xf32> to vector<16x15x32xf32>
    %30 = arith.truncf %29 : vector<16x15x32xf32> to vector<16x15x32xbf16>
    %c1_46 = arith.constant 1 : index
    %c0_47 = arith.constant 0 : index
    %c76 = arith.constant 76 : index
    %31 = vector.load %arg8[%c1_46, %c0_47, %c76] : memref<18x16x108xbf16, #tpu.memory_space<vmem>>, vector<16x15x32xbf16>
    tpu.vector_store %arg8[%c1_46, %c0_47, %c76], %30 {strides = array<i32>} : memref<18x16x108xbf16, #tpu.memory_space<vmem>>, vector<16x15x32xbf16>,
    %c0_48 = arith.constant 0 : index
    %c0_49 = arith.constant 0 : index
    %32 = vector.load %arg5[%c0_48, %c0_49] : memref<1x128xf32, #tpu.memory_space<vmem>>, vector<1x128xf32>
    %33 = tpu.iota {dimensions = array<i32: 1>} : vector<128x128xi32>
    %c64_i32 = arith.constant 64 : i32
    %34 = vector.broadcast %c64_i32 : i32 to vector<128x128xi32>
    %35 = arith.cmpi sge, %33, %34 : vector<128x128xi32>
    %c96_i32 = arith.constant 96 : i32
    %36 = vector.broadcast %c96_i32 : i32 to vector<128x128xi32>
    %37 = arith.cmpi slt, %33, %36 : vector<128x128xi32>
    %38 = arith.andi %35, %37 : vector<128x128xi1>
    %c0_50 = arith.constant 0 : index
    %c0_51 = arith.constant 0 : index
    %c0_52 = arith.constant 0 : index
    %39 = vector.load %arg8[%c0_50, %c0_51, %c0_52] : memref<18x16x108xbf16, #tpu.memory_space<vmem>>, vector<8x16x108xbf16>
    %40 = vector.shape_cast %39 : vector<8x16x108xbf16> to vector<128x108xbf16>
    %c0_53 = arith.constant 0 : index
    %c0_54 = arith.constant 0 : index
    %c0_55 = arith.constant 0 : index
    %41 = vector.load %arg4[%c0_53, %c0_54, %c0_55] : memref<3x108x128xbf16, #tpu.memory_space<vmem>>, vector<1x108x128xbf16>
    %42 = vector.shape_cast %41 : vector<1x108x128xbf16> to vector<108x128xbf16>
    %cst_56 = arith.constant dense<0.000000e+00> : vector<128x128xf32>
    %43 = tpu.matmul %40, %42, %cst_56 {dimension_numbers = #tpu.dot_dimension_numbers<[1], [0], [0], [1], [0, 0, 1, 1], [], []>} : vector<128x108xbf16>, vector<108x128xbf16>, vector<128x128xf32> -> vector<128x128xf32>
    %c0_57 = arith.constant 0 : index
    %c0_58 = arith.constant 0 : index
    %44 = vector.load %arg9[%c0_57, %c0_58] : memref<128x128xf32, #tpu.memory_space<vmem>>, vector<128x128xf32>
    tpu.vector_store %arg9[%c0_57, %c0_58], %43 {strides = array<i32>} : memref<128x128xf32, #tpu.memory_space<vmem>>, vector<128x128xf32>,
    %c1_59 = arith.constant 1 : index
    %c0_60 = arith.constant 0 : index
    %c0_61 = arith.constant 0 : index
    %45 = vector.load %arg8[%c1_59, %c0_60, %c0_61] : memref<18x16x108xbf16, #tpu.memory_space<vmem>>, vector<8x16x108xbf16>
    %46 = vector.shape_cast %45 : vector<8x16x108xbf16> to vector<128x108xbf16>
    %c1_62 = arith.constant 1 : index
    %c0_63 = arith.constant 0 : index
    %c0_64 = arith.constant 0 : index
    %47 = vector.load %arg4[%c1_62, %c0_63, %c0_64] : memref<3x108x128xbf16, #tpu.memory_space<vmem>>, vector<1x108x128xbf16>
    %48 = vector.shape_cast %47 : vector<1x108x128xbf16> to vector<108x128xbf16>
    %cst_65 = arith.constant dense<0.000000e+00> : vector<128x128xf32>
    %49 = tpu.matmul %46, %48, %cst_65 {dimension_numbers = #tpu.dot_dimension_numbers<[1], [0], [0], [1], [0, 0, 1, 1], [], []>} : vector<128x108xbf16>, vector<108x128xbf16>, vector<128x128xf32> -> vector<128x128xf32>
    %c0_66 = arith.constant 0 : index
    %c0_67 = arith.constant 0 : index
    %50 = vector.load %arg9[%c0_66, %c0_67] : memref<128x128xf32, #tpu.memory_space<vmem>>, vector<128x128xf32>
    %51 = arith.addf %50, %49 : vector<128x128xf32>
    %c0_68 = arith.constant 0 : index
    %c0_69 = arith.constant 0 : index
    %52 = vector.load %arg9[%c0_68, %c0_69] : memref<128x128xf32, #tpu.memory_space<vmem>>, vector<128x128xf32>
    tpu.vector_store %arg9[%c0_68, %c0_69], %51 {strides = array<i32>} : memref<128x128xf32, #tpu.memory_space<vmem>>, vector<128x128xf32>,
    %c2 = arith.constant 2 : index
    %c0_70 = arith.constant 0 : index
    %c0_71 = arith.constant 0 : index
    %53 = vector.load %arg8[%c2, %c0_70, %c0_71] : memref<18x16x108xbf16, #tpu.memory_space<vmem>>, vector<8x16x108xbf16>
    %54 = vector.shape_cast %53 : vector<8x16x108xbf16> to vector<128x108xbf16>
    %c2_72 = arith.constant 2 : index
    %c0_73 = arith.constant 0 : index
    %c0_74 = arith.constant 0 : index
    %55 = vector.load %arg4[%c2_72, %c0_73, %c0_74] : memref<3x108x128xbf16, #tpu.memory_space<vmem>>, vector<1x108x128xbf16>
    %56 = vector.shape_cast %55 : vector<1x108x128xbf16> to vector<108x128xbf16>
    %cst_75 = arith.constant dense<0.000000e+00> : vector<128x128xf32>
    %57 = tpu.matmul %54, %56, %cst_75 {dimension_numbers = #tpu.dot_dimension_numbers<[1], [0], [0], [1], [0, 0, 1, 1], [], []>} : vector<128x108xbf16>, vector<108x128xbf16>, vector<128x128xf32> -> vector<128x128xf32>
    %c0_76 = arith.constant 0 : index
    %c0_77 = arith.constant 0 : index
    %58 = vector.load %arg9[%c0_76, %c0_77] : memref<128x128xf32, #tpu.memory_space<vmem>>, vector<128x128xf32>
    %59 = arith.addf %58, %57 : vector<128x128xf32>
    %c0_78 = arith.constant 0 : index
    %c0_79 = arith.constant 0 : index
    %60 = vector.load %arg9[%c0_78, %c0_79] : memref<128x128xf32, #tpu.memory_space<vmem>>, vector<128x128xf32>
    tpu.vector_store %arg9[%c0_78, %c0_79], %59 {strides = array<i32>} : memref<128x128xf32, #tpu.memory_space<vmem>>, vector<128x128xf32>,
    %c0_80 = arith.constant 0 : index
    %c0_81 = arith.constant 0 : index
    %61 = vector.load %arg9[%c0_80, %c0_81] : memref<128x128xf32, #tpu.memory_space<vmem>>, vector<128x128xf32>
    %62 = vector.broadcast %32 : vector<1x128xf32> to vector<128x128xf32>
    %63 = arith.addf %61, %62 : vector<128x128xf32>
    %cst_82 = arith.constant 5.000000e-01 : f32
    %64 = vector.broadcast %cst_82 : f32 to vector<128x128xf32>
    %65 = arith.mulf %64, %63 : vector<128x128xf32>
    %66 = arith.select %38, %63, %65 : vector<128x128xi1>, vector<128x128xf32>
    %67 = math.tanh %66 : vector<128x128xf32>
    %cst_83 = arith.constant 5.000000e-01 : f32
    %68 = vector.broadcast %cst_83 : f32 to vector<128x128xf32>
    %69 = arith.mulf %68, %67 : vector<128x128xf32>
    %cst_84 = arith.constant 5.000000e-01 : f32
    %70 = vector.broadcast %cst_84 : f32 to vector<128x128xf32>
    %71 = arith.addf %69, %70 : vector<128x128xf32>
    %72 = arith.select %38, %67, %71 : vector<128x128xi1>, vector<128x128xf32>
    %73 = vector.extract_strided_slice %72 {offsets = [0, 0], sizes = [128, 32], strides = [1, 1]} : vector<128x128xf32> to vector<128x32xf32>
    %74 = vector.extract_strided_slice %72 {offsets = [0, 32], sizes = [128, 32], strides = [1, 1]} : vector<128x128xf32> to vector<128x32xf32>
    %75 = vector.extract_strided_slice %72 {offsets = [0, 64], sizes = [128, 32], strides = [1, 1]} : vector<128x128xf32> to vector<128x32xf32>
    %76 = vector.extract_strided_slice %72 {offsets = [0, 96], sizes = [128, 32], strides = [1, 1]} : vector<128x128xf32> to vector<128x32xf32>
    %c0_85 = arith.constant 0 : index
    %c0_86 = arith.constant 0 : index
    %c0_87 = arith.constant 0 : index
    %c0_88 = arith.constant 0 : index
    %77 = vector.load %arg3[%c0_85, %c0_86, %c0_87, %c0_88] : memref<1x16x16x32xf32, #tpu.memory_space<vmem>>, vector<1x8x16x32xf32>
    %78 = vector.shape_cast %77 : vector<1x8x16x32xf32> to vector<8x16x32xf32>
    %79 = vector.shape_cast %78 : vector<8x16x32xf32> to vector<128x32xf32>
    %80 = arith.mulf %74, %79 : vector<128x32xf32>
    %81 = arith.mulf %73, %75 : vector<128x32xf32>
    %82 = arith.addf %80, %81 : vector<128x32xf32>
    %83 = math.tanh %82 : vector<128x32xf32>
    %84 = arith.mulf %76, %83 : vector<128x32xf32>
    %85 = vector.shape_cast %82 : vector<128x32xf32> to vector<8x16x32xf32>
    %c0_89 = arith.constant 0 : index
    %c0_90 = arith.constant 0 : index
    %c0_91 = arith.constant 0 : index
    %c0_92 = arith.constant 0 : index
    %86 = vector.load %arg7[%c0_89, %c0_90, %c0_91, %c0_92] : memref<1x16x16x32xf32, #tpu.memory_space<vmem>>, vector<1x8x16x32xf32>
    %87 = vector.shape_cast %86 : vector<1x8x16x32xf32> to vector<8x16x32xf32>
    %88 = vector.shape_cast %85 : vector<8x16x32xf32> to vector<1x8x16x32xf32>
    tpu.vector_store %arg7[%c0_89, %c0_90, %c0_91, %c0_92], %88 {strides = array<i32>} : memref<1x16x16x32xf32, #tpu.memory_space<vmem>>, vector<1x8x16x32xf32>,
    %89 = vector.shape_cast %84 : vector<128x32xf32> to vector<8x16x32xf32>
    %c0_93 = arith.constant 0 : index
    %c0_94 = arith.constant 0 : index
    %c0_95 = arith.constant 0 : index
    %c0_96 = arith.constant 0 : index
    %90 = vector.load %arg6[%c0_93, %c0_94, %c0_95, %c0_96] : memref<1x16x16x32xf32, #tpu.memory_space<vmem>>, vector<1x8x16x32xf32>
    %91 = vector.shape_cast %90 : vector<1x8x16x32xf32> to vector<8x16x32xf32>
    %92 = vector.shape_cast %89 : vector<8x16x32xf32> to vector<1x8x16x32xf32>
    tpu.vector_store %arg6[%c0_93, %c0_94, %c0_95, %c0_96], %92 {strides = array<i32>} : memref<1x16x16x32xf32, #tpu.memory_space<vmem>>, vector<1x8x16x32xf32>,
    %c8 = arith.constant 8 : index
    %c0_97 = arith.constant 0 : index
    %c0_98 = arith.constant 0 : index
    %93 = vector.load %arg8[%c8, %c0_97, %c0_98] : memref<18x16x108xbf16, #tpu.memory_space<vmem>>, vector<8x16x108xbf16>
    %94 = vector.shape_cast %93 : vector<8x16x108xbf16> to vector<128x108xbf16>
    %c0_99 = arith.constant 0 : index
    %c0_100 = arith.constant 0 : index
    %c0_101 = arith.constant 0 : index
    %95 = vector.load %arg4[%c0_99, %c0_100, %c0_101] : memref<3x108x128xbf16, #tpu.memory_space<vmem>>, vector<1x108x128xbf16>
    %96 = vector.shape_cast %95 : vector<1x108x128xbf16> to vector<108x128xbf16>
    %cst_102 = arith.constant dense<0.000000e+00> : vector<128x128xf32>
    %97 = tpu.matmul %94, %96, %cst_102 {dimension_numbers = #tpu.dot_dimension_numbers<[1], [0], [0], [1], [0, 0, 1, 1], [], []>} : vector<128x108xbf16>, vector<108x128xbf16>, vector<128x128xf32> -> vector<128x128xf32>
    %c0_103 = arith.constant 0 : index
    %c0_104 = arith.constant 0 : index
    %98 = vector.load %arg9[%c0_103, %c0_104] : memref<128x128xf32, #tpu.memory_space<vmem>>, vector<128x128xf32>
    tpu.vector_store %arg9[%c0_103, %c0_104], %97 {strides = array<i32>} : memref<128x128xf32, #tpu.memory_space<vmem>>, vector<128x128xf32>,
    %c9 = arith.constant 9 : index
    %c0_105 = arith.constant 0 : index
    %c0_106 = arith.constant 0 : index
    %99 = vector.load %arg8[%c9, %c0_105, %c0_106] : memref<18x16x108xbf16, #tpu.memory_space<vmem>>, vector<8x16x108xbf16>
    %100 = vector.shape_cast %99 : vector<8x16x108xbf16> to vector<128x108xbf16>
    %c1_107 = arith.constant 1 : index
    %c0_108 = arith.constant 0 : index
    %c0_109 = arith.constant 0 : index
    %101 = vector.load %arg4[%c1_107, %c0_108, %c0_109] : memref<3x108x128xbf16, #tpu.memory_space<vmem>>, vector<1x108x128xbf16>
    %102 = vector.shape_cast %101 : vector<1x108x128xbf16> to vector<108x128xbf16>
    %cst_110 = arith.constant dense<0.000000e+00> : vector<128x128xf32>
    %103 = tpu.matmul %100, %102, %cst_110 {dimension_numbers = #tpu.dot_dimension_numbers<[1], [0], [0], [1], [0, 0, 1, 1], [], []>} : vector<128x108xbf16>, vector<108x128xbf16>, vector<128x128xf32> -> vector<128x128xf32>
    %c0_111 = arith.constant 0 : index
    %c0_112 = arith.constant 0 : index
    %104 = vector.load %arg9[%c0_111, %c0_112] : memref<128x128xf32, #tpu.memory_space<vmem>>, vector<128x128xf32>
    %105 = arith.addf %104, %103 : vector<128x128xf32>
    %c0_113 = arith.constant 0 : index
    %c0_114 = arith.constant 0 : index
    %106 = vector.load %arg9[%c0_113, %c0_114] : memref<128x128xf32, #tpu.memory_space<vmem>>, vector<128x128xf32>
    tpu.vector_store %arg9[%c0_113, %c0_114], %105 {strides = array<i32>} : memref<128x128xf32, #tpu.memory_space<vmem>>, vector<128x128xf32>,
    %c10 = arith.constant 10 : index
    %c0_115 = arith.constant 0 : index
    %c0_116 = arith.constant 0 : index
    %107 = vector.load %arg8[%c10, %c0_115, %c0_116] : memref<18x16x108xbf16, #tpu.memory_space<vmem>>, vector<8x16x108xbf16>
    %108 = vector.shape_cast %107 : vector<8x16x108xbf16> to vector<128x108xbf16>
    %c2_117 = arith.constant 2 : index
    %c0_118 = arith.constant 0 : index
    %c0_119 = arith.constant 0 : index
    %109 = vector.load %arg4[%c2_117, %c0_118, %c0_119] : memref<3x108x128xbf16, #tpu.memory_space<vmem>>, vector<1x108x128xbf16>
    %110 = vector.shape_cast %109 : vector<1x108x128xbf16> to vector<108x128xbf16>
    %cst_120 = arith.constant dense<0.000000e+00> : vector<128x128xf32>
    %111 = tpu.matmul %108, %110, %cst_120 {dimension_numbers = #tpu.dot_dimension_numbers<[1], [0], [0], [1], [0, 0, 1, 1], [], []>} : vector<128x108xbf16>, vector<108x128xbf16>, vector<128x128xf32> -> vector<128x128xf32>
    %c0_121 = arith.constant 0 : index
    %c0_122 = arith.constant 0 : index
    %112 = vector.load %arg9[%c0_121, %c0_122] : memref<128x128xf32, #tpu.memory_space<vmem>>, vector<128x128xf32>
    %113 = arith.addf %112, %111 : vector<128x128xf32>
    %c0_123 = arith.constant 0 : index
    %c0_124 = arith.constant 0 : index
    %114 = vector.load %arg9[%c0_123, %c0_124] : memref<128x128xf32, #tpu.memory_space<vmem>>, vector<128x128xf32>
    tpu.vector_store %arg9[%c0_123, %c0_124], %113 {strides = array<i32>} : memref<128x128xf32, #tpu.memory_space<vmem>>, vector<128x128xf32>,
    %c0_125 = arith.constant 0 : index
    %c0_126 = arith.constant 0 : index
    %115 = vector.load %arg9[%c0_125, %c0_126] : memref<128x128xf32, #tpu.memory_space<vmem>>, vector<128x128xf32>
    %116 = vector.broadcast %32 : vector<1x128xf32> to vector<128x128xf32>
    %117 = arith.addf %115, %116 : vector<128x128xf32>
    %cst_127 = arith.constant 5.000000e-01 : f32
    %118 = vector.broadcast %cst_127 : f32 to vector<128x128xf32>
    %119 = arith.mulf %118, %117 : vector<128x128xf32>
    %120 = arith.select %38, %117, %119 : vector<128x128xi1>, vector<128x128xf32>
    %121 = math.tanh %120 : vector<128x128xf32>
    %cst_128 = arith.constant 5.000000e-01 : f32
    %122 = vector.broadcast %cst_128 : f32 to vector<128x128xf32>
    %123 = arith.mulf %122, %121 : vector<128x128xf32>
    %cst_129 = arith.constant 5.000000e-01 : f32
    %124 = vector.broadcast %cst_129 : f32 to vector<128x128xf32>
    %125 = arith.addf %123, %124 : vector<128x128xf32>
    %126 = arith.select %38, %121, %125 : vector<128x128xi1>, vector<128x128xf32>
    %127 = vector.extract_strided_slice %126 {offsets = [0, 0], sizes = [128, 32], strides = [1, 1]} : vector<128x128xf32> to vector<128x32xf32>
    %128 = vector.extract_strided_slice %126 {offsets = [0, 32], sizes = [128, 32], strides = [1, 1]} : vector<128x128xf32> to vector<128x32xf32>
    %129 = vector.extract_strided_slice %126 {offsets = [0, 64], sizes = [128, 32], strides = [1, 1]} : vector<128x128xf32> to vector<128x32xf32>
    %130 = vector.extract_strided_slice %126 {offsets = [0, 96], sizes = [128, 32], strides = [1, 1]} : vector<128x128xf32> to vector<128x32xf32>
    %c0_130 = arith.constant 0 : index
    %c8_131 = arith.constant 8 : index
    %c0_132 = arith.constant 0 : index
    %c0_133 = arith.constant 0 : index
    %131 = vector.load %arg3[%c0_130, %c8_131, %c0_132, %c0_133] : memref<1x16x16x32xf32, #tpu.memory_space<vmem>>, vector<1x8x16x32xf32>
    %132 = vector.shape_cast %131 : vector<1x8x16x32xf32> to vector<8x16x32xf32>
    %133 = vector.shape_cast %132 : vector<8x16x32xf32> to vector<128x32xf32>
    %134 = arith.mulf %128, %133 : vector<128x32xf32>
    %135 = arith.mulf %127, %129 : vector<128x32xf32>
    %136 = arith.addf %134, %135 : vector<128x32xf32>
    %137 = math.tanh %136 : vector<128x32xf32>
    %138 = arith.mulf %130, %137 : vector<128x32xf32>
    %139 = vector.shape_cast %136 : vector<128x32xf32> to vector<8x16x32xf32>
    %c0_134 = arith.constant 0 : index
    %c8_135 = arith.constant 8 : index
    %c0_136 = arith.constant 0 : index
    %c0_137 = arith.constant 0 : index
    %140 = vector.load %arg7[%c0_134, %c8_135, %c0_136, %c0_137] : memref<1x16x16x32xf32, #tpu.memory_space<vmem>>, vector<1x8x16x32xf32>
    %141 = vector.shape_cast %140 : vector<1x8x16x32xf32> to vector<8x16x32xf32>
    %142 = vector.shape_cast %139 : vector<8x16x32xf32> to vector<1x8x16x32xf32>
    tpu.vector_store %arg7[%c0_134, %c8_135, %c0_136, %c0_137], %142 {strides = array<i32>} : memref<1x16x16x32xf32, #tpu.memory_space<vmem>>, vector<1x8x16x32xf32>,
    %143 = vector.shape_cast %138 : vector<128x32xf32> to vector<8x16x32xf32>
    %c0_138 = arith.constant 0 : index
    %c8_139 = arith.constant 8 : index
    %c0_140 = arith.constant 0 : index
    %c0_141 = arith.constant 0 : index
    %144 = vector.load %arg6[%c0_138, %c8_139, %c0_140, %c0_141] : memref<1x16x16x32xf32, #tpu.memory_space<vmem>>, vector<1x8x16x32xf32>
    %145 = vector.shape_cast %144 : vector<1x8x16x32xf32> to vector<8x16x32xf32>
    %146 = vector.shape_cast %143 : vector<8x16x32xf32> to vector<1x8x16x32xf32>
    tpu.vector_store %arg6[%c0_138, %c8_139, %c0_140, %c0_141], %146 {strides = array<i32>} : memref<1x16x16x32xf32, #tpu.memory_space<vmem>>, vector<1x8x16x32xf32>,
    return
  }
  func.func @transform_0(%arg0: i32) -> (i32, i32, i32, i32) {
    %c0_i32 = arith.constant 0 : i32
    %c0_i32_0 = arith.constant 0 : i32
    %c0_i32_1 = arith.constant 0 : i32
    %c0_i32_2 = arith.constant 0 : i32
    return %arg0, %c0_i32, %c0_i32_0, %c0_i32_1 : i32, i32, i32, i32
  }
  func.func @transform_1(%arg0: i32) -> (i32, i32, i32, i32) {
    %c0_i32 = arith.constant 0 : i32
    %c0_i32_0 = arith.constant 0 : i32
    %c0_i32_1 = arith.constant 0 : i32
    %c0_i32_2 = arith.constant 0 : i32
    return %arg0, %c0_i32, %c0_i32_0, %c0_i32_1 : i32, i32, i32, i32
  }
  func.func @transform_2(%arg0: i32) -> (i32, i32, i32, i32) {
    %c0_i32 = arith.constant 0 : i32
    %c0_i32_0 = arith.constant 0 : i32
    %c0_i32_1 = arith.constant 0 : i32
    %c0_i32_2 = arith.constant 0 : i32
    return %arg0, %c0_i32, %c0_i32_0, %c0_i32_1 : i32, i32, i32, i32
  }
  func.func @transform_3(%arg0: i32) -> (i32, i32, i32) {
    %c0_i32 = arith.constant 0 : i32
    %c0_i32_0 = arith.constant 0 : i32
    %c0_i32_1 = arith.constant 0 : i32
    %c0_i32_2 = arith.constant 0 : i32
    return %c0_i32, %c0_i32_0, %c0_i32_1 : i32, i32, i32
  }
  func.func @transform_4(%arg0: i32) -> (i32, i32) {
    %c0_i32 = arith.constant 0 : i32
    %c0_i32_0 = arith.constant 0 : i32
    %c0_i32_1 = arith.constant 0 : i32
    return %c0_i32, %c0_i32_0 : i32, i32
  }
  func.func @transform_5(%arg0: i32) -> (i32, i32, i32, i32) {
    %c0_i32 = arith.constant 0 : i32
    %c0_i32_0 = arith.constant 0 : i32
    %c0_i32_1 = arith.constant 0 : i32
    %c0_i32_2 = arith.constant 0 : i32
    return %arg0, %c0_i32, %c0_i32_0, %c0_i32_1 : i32, i32, i32, i32
  }
  func.func @transform_6(%arg0: i32) -> (i32, i32, i32, i32) {
    %c0_i32 = arith.constant 0 : i32
    %c0_i32_0 = arith.constant 0 : i32
    %c0_i32_1 = arith.constant 0 : i32
    %c0_i32_2 = arith.constant 0 : i32
    return %arg0, %c0_i32, %c0_i32_0, %c0_i32_1 : i32, i32, i32, i32
  }
}

</mosaic_0001>

<bundles_post_ra>
// kernel: conv_lstm_cell.1
= control target key start
LH: loop header
LB: loop body
LE: loop exit
PB: predicated region body
PF: predicated region fallthrough
CT: control target
= control target key end

     0   :  { %12 = vsyncpa [#allocation5], 0  ;;  %s8228_s0 = inlined_call_operand.vmem [shape: f32[2,16,16,4], index: 0, kind: input, shape index: {}]   ;;  %s8229_s1 = inlined_call_operand.vmem [shape: f32[2,16,16,32], index: 1, kind: input, shape index: {}]   ;;  %s8230_s2 = inlined_call_operand.vmem [shape: f32[2,16,16,32], index: 2, kind: input, shape index: {}]   ;;  %s8231_s3 = inlined_call_operand.vmem [shape: bf16[3,108,128], index: 3, kind: input, shape index: {}]   ;;  %s8232_s4 = inlined_call_operand.vmem [shape: f32[1,128], index: 4, kind: input, shape index: {}]   ;;  %s8233_s5 = inlined_call_operand.hbm [shape: f32[2,16,16,32], index: 5, kind: output, shape index: {0}]   ;;  %s8234_s6 = inlined_call_operand.hbm [shape: f32[2,16,16,32], index: 6, kind: output, shape index: {1}]  }
   0x1   :  { %14 = vsyncpa [#allocation5 + $0x1], 0 }
   0x2   :  { %15 = vsyncpa [#allocation7], 0 }
   0x3   :  { %17 = vsyncpa [#allocation7 + $0x1], 0  ;;  %s6057_s21 = smov 0   ;;  %s6059_s22 = smov 0  }
   0x4   :  { %s6061_s23 = smov 0   ;;  %s6063_s24 = smov 0  }
   0x5 LB: > { %s6078_s25 = sadd.s32 4294967295, %s6009_s24   ;;  %s5089_s26 = sadd.s32 4294967294, %s6009_s24   ;;  %s6009_s24 = sphi %s6063_s24, %s8266_s24   ;;  %s6005_s23 = sphi %s6061_s23, %s8265_s23   ;;  %s6001_s22 = sphi %s6059_s22, %s8264_s22   ;;  %s5997_s21 = sphi %s6057_s21, %s8263_s21  }
   0x6   : > { %s6082_s27 = sadd.s32 1, %s6009_s24   ;;  %s150_s28 = sadd.s32 1, %s6005_s23 }
   0x7   : > { %s147_s29 = ssub.s32 %s6009_s24, %s6082_s27  ;;  %p160_p0 = scmp.ne.s32.totalorder %s6005_s23, %s6001_s22 }
   0x8   : > { %p148_p1 = scmp.eq.s32.totalorder %s147_s29, 0  ;;  %p161_p2 = scmp.eq.s32.totalorder %s6078_s25, 1 }
   0x9   : > { %p166_p3 = scmp.ne.s32.totalorder %s6001_s22, %s5997_s21  ;;  %p167_p4 = scmp.eq.s32.totalorder %s5089_s26, 1 }
   0xa   : > { %s6093_s30 = scalar_select %p148_p1, %s6005_s23, %s150_s28  }
   0xb   : > { %p6095_p5 = por %p161_p2, %p160_p0  ;;  %p6099_p6 = por %p167_p4, %p166_p3 }
   0xc   : > { %p5092_p7 = scmp.ge.s32.totalorder %s6009_s24, 1  ;;  %p241_p8 = scmp.lt.s32.totalorder %s6009_s24, 3 }
   0xe   : > { %p242_p9 = pnand %p5092_p7, %p241_p8 }
  0x10   : > { %245 = sbr.rel (%p242_p9) target bundleno = 1505 (0x5e1), region = 40 }
  0x15   : > { %p286_p10 = scmp.lt.s32.totalorder %s6078_s25, 1  ;;  %vm310_vm0 = vsmask.f32 256  ;;  %vm424_vm1 = vsmask.f32 4368  ;;  %s6011_s14 = smov 4  }
  0x16   : > { %vm6139_vm2 = vmor %vm310_vm0, %vm424_vm1  ;;  %vm309_vm3 = vcmask 286720   ;;  %vm714_vm5 = vcmask 27648   ;;  %vm715_vm6 = vsmask.f32 7938  ;;  %s6012_s18 = smov 36   ;;  %vm1198_vm8 = vcmask 289824  }
  0x17   : > { %s287_s9 = scalar_select %p286_p10, %s6078_s25, 1  ;;  %vm6225_vm4 = vmand %vm309_vm3, %vm310_vm0  ;;  %vm1457_vm10 = vcmask 322848   ;;  %vm1682_vm11 = vcmask 585024   ;;  %vm1715_vm12 = vcmask 880195   ;;  %vm1716_vm13 = vsmask.f32 7950 }
  0x18   : > { %vm6258_vm7 = vmand %vm714_vm5, %vm715_vm6  ;;  %s6013_s19 = smov 40   ;;  %s6014_s20 = smov 72   ;;  %vm1958_vm15 = vcmask 618048   ;;  %vm1961_vm0 = vsmask.f32 3328  ;;  %vm302_vm3 = vcmask 879616  }
  0x19   : > { %s6107_s10 = sshll.u32 %s287_s9, 8  ;;  %vm6334_vm9 = vmand %vm1198_vm8, %vm715_vm6  ;;  %s6015_s26 = smov 76  }
  0x1a   : > { %s6113_s13 = scalar_lea.vmem %s8229_s1, %s6107_s10  ;;  %s6221_s17 = scalar_lea.vmem %s8228_s0, %s6107_s10  ;;  %vm6710_vm14 = vmand %vm1715_vm12, %vm1716_vm13 }
  0x1b   : > { %v786_v0 = vld [vmem:[%s6113_s13 + $0x20] sm:$0xff]  ;;  %v784_v1 = vld [vmem:[%s6113_s13 + $0x10] sm:$0xff]  ;;  %v785_v7 = vld [vmem:[%s6113_s13 + $0x18] sm:$0x7f]  ;;  %s6017_s11 = smov 32   ;;  %s6019_s15 = smov 96  }
  0x1c   : > { %v782_v2 = vld [vmem:[%s6113_s13] sm:$0xff]  ;;  %v818_v3 = vpack.c.bf16 %v786_v0, %v786_v0  ;;  %v816_v4 = vpack.c.bf16 %v784_v1, %v784_v1  ;;  %v788_v8 = vld [vmem:[%s6113_s13 + $0x30] sm:$0xff]  ;;  %v817_v10 = vpack.c.bf16 %v785_v7, %v785_v7  ;;  %v787_v19 = vld [vmem:[%s6113_s13 + $0x28] sm:$0x7f]  ;;  %s5714_s28 = sshll.u32 %s6078_s25, 8 }
  0x1d   : > { %v814_v5 = vpack.c.bf16 %v782_v2, %v782_v2  ;;  %v790_v6 = vld [vmem:[%s6113_s13 + $0x40] sm:$0xff]  ;;  %v820_v11 = vpack.c.bf16 %v788_v8, %v788_v8  ;;  %v789_v23 = vld [vmem:[%s6113_s13 + $0x38] sm:$0x7f]  ;;  %v783_v27 = vld [vmem:[%s6113_s13 + $0x8] sm:$0x7f]  ;;  %v819_v36 = vpack.c.bf16 %v787_v19, %v787_v19 }
  0x1e   : > { %v822_v9 = vpack.c.bf16 %v790_v6, %v790_v6  ;;  %v879_v12 = vshrl.u32 %v818_v3, 16  ;;  %v882_v13 = vshll.u32 %v818_v3, 16  ;;  %v863_v14 = vshrl.u32 %v816_v4, 16  ;;  %v792_v41 = vld [vmem:[%s6113_s13 + $0x50] sm:$0xff]  ;;  %v793_v42 = vld [vmem:[%s6113_s13 + $0x58] sm:$0x7f]  ;;  %vm6838_vm1 = vmand %vm1958_vm15, %vm1961_vm0 }
  0x1f   : > { %v866_v15 = vshll.u32 %v816_v4, 16  ;;  %v847_v16 = vshrl.u32 %v814_v5, 16  ;;  %v850_v17 = vshll.u32 %v814_v5, 16  ;;  %v871_v22 = vshrl.u32 %v817_v10, 16  ;;  %v791_v48 = vld [vmem:[%s6113_s13 + $0x48] sm:$0x7f] }
  0x20   : > { %v911_v18 = vshrl.u32 %v822_v9, 16  ;;  %v6122_v20 = vrot.slane %v879_v12, 7  ;;  %v865_v21 = vrot.slane %v863_v14, 7  ;;  %v874_v25 = vshll.u32 %v817_v10, 16  ;;  %v794_v5 = vld [vmem:[%s6113_s13 + $0x60] sm:$0xff]  ;;  %v796_v12 = vld [vmem:[%s6113_s13 + $0x70] sm:$0xff] }
  0x21   : > { %v6125_v24 = vrot.slane %v847_v16, 7  ;;  %v895_v26 = vshrl.u32 %v820_v11, 16  ;;  %v914_v30 = vshll.u32 %v822_v9, 16  ;;  %v873_v33 = vrot.slane %v871_v22, 7  ;;  %v795_v6 = vld [vmem:[%s6113_s13 + $0x68] sm:$0x7f] }
  0x22   : > { %v884_v28 = vor.u32 %v882_v13, %v6122_v20  ;;  %v868_v29 = vor.u32 %v866_v15, %v865_v21  ;;  %v6130_v32 = vrot.slane %v911_v18, 7  ;;  %v898_v34 = vshll.u32 %v820_v11, 16 }
  0x23   : > { %v852_v31 = vor.u32 %v850_v17, %v6125_v24  ;;  %v897_v35 = vrot.slane %v895_v26, 7  ;;  %v821_v37 = vpack.c.bf16 %v789_v23, %v789_v23  ;;  %v815_v38 = vpack.c.bf16 %v783_v27, %v783_v27 }
  0x24   : > { %1110 = vrot.lane.b32.xlu2 %v884_v28, %s6011_s14  ;;  %1106 = vrot.lane.b32.xlu1 %v868_v29, %s6011_s14  ;;  %v869_v39 = vrot.slane %v865_v21, 4  ;;  %v876_v40 = vor.u32 %v874_v25, %v873_v33  ;;  %v887_v44 = vshrl.u32 %v819_v36, 16  ;;  %v916_v45 = vor.u32 %v914_v30, %v6130_v32  ;;  %v799_v25 = vld [vmem:[%s6113_s13 + $0x88] sm:$0x7f]  ;;  %v797_v28 = vld [vmem:[%s6113_s13 + $0x78] sm:$0x7f] }
  0x25   : > { %1102 = vrot.lane.b32.xlu0 %v852_v31, %s6011_s14  ;;  %v903_v46 = vshrl.u32 %v821_v37, 16  ;;  %v855_v47 = vshrl.u32 %v815_v38, 16  ;;  %v900_v49 = vor.u32 %v898_v34, %v897_v35  ;;  %v890_v50 = vshll.u32 %v819_v36, 16 }
  0x26   : > { %v824_v51 = vpack.c.bf16 %v792_v41, %v792_v41  ;;  %v825_v52 = vpack.c.bf16 %v793_v42, %v793_v42  ;;  %v877_v53 = vsel %vm6139_vm2, %v869_v39, %v876_v40  ;;  %v889_v54 = vrot.slane %v887_v44, 7 }
  0x27   : > { %v905_v55 = vrot.slane %v903_v46, 7  ;;  %v906_v56 = vshll.u32 %v821_v37, 16  ;;  %v857_v57 = vrot.slane %v855_v47, 7  ;;  %v858_v58 = vshll.u32 %v815_v38, 16 }
  0x28   : > { %v823_v59 = vpack.c.bf16 %v791_v48, %v791_v48  ;;  %v927_v60 = vshrl.u32 %v824_v51, 16  ;;  %v935_v61 = vshrl.u32 %v825_v52, 16  ;;  %v885_v62 = vrot.slane %v6122_v20, 4  ;;  %v800_v48 = vld [vmem:[%s6113_s13 + $0x90] sm:$0xff] }
  0x29   : > { %v892_v63 = vor.u32 %v890_v50, %v889_v54  ;;  %v901_v0 = vrot.slane %v897_v35, 4  ;;  %v908_v1 = vor.u32 %v906_v56, %v905_v55  ;;  %v853_v2 = vrot.slane %v6125_v24, 4  ;;  %v798_v24 = vld [vmem:[%s6113_s13 + $0x80] sm:$0xff] }
  0x2a   : > { %v860_v3 = vor.u32 %v858_v58, %v857_v57  ;;  %v919_v4 = vshrl.u32 %v823_v59, 16  ;;  %v929_v7 = vrot.slane %v927_v60, 7  ;;  %v937_v8 = vrot.slane %v935_v61, 7  ;;  %v802_v56 = vld [vmem:[%s6113_s13 + $0xa0] sm:$0xff] }
  0x2b   : > { %v938_v9 = vshll.u32 %v825_v52, 16  ;;  %v893_v10 = vsel %vm6139_vm2, %v885_v62, %v892_v63  ;;  %v909_v11 = vsel %vm6139_vm2, %v901_v0, %v908_v1  ;;  %v826_v13 = vpack.c.bf16 %v794_v5, %v794_v5 }
  0x2c   : > { %1118 = vrot.lane.b32.xlu2 %v916_v45, %s6011_s14  ;;  %1108 = vrot.lane.b32.xlu1 %v877_v53, %s6011_s14  ;;  %v827_v14 = vpack.c.bf16 %v795_v6, %v795_v6  ;;  %v861_v15 = vsel %vm6139_vm2, %v853_v2, %v860_v3  ;;  %v921_v16 = vrot.slane %v919_v4, 7  ;;  %v922_v17 = vshll.u32 %v823_v59, 16  ;;  %v804_v3 = vld [vmem:[%s6113_s13 + $0xb0] sm:$0xff]  ;;  %v805_v6 = vld [vmem:[%s6113_s13 + $0xb8] sm:$0x7f] }
  0x2d   : > { %1114 = vrot.lane.b32.xlu0 %v900_v49, %s6011_s14  ;;  %v930_v18 = vshll.u32 %v824_v51, 16  ;;  %v828_v19 = vpack.c.bf16 %v796_v12, %v796_v12  ;;  %v933_v20 = vrot.slane %v929_v7, 4  ;;  %v940_v21 = vor.u32 %v938_v9, %v937_v8  ;;  %v801_v49 = vld [vmem:[%s6113_s13 + $0x98] sm:$0x7f] }
  0x2e   : > { %v943_v22 = vshrl.u32 %v826_v13, 16  ;;  %v951_v23 = vshrl.u32 %v827_v14, 16  ;;  %v917_v26 = vrot.slane %v6130_v32, 4  ;;  %v924_v27 = vor.u32 %v922_v17, %v921_v16 }
  0x2f   : > { %v932_v29 = vor.u32 %v930_v18, %v929_v7  ;;  %v959_v30 = vshrl.u32 %v828_v19, 16  ;;  %v830_v31 = vpack.c.bf16 %v798_v24, %v798_v24  ;;  %v831_v33 = vpack.c.bf16 %v799_v25, %v799_v25  ;;  %v803_v7 = vld [vmem:[%s6113_s13 + $0xa8] sm:$0x7f] }
  0x30   : > { %v941_v34 = vsel %vm6139_vm2, %v933_v20, %v940_v21  ;;  %v945_v35 = vrot.slane %v943_v22, 7  ;;  %v953_v36 = vrot.slane %v951_v23, 7  ;;  %v954_v37 = vshll.u32 %v827_v14, 16 }
  0x31   : > { %v925_v38 = vsel %vm6139_vm2, %v917_v26, %v924_v27  ;;  %v829_v39 = vpack.c.bf16 %v797_v28, %v797_v28  ;;  %v961_v32 = vrot.slane %v959_v30, 7  ;;  %v962_v40 = vshll.u32 %v828_v19, 16  ;;  %v806_v26 = vld [vmem:[%s6113_s13 + $0xc0] sm:$0xff]  ;;  %v807_v27 = vld [vmem:[%s6113_s13 + $0xc8] sm:$0x7f] }
  0x32   : > { %v975_v41 = vshrl.u32 %v830_v31, 16  ;;  %v983_v42 = vshrl.u32 %v831_v33, 16  ;;  %v949_v44 = vrot.slane %v945_v35, 4  ;;  %v956_v45 = vor.u32 %v954_v37, %v953_v36 }
  0x33   : > { %v946_v46 = vshll.u32 %v826_v13, 16  ;;  %v967_v47 = vshrl.u32 %v829_v39, 16  ;;  %v964_v50 = vor.u32 %v962_v40, %v961_v32  ;;  %v986_v53 = vshll.u32 %v831_v33, 16  ;;  %v808_v33 = vld [vmem:[%s6113_s13 + $0xd0] sm:$0xff] }
  0x34   : > { %1112 = vrot.lane.b32.xlu2 %v893_v10, %s6011_s14  ;;  %1116 = vrot.lane.b32.xlu1 %v909_v11, %s6011_s14  ;;  %v977_v51 = vrot.slane %v975_v41, 7  ;;  %v985_v52 = vrot.slane %v983_v42, 7  ;;  %v957_v54 = vsel %vm6139_vm2, %v949_v44, %v956_v45  ;;  %v832_v57 = vpack.c.bf16 %v800_v48, %v800_v48  ;;  %v810_v41 = vld [vmem:[%s6113_s13 + $0xe0] sm:$0xff] }
  0x35   : > { %1104 = vrot.lane.b32.xlu0 %v861_v15, %s6011_s14  ;;  %v948_v55 = vor.u32 %v946_v46, %v945_v35  ;;  %v833_v58 = vpack.c.bf16 %v801_v49, %v801_v49  ;;  %v969_v59 = vrot.slane %v967_v47, 7  ;;  %v970_v60 = vshll.u32 %v829_v39, 16  ;;  %v811_v47 = vld [vmem:[%s6113_s13 + $0xe8] sm:$0x7f] }
  0x36   : > { %v981_v61 = vrot.slane %v977_v51, 4  ;;  %v988_v62 = vor.u32 %v986_v53, %v985_v52  ;;  %v978_v63 = vshll.u32 %v830_v31, 16  ;;  %v834_v0 = vpack.c.bf16 %v802_v56, %v802_v56  ;;  %v809_v52 = vld [vmem:[%s6113_s13 + $0xd8] sm:$0x7f] }
  0x37   : > { %v991_v1 = vshrl.u32 %v832_v57, 16  ;;  %v999_v2 = vshrl.u32 %v833_v58, 16  ;;  %v965_v4 = vrot.slane %v961_v32, 4  ;;  %v972_v5 = vor.u32 %v970_v60, %v969_v59 }
  0x38   : > { %v989_v8 = vsel %vm6139_vm2, %v981_v61, %v988_v62  ;;  %v980_v9 = vor.u32 %v978_v63, %v977_v51  ;;  %v1007_v10 = vshrl.u32 %v834_v0, 16  ;;  %v836_v11 = vpack.c.bf16 %v804_v3, %v804_v3 }
  0x39   : > { %v993_v12 = vrot.slane %v991_v1, 7  ;;  %v1001_v13 = vrot.slane %v999_v2, 7  ;;  %v1002_v14 = vshll.u32 %v833_v58, 16  ;;  %v837_v15 = vpack.c.bf16 %v805_v6, %v805_v6 }
  0x3a   : > { %v973_v16 = vsel %vm6139_vm2, %v965_v4, %v972_v5  ;;  %v835_v17 = vpack.c.bf16 %v803_v7, %v803_v7  ;;  %v1009_v18 = vrot.slane %v1007_v10, 7  ;;  %v1010_v19 = vshll.u32 %v834_v0, 16  ;;  %v812_v4 = vld [vmem:[%s6113_s13 + $0xf0] sm:$0xff]  ;;  %v318_v5 = vld [vmem:[#allocation2 + $0x18] sm:$0x1] }
  0x3b   : > { %v994_v20 = vshll.u32 %v832_v57, 16  ;;  %v1023_v21 = vshrl.u32 %v836_v11, 16  ;;  %v997_v22 = vrot.slane %v993_v12, 4  ;;  %v1004_v23 = vor.u32 %v1002_v14, %v1001_v13  ;;  %v813_v7 = vld [vmem:[%s6113_s13 + $0xf8] sm:$0x7f] }
  0x3c   : > { %1124 = vrot.lane.b32.xlu2 %v941_v34, %s6011_s14  ;;  %1122 = vrot.lane.b32.xlu1 %v932_v29, %s6011_s14  ;;  %v1031_v24 = vshrl.u32 %v837_v15, 16  ;;  %v1015_v25 = vshrl.u32 %v835_v17, 16  ;;  %v1012_v28 = vor.u32 %v1010_v19, %v1009_v18  ;;  %v1034_v31 = vshll.u32 %v837_v15, 16 }
  0x3d   : > { %1120 = vrot.lane.b32.xlu0 %v925_v38, %s6011_s14  ;;  %v996_v29 = vor.u32 %v994_v20, %v993_v12  ;;  %v1025_v30 = vrot.slane %v1023_v21, 7  ;;  %v1005_v34 = vsel %vm6139_vm2, %v997_v22, %v1004_v23  ;;  %v838_v36 = vpack.c.bf16 %v806_v26, %v806_v26 }
  0x3e   : > { %v1033_v35 = vrot.slane %v1031_v24, 7  ;;  %v839_v37 = vpack.c.bf16 %v807_v27, %v807_v27  ;;  %v1017_v38 = vrot.slane %v1015_v25, 7  ;;  %v1018_v39 = vshll.u32 %v835_v17, 16 }
  0x3f   : > { %v840_v32 = vpack.c.bf16 %v808_v33, %v808_v33  ;;  %v1026_v40 = vshll.u32 %v836_v11, 16  ;;  %v1029_v42 = vrot.slane %v1025_v30, 4  ;;  %v1039_v45 = vshrl.u32 %v838_v36, 16  ;;  %v324_v33 = vld [vmem:[#allocation2 + $0x28] sm:$0x1] }
  0x40   : > { %v1036_v44 = vor.u32 %v1034_v31, %v1033_v35  ;;  %v1047_v46 = vshrl.u32 %v839_v37, 16  ;;  %v1013_v48 = vrot.slane %v1009_v18, 4  ;;  %v1020_v49 = vor.u32 %v1018_v39, %v1017_v38  ;;  %v368_v38 = vld [vmem:[%s6221_s17 + $0x40] sm:$0xff] }
  0x41   : > { %v6203_v51 = vpack.c.bf16 %v810_v41, %v810_v41  ;;  %v1028_v53 = vor.u32 %v1026_v40, %v1025_v30  ;;  %v1041_v56 = vrot.slane %v1039_v45, 7  ;;  %v1050_v58 = vshll.u32 %v839_v37, 16 }
  0x42   : > { %v1049_v57 = vrot.slane %v1047_v46, 7  ;;  %v1021_v59 = vsel %vm6139_vm2, %v1013_v48, %v1020_v49  ;;  %v841_v60 = vpack.c.bf16 %v809_v52, %v809_v52  ;;  %v1058_v62 = vshll.u32 %v840_v32, 16 }
  0x43   : > { %v1071_v63 = vshrl.u32 %v6203_v51, 16  ;;  %v1042_v0 = vshll.u32 %v838_v36, 16  ;;  %v1045_v2 = vrot.slane %v1041_v56, 4  ;;  %v319_v12 = vsel %vm6225_vm4, 0, %v318_v5 }
  0x44   : > { %1130 = vrot.lane.b32.xlu2 %v964_v50, %s6011_s14  ;;  %1128 = vrot.lane.b32.xlu1 %v957_v54, %s6011_s14  ;;  %v1055_v50 = vshrl.u32 %v840_v32, 16  ;;  %v843_v54 = vpack.c.bf16 %v811_v47, %v811_v47  ;;  %v1052_v3 = vor.u32 %v1050_v58, %v1049_v57  ;;  %v1063_v6 = vshrl.u32 %v841_v60, 16  ;;  %320 = vst [vmem:[#allocation2 + $0x18] sm:$0x1] %v319_v12  ;;  %v1271_v57 = vld [vmem:[%s6221_s17 + $0x30] sm:$0xff] }
  0x45   : > { %1126 = vrot.lane.b32.xlu0 %v948_v55, %s6011_s14  ;;  %v1037_v55 = vsel %vm6139_vm2, %v1029_v42, %v1036_v44  ;;  %v1073_v11 = vrot.slane %v1071_v63, 7  ;;  %v1044_v14 = vor.u32 %v1042_v0, %v1041_v56  ;;  %v6235_v17 = vpack.c.bf16 %v812_v4, %v812_v4  ;;  %v365_v0 = vld [vmem:[%s6221_s17 + $0x28] sm:$0x7f] }
  0x46   : > { %v6210_v61 = vrot.slane %v1055_v50, 7  ;;  %v1079_v1 = vshrl.u32 %v843_v54, 16  ;;  %v1053_v18 = vsel %vm6139_vm2, %v1045_v2, %v1052_v3  ;;  %v845_v19 = vpack.c.bf16 %v813_v7, %v813_v7 }
  0x47   : > { %v1065_v22 = vrot.slane %v1063_v6, 7  ;;  %v1066_v23 = vshll.u32 %v841_v60, 16  ;;  %v1077_v24 = vrot.slane %v1073_v11, 4  ;;  %v1074_v25 = vshll.u32 %v6203_v51, 16 }
  0x48   : > { %v1060_v10 = vor.u32 %v1058_v62, %v6210_v61  ;;  %v1081_v15 = vrot.slane %v1079_v1, 7  ;;  %v1095_v30 = vshrl.u32 %v845_v19, 16  ;;  %v1061_v35 = vrot.slane %v6210_v61, 4  ;;  %v321_v62 = vld [vmem:[#allocation2 + $0x20] sm:$0x1] }
  0x49   : > { %v1068_v36 = vor.u32 %v1066_v23, %v1065_v22  ;;  %v325_v37 = vsel %vm6225_vm4, 0, %v324_v33  ;;  %v1076_v32 = vor.u32 %v1074_v25, %v1073_v11  ;;  %v6262_v44 = vpack.c.bf16 %v368_v38, %v368_v38 }
  0x4a   : > { %326 = vst [vmem:[#allocation2 + $0x28] sm:$0x1] %v325_v37  ;;  %v1098_v47 = vshll.u32 %v845_v19, 16  ;;  %v1097_v49 = vrot.slane %v1095_v30, 7  ;;  %v1090_v56 = vshll.u32 %v6235_v17, 16  ;;  %v322_v2 = vsel %vm6225_vm4, 0, %v321_v62 }
  0x4b   : > { %v726_v42 = vld [vmem:[#allocation2 + $0x18] sm:$0xf]  ;;  %v491_v50 = vshrl.u32 %v6262_v44, 16  ;;  %v494_v51 = vshll.u32 %v6262_v44, 16  ;;  %v6286_v3 = vpack.c.bf16 %v1271_v57, %v1271_v57  ;;  %v397_v5 = vpack.c.bf16 %v365_v0, %v365_v0  ;;  %323 = vst [vmem:[#allocation2 + $0x20] sm:$0x1] %v322_v2 }
  0x4c   : > { %1136 = vrot.lane.b32.xlu2 %v989_v8, %s6011_s14  ;;  %1134 = vrot.lane.b32.xlu1 %v980_v9, %s6011_s14  ;;  %v364_v9 = vld [vmem:[%s6221_s17 + $0x20] sm:$0xff]  ;;  %v1100_v60 = vor.u32 %v1098_v47, %v1097_v49  ;;  %v1268_v19 = vld [vmem:[%s6221_s17 + $0x18] sm:$0xff] }
  0x4d   : > { %1132 = vrot.lane.b32.xlu0 %v973_v16, %s6011_s14  ;;  %v6233_v13 = vpack.c.bf16 %v364_v9, %v364_v9  ;;  %v1082_v16 = vshll.u32 %v843_v54, 16  ;;  %v6272_v54 = vrot.slane %v491_v50, 7  ;;  %v467_v11 = vshrl.u32 %v397_v5, 16  ;;  %v1279_v47 = vld [vmem:[%s6221_s17 + $0x70] sm:$0xff] }
  0x4e   : > { %v470_v12 = vshll.u32 %v397_v5, 16  ;;  %v478_v22 = vshll.u32 %v6286_v3, 16  ;;  %v1300_v30 = vpack.c.bf16 %v1268_v19, %v1268_v19  ;;  %v1504_v62 = vld [vmem:[%s6113_s13 + $0x70] sm:$0xff] }
  0x4f   : > { %v459_v20 = vshrl.u32 %v6233_v13, 16  ;;  %v462_v21 = vshll.u32 %v6233_v13, 16  ;;  %v1084_v27 = vor.u32 %v1082_v16, %v1081_v15  ;;  %v496_v61 = vor.u32 %v494_v51, %v6272_v54  ;;  %v1275_v15 = vld [vmem:[%s6221_s17 + $0x50] sm:$0xff] }
  0x50   : > { %v1267_v16 = vld [vmem:[%s6221_s17 + $0x10] sm:$0xff] }
  0x51   : > { %v6242_v26 = vrot.slane %v459_v20, 7  ;;  %v1085_v45 = vsel %vm6139_vm2, %v1077_v24, %v1084_v27  ;;  %v734_v63 = vld [vmem:[#allocation2 + $0x28] sm:$0xf]  ;;  %v6301_v20 = vpack.c.bf16 %v1275_v15, %v1275_v15  ;;  %v327_v24 = vld [vmem:[#allocation2 + $0x30] sm:$0x1]  ;;  %v1299_v25 = vpack.c.bf16 %v1267_v16, %v1267_v16 }
  0x52   : > { %v735_v4 = vsel %vm6258_vm7, %v496_v61, %v734_v63  ;;  %v1266_v27 = vld [vmem:[%s6221_s17 + $0x8] sm:$0xff]  ;;  %v730_v51 = vld [vmem:[#allocation2 + $0x20] sm:$0xf]  ;;  %v363_v15 = vld [vmem:[%s6221_s17 + $0x18] sm:$0x7f] }
  0x53   : > { %v464_v31 = vor.u32 %v462_v21, %v6242_v26  ;;  %736 = vst [vmem:[#allocation2 + $0x28] sm:$0xf] %v735_v4  ;;  %v443_v38 = vshrl.u32 %v1299_v25, 16  ;;  %v361_v61 = vld [vmem:[%s6221_s17 + $0x8] sm:$0x7f] }
  0x54   : > { %1142 = vrot.lane.b32.xlu2 %v1012_v28, %s6011_s14  ;;  %1140 = vrot.lane.b32.xlu1 %v1005_v34, %s6011_s14  ;;  %v1087_v28 = vshrl.u32 %v6235_v17, 16  ;;  %v312_v34 = vld [vmem:[#allocation2 + $0x8] sm:$0x1]  ;;  %v465_v17 = vrot.slane %v6242_v26, 4  ;;  %v328_v26 = vsel %vm6225_vm4, 0, %v327_v24  ;;  %v393_v4 = vpack.c.bf16 %v361_v61, %v361_v61  ;;  %v1277_v61 = vld [vmem:[%s6221_s17 + $0x60] sm:$0xff] }
  0x55   : > { %1138 = vrot.lane.b32.xlu0 %v996_v29, %s6011_s14  ;;  %v1265_v29 = vld [vmem:[%s6221_s17] sm:$0xff]  ;;  %v313_v39 = vsel %vm6225_vm4, 0, %v312_v34  ;;  %v727_v48 = vsel %vm6258_vm7, %v464_v31, %v726_v42  ;;  %329 = vst [vmem:[#allocation2 + $0x30] sm:$0x1] %v328_v26  ;;  %v510_v34 = vshll.u32 %v6301_v20, 16 }
  0x56   : > { %v1297_v40 = vpack.c.bf16 %v1265_v29, %v1265_v29  ;;  %v1089_v46 = vrot.slane %v1087_v28, 7  ;;  %314 = vst [vmem:[#allocation2 + $0x8] sm:$0x1] %v313_v39  ;;  %v371_v28 = vld [vmem:[%s6221_s17 + $0x58] sm:$0x7f]  ;;  %v507_v29 = vshrl.u32 %v6301_v20, 16 }
  0x57   : > { %728 = vst [vmem:[#allocation2 + $0x18] sm:$0xf] %v727_v48  ;;  %v403_v33 = vpack.c.bf16 %v371_v28, %v371_v28  ;;  %v435_v16 = vshrl.u32 %v393_v4, 16  ;;  %v438_v19 = vshll.u32 %v393_v4, 16  ;;  %v1274_v28 = vld [vmem:[%s6221_s17 + $0x48] sm:$0xff] }
  0x58   : > { %v427_v52 = vshrl.u32 %v1297_v40, 16  ;;  %v430_v58 = vshll.u32 %v1297_v40, 16  ;;  %v1092_v7 = vor.u32 %v1090_v56, %v1089_v46  ;;  %v6325_v56 = vpack.c.bf16 %v1279_v47, %v1279_v47 }
  0x59   : > { %v518_v42 = vshll.u32 %v403_v33, 16  ;;  %v437_v24 = vrot.slane %v435_v16, 7  ;;  %v1309_v16 = vpack.c.bf16 %v1277_v61, %v1277_v61  ;;  %v375_v61 = vld [vmem:[%s6221_s17 + $0x78] sm:$0x7f] }
  0x5a   : > { %v539_v2 = vshrl.u32 %v6325_v56, 16 }
  0x5c   : > { %1148 = vrot.lane.b32.xlu2 %v1037_v55, %s6011_s14  ;;  %1146 = vrot.lane.b32.xlu1 %v1028_v53, %s6011_s14  ;;  %v1069_v53 = vsel %vm6139_vm2, %v1061_v35, %v1068_v36  ;;  %v6274_v55 = vrot.slane %v427_v52, 7  ;;  %v315_v35 = vld [vmem:[#allocation2 + $0x10] sm:$0x1]  ;;  %v509_v36 = vrot.slane %v507_v29, 7 }
  0x5d   : > { %1144 = vrot.lane.b32.xlu0 %v1021_v59, %s6011_s14  ;;  %v1093_v59 = vrot.slane %v1089_v46, 4  ;;  %v717_v6 = vld [vmem:[#allocation2 + $0x8] sm:$0xf]  ;;  %v316_v37 = vsel %vm6225_vm4, 0, %v315_v35  ;;  %v6319_v46 = vrot.slane %v443_v38, 7 }
  0x5e   : > { %v432_v1 = vor.u32 %v430_v58, %v6274_v55  ;;  %317 = vst [vmem:[#allocation2 + $0x10] sm:$0x1] %v316_v37  ;;  %v512_v48 = vor.u32 %v510_v34, %v509_v36  ;;  %v513_v49 = vrot.slane %v509_v36, 4  ;;  %v1209_v52 = vld [vmem:[#allocation2 + $0x18] sm:$0xf]  ;;  %v440_v34 = vor.u32 %v438_v19, %v437_v24 }
  0x5f   : > { %v738_v0 = vld [vmem:[#allocation2 + $0x30] sm:$0xf]  ;;  %v449_v29 = vrot.slane %v6319_v46, 4  ;;  %v330_v24 = vld [vmem:[#allocation2 + $0x38] sm:$0x1] }
  0x60   : > { %v718_v9 = vsel %vm6258_vm7, %v432_v1, %v717_v6 }
  0x61   : > { %719 = vst [vmem:[#allocation2 + $0x8] sm:$0xf] %v718_v9  ;;  %v542_v9 = vshll.u32 %v6325_v56, 16 }
  0x64   : > { %1154 = vrot.lane.b32.xlu2 %v1060_v10, %s6011_s14  ;;  %1152 = vrot.lane.b32.xlu1 %v1053_v18, %s6011_s14  ;;  %v1101_v10 = vsel %vm6139_vm2, %v1093_v59, %v1100_v60  ;;  %v469_v18 = vrot.slane %v467_v11, 7  ;;  %v333_v60 = vld [vmem:[#allocation2 + $0x40] sm:$0x1] }
  0x65   : > { %1150 = vrot.lane.b32.xlu0 %v1044_v14, %s6011_s14  ;;  %v475_v14 = vshrl.u32 %v6286_v3, 16  ;;  %v334_v1 = vsel %vm6225_vm4, 0, %v333_v60  ;;  %v722_v11 = vld [vmem:[#allocation2 + $0x10] sm:$0xf] }
  0x66   : > { %v472_v23 = vor.u32 %v470_v12, %v469_v18  ;;  %335 = vst [vmem:[#allocation2 + $0x40] sm:$0x1] %v334_v1  ;;  %v6348_v12 = vrot.slane %v539_v2, 7  ;;  %v1281_v18 = vld [vmem:[%s6221_s17 + $0x80] sm:$0xff] }
  0x67   : > { %v6303_v21 = vrot.slane %v475_v14, 7 }
  0x68   : > { %v473_v31 = vsel %vm6139_vm2, %v465_v17, %v472_v23  ;;  %v395_v17 = vpack.c.bf16 %v363_v15, %v363_v15  ;;  %v544_v23 = vor.u32 %v542_v9, %v6348_v12 }
  0x69   : > { %729 = vst.msk [vmem:[#allocation2 + $0x1c] sm:$0xf] %vm714_vm5, %v473_v31  ;;  %v480_v39 = vor.u32 %v478_v22, %v6303_v21  ;;  %v1272_v22 = vld [vmem:[%s6221_s17 + $0x38] sm:$0xff]  ;;  %v336_v31 = vld [vmem:[#allocation2 + $0x48] sm:$0x1]  ;;  %v481_v4 = vrot.slane %v6303_v21, 4 }
  0x6a   : > { %v454_v26 = vshll.u32 %v395_v17, 16  ;;  %v1304_v36 = vpack.c.bf16 %v1272_v22, %v1272_v22  ;;  %v337_v38 = vsel %vm6225_vm4, 0, %v336_v31  ;;  %v497_v22 = vrot.slane %v6272_v54, 4 }
  0x6b   : > { %v731_v57 = vsel %vm6258_vm7, %v480_v39, %v730_v51  ;;  %v377_v39 = vld [vmem:[%s6221_s17 + $0x88] sm:$0x7f]  ;;  %338 = vst [vmem:[#allocation2 + $0x48] sm:$0x1] %v337_v38 }
  0x6c   : > { %1160 = vrot.lane.b32.xlu2 %v1085_v45, %s6011_s14  ;;  %1158 = vrot.lane.b32.xlu1 %v1076_v32, %s6011_s14  ;;  %v1298_v32 = vpack.c.bf16 %v1266_v27, %v1266_v27  ;;  %v446_v45 = vshll.u32 %v1299_v25, 16  ;;  %732 = vst [vmem:[#allocation2 + $0x20] sm:$0xf] %v731_v57  ;;  %v451_v27 = vshrl.u32 %v395_v17, 16  ;;  %v1285_v57 = vld [vmem:[%s6221_s17 + $0xa0] sm:$0xff] }
  0x6d   : > { %1156 = vrot.lane.b32.xlu0 %v1069_v53, %s6011_s14  ;;  %v1270_v53 = vld [vmem:[%s6221_s17 + $0x28] sm:$0xff] }
  0x6e   : > { %v448_v59 = vor.u32 %v446_v45, %v6319_v46  ;;  %v453_v37 = vrot.slane %v451_v27, 7  ;;  %v1306_v45 = vpack.c.bf16 %v1274_v28, %v1274_v28  ;;  %v523_v28 = vshrl.u32 %v1309_v16, 16 }
  0x70   : > { %v723_v14 = vsel %vm6258_vm7, %v448_v59, %v722_v11  ;;  %v456_v46 = vor.u32 %v454_v26, %v453_v37  ;;  %v1287_v37 = vld [vmem:[%s6221_s17 + $0xb0] sm:$0xff]  ;;  %v6420_v38 = vrot.slane %v523_v28, 7 }
  0x71   : > { %724 = vst [vmem:[#allocation2 + $0x10] sm:$0xf] %v723_v14 }
  0x72   : > { %v750_v17 = vld [vmem:[#allocation2 + $0x48] sm:$0xf] }
  0x74   : > { %1164 = vrot.lane.b32.xlu1 %v1101_v10, %s6011_s14  ;;  %1361 = vrot.lane.b32.xlu2 %v1297_v40, %s6012_s18  ;;  %v515_v40 = vshrl.u32 %v403_v33, 16  ;;  %v1302_v10 = vpack.c.bf16 %v1270_v53, %v1270_v53  ;;  %v433_v33 = vrot.slane %v6274_v55, 4 }
  0x75   : > { %1162 = vrot.lane.b32.xlu0 %v1092_v7, %s6011_s14  ;;  %v739_v7 = vsel %vm6258_vm7, %v512_v48, %v738_v0  ;;  %s6018_s14 = smov 64  }
  0x76   : > { %v517_v50 = vrot.slane %v515_v40, 7  ;;  %740 = vst [vmem:[#allocation2 + $0x30] sm:$0xf] %v739_v7  ;;  %v409_v40 = vpack.c.bf16 %v377_v39, %v377_v39  ;;  %v441_v53 = vsel %vm6139_vm2, %v433_v33, %v440_v34  ;;  %v1276_v7 = vld [vmem:[%s6221_s17 + $0x58] sm:$0xff]  ;;  %v331_v33 = vsel %vm6225_vm4, 0, %v330_v24 }
  0x77   : > { %721 = vst.msk [vmem:[#allocation2 + $0xc] sm:$0xf] %vm714_vm5, %v441_v53  ;;  %v526_v39 = vshll.u32 %v1309_v16, 16  ;;  %v373_v53 = vld [vmem:[%s6221_s17 + $0x68] sm:$0x7f] }
  0x78   : > { %v520_v58 = vor.u32 %v518_v42, %v517_v50  ;;  %v367_v42 = vld [vmem:[%s6221_s17 + $0x38] sm:$0x7f]  ;;  %v563_v51 = vshrl.u32 %v409_v40, 16  ;;  %v1205_v34 = vld [vmem:[#allocation2 + $0x10] sm:$0xf] }
  0x79   : > { %v399_v48 = vpack.c.bf16 %v367_v42, %v367_v42  ;;  %332 = vst [vmem:[#allocation2 + $0x38] sm:$0x1] %v331_v33 }
  0x7a   : > { %v521_v6 = vsel %vm6139_vm2, %v513_v49, %v520_v58  ;;  %v369_v49 = vld [vmem:[%s6221_s17 + $0x48] sm:$0x7f]  ;;  %v457_v58 = vsel %vm6139_vm2, %v449_v29, %v456_v46  ;;  %v565_v1 = vrot.slane %v563_v51, 7 }
  0x7b   : > { %741 = vst.msk [vmem:[#allocation2 + $0x34] sm:$0xf] %vm714_vm5, %v521_v6  ;;  %v483_v59 = vshrl.u32 %v399_v48, 16  ;;  %v486_v60 = vshll.u32 %v399_v48, 16  ;;  %v401_v2 = vpack.c.bf16 %v369_v49, %v369_v49  ;;  %v6390_v6 = vpack.c.bf16 %v1285_v57, %v1285_v57  ;;  %v383_v48 = vld [vmem:[%s6221_s17 + $0xb8] sm:$0x7f] }
  0x7c   : > { %1365 = vrot.lane.b32.xlu1 %v1299_v25, %s6012_s18  ;;  %1367 = vrot.lane.b32.xlu2 %v1300_v30, %s6012_s18  ;;  %v1217_v25 = vld [vmem:[#allocation2 + $0x28] sm:$0xf]  ;;  %v6364_v30 = vpack.c.bf16 %v1281_v18, %v1281_v18  ;;  %725 = vst.msk [vmem:[#allocation2 + $0x14] sm:$0xf] %vm714_vm5, %v457_v58  ;;  %v415_v51 = vpack.c.bf16 %v383_v48, %v383_v48 }
  0x7d   : > { %1363 = vrot.lane.b32.xlu0 %v1298_v32, %s6012_s18  ;;  %v499_v11 = vshrl.u32 %v401_v2, 16  ;;  %v502_v14 = vshll.u32 %v401_v2, 16  ;;  %v590_v54 = vshll.u32 %v6390_v6, 16  ;;  %v407_v2 = vpack.c.bf16 %v375_v61, %v375_v61  ;;  %v1286_v48 = vld [vmem:[%s6221_s17 + $0xa8] sm:$0xff] }
  0x7e   : > { %v1111_v63 = vpop.permute.xlu2 %1110  ;;  %v555_v55 = vshrl.u32 %v6364_v30, 16  ;;  %v558_v47 = vshll.u32 %v6364_v30, 16 }
  0x7f   : > { %v1210_v5 = vsel %vm6334_vm9, %v1111_v63, %v1209_v52  ;;  %v566_v52 = vshll.u32 %v409_v40, 16  ;;  %v345_v40 = vld [vmem:[#allocation2 + $0x60] sm:$0x1]  ;;  %v547_v24 = vshrl.u32 %v407_v2, 16 }
  0x80   : > { %1211 = vst [vmem:[#allocation2 + $0x18] sm:$0xf] %v1210_v5  ;;  %v557_v50 = vrot.slane %v555_v55, 7  ;;  %v485_v5 = vrot.slane %v483_v59, 7  ;;  %v405_v59 = vpack.c.bf16 %v373_v53, %v373_v53  ;;  %v339_v53 = vld [vmem:[#allocation2 + $0x50] sm:$0x1] }
  0x81   : > { %v568_v9 = vor.u32 %v566_v52, %v565_v1  ;;  %v614_v1 = vshll.u32 %v415_v51, 16 }
  0x82   : > { %v560_v63 = vor.u32 %v558_v47, %v557_v50  ;;  %v561_v0 = vrot.slane %v557_v50, 4  ;;  %v488_v18 = vor.u32 %v486_v60, %v485_v5  ;;  %v346_v50 = vsel %vm6225_vm4, 0, %v345_v40 }
  0x83   : > { %v528_v60 = vor.u32 %v526_v39, %v6420_v38  ;;  %347 = vst [vmem:[#allocation2 + $0x60] sm:$0x1] %v346_v50  ;;  %v531_v5 = vshrl.u32 %v405_v59, 16  ;;  %v545_v40 = vrot.slane %v6348_v12, 4 }
  0x84   : > { %1371 = vrot.lane.b32.xlu1 %v1302_v10, %s6012_s18  ;;  %1373 = vrot.lane.b32.xlu2 %v6286_v3, %s6012_s18  ;;  %v746_v3 = vld [vmem:[#allocation2 + $0x40] sm:$0xf]  ;;  %v342_v10 = vld [vmem:[#allocation2 + $0x58] sm:$0x1]  ;;  %v569_v21 = vsel %vm6139_vm2, %v561_v0, %v568_v9  ;;  %v751_v19 = vsel %vm6258_vm7, %v560_v63, %v750_v17  ;;  %v489_v27 = vsel %vm6139_vm2, %v481_v4, %v488_v18  ;;  %v611_v0 = vshrl.u32 %v415_v51, 16 }
  0x85   : > { %1369 = vrot.lane.b32.xlu0 %v6233_v13, %s6012_s18  ;;  %v747_v32 = vsel %vm6258_vm7, %v544_v23, %v746_v3  ;;  %v501_v23 = vrot.slane %v499_v11, 7  ;;  %753 = vst.msk [vmem:[#allocation2 + $0x4c] sm:$0xf] %vm714_vm5, %v569_v21  ;;  %v343_v26 = vsel %vm6225_vm4, 0, %v342_v10  ;;  %v742_v17 = vld [vmem:[#allocation2 + $0x38] sm:$0xf] }
  0x86   : > { %v1119_v35 = vpop.permute.xlu2 %1118  ;;  %748 = vst [vmem:[#allocation2 + $0x40] sm:$0xf] %v747_v32  ;;  %v6424_v32 = vpack.c.bf16 %v1287_v37, %v1287_v37  ;;  %v533_v18 = vrot.slane %v531_v5, 7  ;;  %v1283_v21 = vld [vmem:[%s6221_s17 + $0x90] sm:$0xff] }
  0x87   : > { %v1218_v13 = vsel %vm6334_vm9, %v1119_v35, %v1217_v25  ;;  %v1308_v25 = vpack.c.bf16 %v1276_v7, %v1276_v7  ;;  %752 = vst [vmem:[#allocation2 + $0x48] sm:$0xf] %v751_v19  ;;  %v504_v29 = vor.u32 %v502_v14, %v501_v23  ;;  %v1278_v35 = vld [vmem:[%s6221_s17 + $0x68] sm:$0xff]  ;;  %v534_v7 = vshll.u32 %v405_v59, 16 }
  0x88   : > { %1219 = vst [vmem:[#allocation2 + $0x28] sm:$0xf] %v1218_v13  ;;  %v1200_v13 = vld [vmem:[#allocation2 + $0x8] sm:$0xf]  ;;  %v603_v52 = vshrl.u32 %v6424_v32, 16  ;;  %v606_v58 = vshll.u32 %v6424_v32, 16  ;;  %v743_v23 = vsel %vm6258_vm7, %v528_v60, %v742_v17 }
  0x89   : > { %733 = vst.msk [vmem:[#allocation2 + $0x24] sm:$0xf] %vm714_vm5, %v489_v27  ;;  %v505_v3 = vsel %vm6139_vm2, %v497_v22, %v504_v29  ;;  %v613_v14 = vrot.slane %v611_v0, 7  ;;  %v529_v22 = vrot.slane %v6420_v38, 4  ;;  %v549_v38 = vrot.slane %v547_v24, 7 }
  0x8a   : > { %344 = vst [vmem:[#allocation2 + $0x58] sm:$0x1] %v343_v26  ;;  %v605_v63 = vrot.slane %v603_v52, 7  ;;  %v536_v26 = vor.u32 %v534_v7, %v533_v18  ;;  %v762_v39 = vld [vmem:[#allocation2 + $0x60] sm:$0xf]  ;;  %v340_v7 = vsel %vm6225_vm4, 0, %v339_v53 }
  0x8b   : > { %737 = vst.msk [vmem:[#allocation2 + $0x2c] sm:$0xf] %vm714_vm5, %v505_v3  ;;  %v616_v19 = vor.u32 %v614_v1, %v613_v14  ;;  %v6461_v3 = vpack.c.bf16 %v1283_v21, %v1283_v21  ;;  %v354_v52 = vld [vmem:[#allocation2 + $0x78] sm:$0x1]  ;;  %v389_v60 = vld [vmem:[%s6221_s17 + $0xe8] sm:$0x7f] }
  0x8c   : > { %1377 = vrot.lane.b32.xlu1 %v6262_v44, %s6012_s18  ;;  %1379 = vrot.lane.b32.xlu2 %v1306_v45, %s6012_s18  ;;  %v587_v44 = vshrl.u32 %v6390_v6, 16  ;;  %v1310_v45 = vpack.c.bf16 %v1278_v35, %v1278_v35  ;;  %v609_v11 = vrot.slane %v605_v63, 4  ;;  %744 = vst [vmem:[#allocation2 + $0x38] sm:$0xf] %v743_v23  ;;  %v351_v35 = vld [vmem:[#allocation2 + $0x70] sm:$0x1]  ;;  %v421_v1 = vpack.c.bf16 %v389_v60, %v389_v60 }
  0x8d   : > { %1375 = vrot.lane.b32.xlu0 %v1304_v36, %s6012_s18  ;;  %v1280_v36 = vld [vmem:[%s6221_s17 + $0x78] sm:$0xff]  ;;  %v1229_v9 = vld [vmem:[#allocation2 + $0x40] sm:$0xf]  ;;  %v571_v61 = vshrl.u32 %v6461_v3, 16  ;;  %v355_v0 = vsel %vm6225_vm4, 0, %v354_v52 }
  0x8e   : > { %v1113_v15 = vpop.permute.xlu2 %1112  ;;  %v6407_v31 = vrot.slane %v587_v44, 7  ;;  %v1312_v46 = vpack.c.bf16 %v1280_v36, %v1280_v36  ;;  %v1213_v44 = vld [vmem:[#allocation2 + $0x20] sm:$0xf]  ;;  %356 = vst [vmem:[#allocation2 + $0x78] sm:$0x1] %v355_v0 }
  0x8f   : > { %1212 = vst.msk [vmem:[#allocation2 + $0x1c] sm:$0xf] %vm1198_vm8, %v1113_v15  ;;  %v1291_v15 = vld [vmem:[%s6221_s17 + $0xd0] sm:$0xff]  ;;  %v385_v0 = vld [vmem:[%s6221_s17 + $0xc8] sm:$0x7f] }
  0x90   : > { %v592_v47 = vor.u32 %v590_v54, %v6407_v31  ;;  %v6452_v28 = vpack.c.bf16 %v1291_v15, %v1291_v15  ;;  %v659_v15 = vshrl.u32 %v421_v1, 16  ;;  %341 = vst [vmem:[#allocation2 + $0x50] sm:$0x1] %v340_v7  ;;  %v593_v53 = vrot.slane %v6407_v31, 4  ;;  %v1295_v31 = vld [vmem:[%s6221_s17 + $0xf0] sm:$0xff] }
  0x91   : > { %v758_v4 = vld [vmem:[#allocation2 + $0x58] sm:$0xf]  ;;  %v417_v7 = vpack.c.bf16 %v385_v0, %v385_v0 }
  0x92   : > { %v759_v10 = vsel %vm6258_vm7, %v592_v47, %v758_v4  ;;  %v635_v37 = vshrl.u32 %v6452_v28, 16  ;;  %v379_v4 = vld [vmem:[%s6221_s17 + $0x98] sm:$0x7f]  ;;  %v661_v23 = vrot.slane %v659_v15, 7 }
  0x93   : > { %760 = vst [vmem:[#allocation2 + $0x58] sm:$0xf] %v759_v10  ;;  %v574_v10 = vshll.u32 %v6461_v3, 16  ;;  %v1225_v60 = vld [vmem:[#allocation2 + $0x38] sm:$0xf] }
  0x94   : > { %1383 = vrot.lane.b32.xlu1 %v1308_v25, %s6012_s18  ;;  %1385 = vrot.lane.b32.xlu2 %v1309_v16, %s6012_s18  ;;  %v1282_v16 = vld [vmem:[%s6221_s17 + $0x88] sm:$0xff]  ;;  %v6478_v12 = vrot.slane %v635_v37, 7 }
  0x95   : > { %1381 = vrot.lane.b32.xlu0 %v6301_v20, %s6012_s18  ;;  %v1314_v33 = vpack.c.bf16 %v1282_v16, %v1282_v16  ;;  %v662_v16 = vshll.u32 %v421_v1, 16 }
  0x96   : > { %v1125_v55 = vpop.permute.xlu2 %1124  ;;  %v1107_v42 = vpop.permute.xlu1 %1106 }
  0x97   : > { %1224 = vst.msk [vmem:[#allocation2 + $0x34] sm:$0xf] %vm1198_vm8, %v1125_v55  ;;  %v1206_v49 = vsel %vm6334_vm9, %v1107_v42, %v1205_v34  ;;  %v1103_v20 = vpop.permute.xlu0 %1102  ;;  %v617_v34 = vsel %vm6139_vm2, %v609_v11, %v616_v19  ;;  %v550_v55 = vshll.u32 %v407_v2, 16  ;;  %v381_v11 = vld [vmem:[%s6221_s17 + $0xa8] sm:$0x7f] }
  0x98   : > { %1207 = vst [vmem:[#allocation2 + $0x10] sm:$0xf] %v1206_v49  ;;  %v1201_v57 = vsel %vm6334_vm9, %v1103_v20, %v1200_v13  ;;  %v537_v13 = vsel %vm6139_vm2, %v529_v22, %v536_v26  ;;  %v638_v49 = vshll.u32 %v6452_v28, 16  ;;  %v1293_v20 = vld [vmem:[%s6221_s17 + $0xe0] sm:$0xff]  ;;  %v413_v17 = vpack.c.bf16 %v381_v11, %v381_v11  ;;  %v1221_v22 = vld [vmem:[#allocation2 + $0x30] sm:$0xf] }
  0x99   : > { %1202 = vst [vmem:[#allocation2 + $0x8] sm:$0xf] %v1201_v57  ;;  %v552_v47 = vor.u32 %v550_v55, %v549_v38  ;;  %v6486_v51 = vpack.c.bf16 %v1293_v20, %v1293_v20  ;;  %v754_v20 = vld [vmem:[#allocation2 + $0x50] sm:$0xf] }
  0x9a   : > { %765 = vst.msk [vmem:[#allocation2 + $0x64] sm:$0xf] %vm714_vm5, %v617_v34  ;;  %v640_v5 = vor.u32 %v638_v49, %v6478_v12  ;;  %v595_v24 = vshrl.u32 %v413_v17, 16  ;;  %v664_v34 = vor.u32 %v662_v16, %v661_v23  ;;  %v1327_v16 = vpack.c.bf16 %v1295_v31, %v1295_v31 }
  0x9b   : > { %745 = vst.msk [vmem:[#allocation2 + $0x3c] sm:$0xf] %vm714_vm5, %v537_v13  ;;  %v553_v50 = vsel %vm6139_vm2, %v545_v40, %v552_v47  ;;  %v651_v2 = vshrl.u32 %v6486_v51, 16  ;;  %v654_v18 = vshll.u32 %v6486_v51, 16 }
  0x9c   : > { %1389 = vrot.lane.b32.xlu1 %v6325_v56, %s6012_s18  ;;  %1391 = vrot.lane.b32.xlu2 %v1312_v46, %s6012_s18  ;;  %v608_v56 = vor.u32 %v606_v58, %v605_v63  ;;  %v1284_v46 = vld [vmem:[%s6221_s17 + $0x98] sm:$0xff]  ;;  %749 = vst.msk [vmem:[#allocation2 + $0x44] sm:$0xf] %vm714_vm5, %v553_v50  ;;  %v1318_v63 = vpack.c.bf16 %v1286_v48, %v1286_v48  ;;  %v597_v55 = vrot.slane %v595_v24, 7 }
  0x9d   : > { %1387 = vrot.lane.b32.xlu0 %v1310_v45, %s6012_s18  ;;  %v352_v45 = vsel %vm6225_vm4, 0, %v351_v35  ;;  %v1316_v59 = vpack.c.bf16 %v1284_v46, %v1284_v46  ;;  %v653_v14 = vrot.slane %v651_v2, 7  ;;  %v774_v48 = vld [vmem:[#allocation2 + $0x78] sm:$0xf] }
  0x9e   : > { %v1131_v25 = vpop.permute.xlu2 %1130  ;;  %v1109_v27 = vpop.permute.xlu1 %1108  ;;  %v763_v42 = vsel %vm6258_vm7, %v608_v56, %v762_v39  ;;  %353 = vst [vmem:[#allocation2 + $0x70] sm:$0x1] %v352_v45 }
  0x9f   : > { %v1230_v29 = vsel %vm6334_vm9, %v1131_v25, %v1229_v9  ;;  %1208 = vst.msk [vmem:[#allocation2 + $0x14] sm:$0xf] %vm1198_vm8, %v1109_v27  ;;  %v1115_v54 = vpop.permute.xlu0 %1114  ;;  %v411_v9 = vpack.c.bf16 %v379_v4, %v379_v4  ;;  %v1241_v25 = vld [vmem:[#allocation2 + $0x58] sm:$0xf]  ;;  %v657_v56 = vrot.slane %v653_v14, 4 }
  0xa0   : > { %1231 = vst [vmem:[#allocation2 + $0x40] sm:$0xf] %v1230_v29  ;;  %v1214_v36 = vsel %vm6334_vm9, %v1115_v54, %v1213_v44  ;;  %v573_v44 = vrot.slane %v571_v61, 7  ;;  %v1288_v29 = vld [vmem:[%s6221_s17 + $0xb8] sm:$0xff]  ;;  %v1289_v54 = vld [vmem:[%s6221_s17 + $0xc0] sm:$0xff] }
  0xa1   : > { %1215 = vst [vmem:[#allocation2 + $0x20] sm:$0xf] %v1214_v36  ;;  %v579_v21 = vshrl.u32 %v411_v9, 16  ;;  %v582_v19 = vshll.u32 %v411_v9, 16  ;;  %v1320_v45 = vpack.c.bf16 %v1288_v29, %v1288_v29  ;;  %v6516_v46 = vpack.c.bf16 %v1289_v54, %v1289_v54  ;;  %v348_v61 = vld [vmem:[#allocation2 + $0x68] sm:$0x1] }
  0xa2   : > { %764 = vst [vmem:[#allocation2 + $0x60] sm:$0xf] %v763_v42  ;;  %v576_v37 = vor.u32 %v574_v10, %v573_v44  ;;  %v598_v42 = vshll.u32 %v413_v17, 16  ;;  %v665_v47 = vsel %vm6139_vm2, %v657_v56, %v664_v34  ;;  %v357_v9 = vld [vmem:[#allocation2 + $0x80] sm:$0x1]  ;;  %v627_v17 = vshrl.u32 %v417_v7, 16 }
  0xa3   : > { %v581_v26 = vrot.slane %v579_v21, 7  ;;  %777 = vst.msk [vmem:[#allocation2 + $0x7c] sm:$0xf] %vm714_vm5, %v665_v47  ;;  %v619_v1 = vshrl.u32 %v6516_v46, 16  ;;  %v1233_v21 = vld [vmem:[#allocation2 + $0x48] sm:$0xf] }
  0xa4   : > { %1395 = vrot.lane.b32.xlu1 %v1314_v33, %s6012_s18  ;;  %1397 = vrot.lane.b32.xlu2 %v6461_v3, %s6012_s18  ;;  %v656_v3 = vor.u32 %v654_v18, %v653_v14  ;;  %v755_v52 = vsel %vm6258_vm7, %v576_v37, %v754_v20  ;;  %v349_v14 = vsel %vm6225_vm4, 0, %v348_v61  ;;  %v630_v18 = vshll.u32 %v417_v7, 16  ;;  %v1294_v29 = vld [vmem:[%s6221_s17 + $0xe8] sm:$0xff] }
  0xa5   : > { %1393 = vrot.lane.b32.xlu0 %v6364_v30, %s6012_s18  ;;  %v770_v27 = vld [vmem:[#allocation2 + $0x70] sm:$0xf]  ;;  %v584_v38 = vor.u32 %v582_v19, %v581_v26  ;;  %756 = vst [vmem:[#allocation2 + $0x50] sm:$0xf] %v755_v52  ;;  %v621_v19 = vrot.slane %v619_v1, 7  ;;  %v670_v37 = vshll.u32 %v1327_v16, 16 }
  0xa6   : > { %v1137_v57 = vpop.permute.xlu2 %1136  ;;  %v1117_v58 = vpop.permute.xlu1 %1116  ;;  %v771_v33 = vsel %vm6258_vm7, %v640_v5, %v770_v27  ;;  %v775_v49 = vsel %vm6258_vm7, %v656_v3, %v774_v48  ;;  %350 = vst [vmem:[#allocation2 + $0x68] sm:$0x1] %v349_v14  ;;  %v667_v27 = vshrl.u32 %v1327_v16, 16  ;;  %v1491_v20 = vld [vmem:[%s6113_s13 + $0x8] sm:$0xff] }
  0xa7   : > { %1236 = vst.msk [vmem:[#allocation2 + $0x4c] sm:$0xf] %vm1198_vm8, %v1137_v57  ;;  %v1105_v30 = vpop.permute.xlu0 %1104  ;;  %v600_v57 = vor.u32 %v598_v42, %v597_v55  ;;  %v625_v56 = vrot.slane %v621_v19, 4 }
  0xa8   : > { %1216 = vst.msk [vmem:[#allocation2 + $0x24] sm:$0xf] %vm1198_vm8, %v1117_v58  ;;  %v1290_v58 = vld [vmem:[%s6221_s17 + $0xc8] sm:$0xff] }
  0xa9   : > { %1204 = vst.msk [vmem:[#allocation2 + $0xc] sm:$0xf] %vm1198_vm8, %v1105_v30  ;;  %v1322_v4 = vpack.c.bf16 %v1290_v58, %v1290_v58  ;;  %v601_v5 = vsel %vm6139_vm2, %v593_v53, %v600_v57  ;;  %v1296_v53 = vld [vmem:[%s6221_s17 + $0xf8] sm:$0xff]  ;;  %v1245_v1 = vld [vmem:[#allocation2 + $0x60] sm:$0xf] }
  0xaa   : > { %772 = vst [vmem:[#allocation2 + $0x70] sm:$0xf] %v771_v33  ;;  %v6558_v33 = vrot.slane %v667_v27, 7  ;;  %v391_v57 = vld [vmem:[%s6221_s17 + $0xf8] sm:$0x7f]  ;;  %v1328_v61 = vpack.c.bf16 %v1296_v53, %v1296_v53 }
  0xab   : > { %776 = vst [vmem:[#allocation2 + $0x78] sm:$0xf] %v775_v49  ;;  %v1490_v49 = vld [vmem:[%s6113_s13] sm:$0xff] }
  0xac   : > { %1401 = vrot.lane.b32.xlu1 %v6390_v6, %s6012_s18  ;;  %1403 = vrot.lane.b32.xlu2 %v1318_v63, %s6012_s18  ;;  %v577_v6 = vrot.slane %v573_v44, 4  ;;  %v358_v44 = vsel %vm6225_vm4, 0, %v357_v9  ;;  %761 = vst.msk [vmem:[#allocation2 + $0x5c] sm:$0xf] %vm714_vm5, %v601_v5  ;;  %v672_v55 = vor.u32 %v670_v37, %v6558_v33  ;;  %v1237_v48 = vld [vmem:[#allocation2 + $0x50] sm:$0xf] }
  0xad   : > { %1399 = vrot.lane.b32.xlu0 %v1316_v59, %s6012_s18  ;;  %v1292_v59 = vld [vmem:[%s6221_s17 + $0xd8] sm:$0xff]  ;;  %359 = vst [vmem:[#allocation2 + $0x80] sm:$0x1] %v358_v44  ;;  %v673_v31 = vrot.slane %v6558_v33, 4  ;;  %v1492_v9 = vld [vmem:[%s6113_s13 + $0x10] sm:$0xff]  ;;  %vm2402_vm4 = vcmask 883712  }
  0xae   : > { %v1143_v35 = vpop.permute.xlu2 %1142  ;;  %v1123_v36 = vpop.permute.xlu1 %1122  ;;  %v585_v50 = vsel %vm6139_vm2, %v577_v6, %v584_v38  ;;  %v1324_v11 = vpack.c.bf16 %v1292_v59, %v1292_v59  ;;  %v423_v59 = vpack.c.bf16 %v391_v57, %v391_v57  ;;  %v1496_v44 = vld [vmem:[%s6113_s13 + $0x30] sm:$0xff] }
  0xaf   : > { %v1242_v39 = vsel %vm6334_vm9, %v1143_v35, %v1241_v25  ;;  %v1222_v13 = vsel %vm6334_vm9, %v1123_v36, %v1221_v22  ;;  %v1121_v40 = vpop.permute.xlu0 %1120  ;;  %757 = vst.msk [vmem:[#allocation2 + $0x54] sm:$0xf] %vm714_vm5, %v585_v50  ;;  %v622_v22 = vshll.u32 %v6516_v46, 16  ;;  %v629_v25 = vrot.slane %v627_v17, 7 }
  0xb0   : > { %1243 = vst [vmem:[#allocation2 + $0x58] sm:$0xf] %v1242_v39  ;;  %v641_v36 = vrot.slane %v6478_v12, 4  ;;  %v766_v12 = vld [vmem:[#allocation2 + $0x68] sm:$0xf]  ;;  %v1524_v17 = vpack.c.bf16 %v1492_v9, %v1492_v9 }
  0xb1   : > { %1223 = vst [vmem:[#allocation2 + $0x30] sm:$0xf] %v1222_v13  ;;  %v1253_v24 = vld [vmem:[#allocation2 + $0x70] sm:$0xf]  ;;  %v632_v54 = vor.u32 %v630_v18, %v629_v25  ;;  %v624_v39 = vor.u32 %v622_v22, %v621_v19  ;;  %v1326_v13 = vpack.c.bf16 %v1294_v29, %v1294_v29  ;;  %v1495_v22 = vld [vmem:[%s6113_s13 + $0x28] sm:$0xff]  ;;  %v1528_v25 = vpack.c.bf16 %v1496_v44, %v1496_v44 }
  0xb2   : > { %1220 = vst.msk [vmem:[#allocation2 + $0x2c] sm:$0xf] %vm1198_vm8, %v1121_v40  ;;  %v1500_v29 = vld [vmem:[%s6113_s13 + $0x50] sm:$0xff] }
  0xb3   : > { %v633_v40 = vsel %vm6139_vm2, %v625_v56, %v632_v54  ;;  %v1527_v56 = vpack.c.bf16 %v1495_v22, %v1495_v22  ;;  %v1532_v37 = vpack.c.bf16 %v1500_v29, %v1500_v29  ;;  %v1517_v22 = vld [vmem:[%s6113_s13 + $0xd8] sm:$0xff] }
  0xb4   : > { %1407 = vrot.lane.b32.xlu1 %v1320_v45, %s6012_s18  ;;  %1409 = vrot.lane.b32.xlu2 %v6516_v46, %s6012_s18  ;;  %v767_v45 = vsel %vm6258_vm7, %v624_v39, %v766_v12  ;;  %769 = vst.msk [vmem:[#allocation2 + $0x6c] sm:$0xf] %vm714_vm5, %v633_v40  ;;  %v778_v46 = vld [vmem:[#allocation2 + $0x80] sm:$0xf]  ;;  %v1503_v39 = vld [vmem:[%s6113_s13 + $0x68] sm:$0xff] }
  0xb5   : > { %1405 = vrot.lane.b32.xlu0 %v6424_v32, %s6012_s18  ;;  %v387_v32 = vld [vmem:[%s6221_s17 + $0xd8] sm:$0x7f]  ;;  %768 = vst [vmem:[#allocation2 + $0x68] sm:$0xf] %v767_v45  ;;  %v779_v47 = vsel %vm6258_vm7, %v672_v55, %v778_v46  ;;  %v1535_v46 = vpack.c.bf16 %v1503_v39, %v1503_v39 }
  0xb6   : > { %v1149_v30 = vpop.permute.xlu2 %1148  ;;  %v1129_v63 = vpop.permute.xlu1 %1128  ;;  %v419_v15 = vpack.c.bf16 %v387_v32, %v387_v32  ;;  %780 = vst [vmem:[#allocation2 + $0x80] sm:$0xf] %v779_v47  ;;  %v1501_v55 = vld [vmem:[%s6113_s13 + $0x58] sm:$0xff] }
  0xb7   : > { %1248 = vst.msk [vmem:[#allocation2 + $0x64] sm:$0xf] %vm1198_vm8, %v1149_v30  ;;  %v1127_v2 = vpop.permute.xlu0 %1126  ;;  %v675_v30 = vshrl.u32 %v423_v59, 16  ;;  %v1533_v47 = vpack.c.bf16 %v1501_v55, %v1501_v55  ;;  %v1768_v39 = vld [vmem:[%s6221_s17 + $0x11] sm:$0xff]  ;;  %v1766_v55 = vld [vmem:[%s6221_s17 + $0x1] sm:$0xff] }
  0xb8   : > { %1228 = vst.msk [vmem:[#allocation2 + $0x3c] sm:$0xf] %vm1198_vm8, %v1129_v63  ;;  %v1226_v10 = vsel %vm6334_vm9, %v1127_v2, %v1225_v60  ;;  %v643_v23 = vshrl.u32 %v419_v15, 16  ;;  %v646_v26 = vshll.u32 %v419_v15, 16  ;;  %v1523_v60 = vpack.c.bf16 %v1491_v20, %v1491_v20  ;;  %v1493_v2 = vld [vmem:[%s6113_s13 + $0x18] sm:$0xff] }
  0xb9   : > { %1227 = vst [vmem:[#allocation2 + $0x38] sm:$0xf] %v1226_v10  ;;  %v678_v63 = vshll.u32 %v423_v59, 16  ;;  %v677_v0 = vrot.slane %v675_v30, 7  ;;  %v1525_v15 = vpack.c.bf16 %v1493_v2, %v1493_v2  ;;  %v1508_v59 = vld [vmem:[%s6113_s13 + $0x90] sm:$0xff] }
  0xba   : > { %v645_v8 = vrot.slane %v643_v23, 7  ;;  %v1512_v2 = vld [vmem:[%s6113_s13 + $0xb0] sm:$0xff] }
  0xbb   : > { %v680_v5 = vor.u32 %v678_v63, %v677_v0  ;;  %v1540_v63 = vpack.c.bf16 %v1508_v59, %v1508_v59  ;;  %v1774_v59 = vld [vmem:[%s6221_s17 + $0x41] sm:$0xff] }
  0xbc   : > { %1413 = vrot.lane.b32.xlu1 %v6452_v28, %s6012_s18  ;;  %1415 = vrot.lane.b32.xlu2 %v1324_v11, %s6012_s18  ;;  %v648_v3 = vor.u32 %v646_v26, %v645_v8  ;;  %v1249_v18 = vld [vmem:[#allocation2 + $0x68] sm:$0xf]  ;;  %v1257_v8 = vld [vmem:[#allocation2 + $0x78] sm:$0xf] }
  0xbd   : > { %1411 = vrot.lane.b32.xlu0 %v1322_v4, %s6012_s18  ;;  %v1494_v4 = vld [vmem:[%s6113_s13 + $0x20] sm:$0xff]  ;;  %v681_v14 = vsel %vm6139_vm2, %v673_v31, %v680_v5  ;;  %v1499_v26 = vld [vmem:[%s6113_s13 + $0x48] sm:$0xff] }
  0xbe   : > { %v1155_v34 = vpop.permute.xlu2 %1154  ;;  %v1135_v35 = vpop.permute.xlu1 %1134  ;;  %v649_v42 = vsel %vm6139_vm2, %v641_v36, %v648_v3  ;;  %781 = vst.msk [vmem:[#allocation2 + $0x84] sm:$0xf] %vm714_vm5, %v681_v14  ;;  %v1531_v3 = vpack.c.bf16 %v1499_v26, %v1499_v26  ;;  %v1514_v14 = vld [vmem:[%s6113_s13 + $0xc0] sm:$0xff]  ;;  %vm2427_vm2 = vcmask 1045504  }
  0xbf   : > { %v1254_v28 = vsel %vm6334_vm9, %v1155_v34, %v1253_v24  ;;  %v1234_v6 = vsel %vm6334_vm9, %v1135_v35, %v1233_v21  ;;  %v1133_v38 = vpop.permute.xlu0 %1132  ;;  %773 = vst.msk [vmem:[#allocation2 + $0x74] sm:$0xf] %vm714_vm5, %v649_v42  ;;  %v1497_v21 = vld [vmem:[%s6113_s13 + $0x38] sm:$0xff]  ;;  %v1498_v34 = vld [vmem:[%s6113_s13 + $0x40] sm:$0xff]  ;;  %vm2218_vm5 = vcmask 880224  }
  0xc0   : > { %1255 = vst [vmem:[#allocation2 + $0x70] sm:$0xf] %v1254_v28  ;;  %v1529_v27 = vpack.c.bf16 %v1497_v21, %v1497_v21  ;;  %v1530_v28 = vpack.c.bf16 %v1498_v34, %v1498_v34  ;;  %v1546_v21 = vpack.c.bf16 %v1514_v14, %v1514_v14  ;;  %vm6996_vm6 = vmand %vm2218_vm5, %vm1961_vm0 }
  0xc1   : > { %1235 = vst [vmem:[#allocation2 + $0x48] sm:$0xf] %v1234_v6  ;;  %v1261_v6 = vld [vmem:[#allocation2 + $0x80] sm:$0xf] }
  0xc2   : > { %1232 = vst.msk [vmem:[#allocation2 + $0x44] sm:$0xf] %vm1198_vm8, %v1133_v38  ;;  %v1502_v38 = vld [vmem:[%s6113_s13 + $0x60] sm:$0xff] }
  0xc3   : > { %v1534_v45 = vpack.c.bf16 %v1502_v38, %v1502_v38  ;;  %v1767_v38 = vld [vmem:[%s6221_s17 + $0x9] sm:$0x7f] }
  0xc4   : > { %1419 = vrot.lane.b32.xlu1 %v1326_v13, %s6012_s18  ;;  %1421 = vrot.lane.b32.xlu2 %v1327_v16, %s6012_s18  ;;  %v1526_v16 = vpack.c.bf16 %v1494_v4, %v1494_v4 }
  0xc5   : > { %1417 = vrot.lane.b32.xlu0 %v6486_v51, %s6012_s18  ;;  %v1522_v51 = vpack.c.bf16 %v1490_v49, %v1490_v49  ;;  %v1506_v49 = vld [vmem:[%s6113_s13 + $0x80] sm:$0xff] }
  0xc6   : > { %v1161_v50 = vpop.permute.xlu2 %1160  ;;  %v1141_v52 = vpop.permute.xlu1 %1140  ;;  %v1538_v57 = vpack.c.bf16 %v1506_v49, %v1506_v49 }
  0xc7   : > { %1260 = vst.msk [vmem:[#allocation2 + $0x7c] sm:$0xf] %vm1198_vm8, %v1161_v50  ;;  %v1139_v58 = vpop.permute.xlu0 %1138 }
  0xc8   : > { %1240 = vst.msk [vmem:[#allocation2 + $0x54] sm:$0xf] %vm1198_vm8, %v1141_v52  ;;  %v1238_v41 = vsel %vm6334_vm9, %v1139_v58, %v1237_v48  ;;  %v1505_v48 = vld [vmem:[%s6113_s13 + $0x78] sm:$0xff]  ;;  %v1536_v58 = vpack.c.bf16 %v1504_v62, %v1504_v62 }
  0xc9   : > { %1239 = vst [vmem:[#allocation2 + $0x50] sm:$0xf] %v1238_v41  ;;  %v1537_v53 = vpack.c.bf16 %v1505_v48, %v1505_v48  ;;  %v1509_v41 = vld [vmem:[%s6113_s13 + $0x98] sm:$0xff]  ;;  %v1771_v48 = vld [vmem:[%s6221_s17 + $0x29] sm:$0x7f] }
  0xca   : > { %v1541_v31 = vpack.c.bf16 %v1509_v41, %v1509_v41 }
  0xcc   : > { %1586 = vrot.lane.b32.xlu1 %v1522_v51, %s6013_s19  ;;  %1588 = vrot.lane.b32.xlu2 %v1523_v60, %s6013_s19 }
  0xcd   : > { %1423 = vrot.lane.b32.xlu0 %v1328_v61, %s6012_s18  ;;  %v1507_v61 = vld [vmem:[%s6113_s13 + $0x88] sm:$0xff]  ;;  %s7788_s18 = sand.u32 1, %s6001_s22  }
  0xce   : > { %v1147_v7 = vpop.permute.xlu1 %1146  ;;  %v1362_v32 = vpop.permute.xlu2 %1361  ;;  %v1539_v0 = vpack.c.bf16 %v1507_v61, %v1507_v61  ;;  %v1772_v61 = vld [vmem:[%s6221_s17 + $0x31] sm:$0xff]  ;;  %s4938_s12 = scalar_lea.sflag [#allocation7], %s7788_s18 }
  0xcf   : > { %v1246_v10 = vsel %vm6334_vm9, %v1147_v7, %v1245_v1  ;;  %v1145_v11 = vpop.permute.xlu0 %1144  ;;  %1458 = vst.msk [vmem:[#allocation2 + $0x8] sm:$0xf] %vm1457_vm10, %v1362_v32  ;;  %v1511_v1 = vld [vmem:[%s6113_s13 + $0xa8] sm:$0xff]  ;;  %v1510_v7 = vld [vmem:[%s6113_s13 + $0xa0] sm:$0xff] }
  0xd0   : > { %1247 = vst [vmem:[#allocation2 + $0x60] sm:$0xf] %v1246_v10  ;;  %v1543_v9 = vpack.c.bf16 %v1511_v1, %v1511_v1  ;;  %v1544_v10 = vpack.c.bf16 %v1512_v2, %v1512_v2  ;;  %v1804_v2 = vpack.c.bf16 %v1772_v61, %v1772_v61 }
  0xd1   : > { %1244 = vst.msk [vmem:[#allocation2 + $0x5c] sm:$0xf] %vm1198_vm8, %v1145_v11  ;;  %v1542_v11 = vpack.c.bf16 %v1510_v7, %v1510_v7 }
  0xd4   : > { %1592 = vrot.lane.b32.xlu1 %v1525_v15, %s6013_s19  ;;  %1594 = vrot.lane.b32.xlu2 %v1526_v16, %s6013_s19  ;;  %v1515_v15 = vld [vmem:[%s6113_s13 + $0xc8] sm:$0xff] }
  0xd5   : > { %1590 = vrot.lane.b32.xlu0 %v1524_v17, %s6013_s19 }
  0xd6   : > { %v1153_v43 = vpop.permute.xlu1 %1152  ;;  %v1368_v19 = vpop.permute.xlu2 %1367 }
  0xd7   : > { %1252 = vst.msk [vmem:[#allocation2 + $0x6c] sm:$0xf] %vm1198_vm8, %v1153_v43  ;;  %v1151_v23 = vpop.permute.xlu0 %1150  ;;  %v1547_v43 = vpack.c.bf16 %v1515_v15, %v1515_v15 }
  0xd8   : > { %v1250_v24 = vsel %vm6334_vm9, %v1151_v23, %v1249_v18  ;;  %1461 = vst.msk [vmem:[#allocation2 + $0x14] sm:$0xf] %vm1457_vm10, %v1368_v19  ;;  %v1513_v18 = vld [vmem:[%s6113_s13 + $0xb8] sm:$0xff]  ;;  %v1518_v23 = vld [vmem:[%s6113_s13 + $0xe0] sm:$0xff] }
  0xd9   : > { %1251 = vst [vmem:[#allocation2 + $0x68] sm:$0xf] %v1250_v24  ;;  %v1545_v19 = vpack.c.bf16 %v1513_v18, %v1513_v18  ;;  %v1550_v26 = vpack.c.bf16 %v1518_v23, %v1518_v23 }
  0xdc   : > { %1598 = vrot.lane.b32.xlu1 %v1528_v25, %s6013_s19  ;;  %1600 = vrot.lane.b32.xlu2 %v1529_v27, %s6013_s19  ;;  %v1516_v27 = vld [vmem:[%s6113_s13 + $0xd0] sm:$0xff] }
  0xdd   : > { %1596 = vrot.lane.b32.xlu0 %v1527_v56, %s6013_s19  ;;  %v1548_v29 = vpack.c.bf16 %v1516_v27, %v1516_v27  ;;  %v1782_v27 = vld [vmem:[%s6221_s17 + $0x81] sm:$0xff] }
  0xde   : > { %v1159_v54 = vpop.permute.xlu1 %1158  ;;  %v1374_v33 = vpop.permute.xlu2 %1373 }
  0xdf   : > { %v1258_v35 = vsel %vm6334_vm9, %v1159_v54, %v1257_v8  ;;  %v1157_v36 = vpop.permute.xlu0 %1156  ;;  %1464 = vst.msk [vmem:[#allocation2 + $0x20] sm:$0xf] %vm1457_vm10, %v1374_v33  ;;  %v1549_v8 = vpack.c.bf16 %v1517_v22, %v1517_v22  ;;  %v1520_v54 = vld [vmem:[%s6113_s13 + $0xf0] sm:$0xff]  ;;  %v1521_v33 = vld [vmem:[%s6113_s13 + $0xf8] sm:$0xff] }
  0xe0   : > { %1259 = vst [vmem:[#allocation2 + $0x78] sm:$0xf] %v1258_v35 }
  0xe1   : > { %1256 = vst.msk [vmem:[#allocation2 + $0x74] sm:$0xf] %vm1198_vm8, %v1157_v36  ;;  %v1519_v36 = vld [vmem:[%s6113_s13 + $0xe8] sm:$0xff] }
  0xe4   : > { %1604 = vrot.lane.b32.xlu1 %v1531_v3, %s6013_s19  ;;  %1606 = vrot.lane.b32.xlu2 %v1532_v37, %s6013_s19  ;;  %v1552_v37 = vpack.c.bf16 %v1520_v54, %v1520_v54 }
  0xe5   : > { %1602 = vrot.lane.b32.xlu0 %v1530_v28, %s6013_s19  ;;  %v1553_v28 = vpack.c.bf16 %v1521_v33, %v1521_v33  ;;  %v1814_v33 = vpack.c.bf16 %v1782_v27, %v1782_v27 }
  0xe6   : > { %v1165_v13 = vpop.permute.xlu1 %1164  ;;  %v1380_v40 = vpop.permute.xlu2 %1379 }
  0xe7   : > { %1264 = vst.msk [vmem:[#allocation2 + $0x84] sm:$0xf] %vm1198_vm8, %v1165_v13  ;;  %v1163_v12 = vpop.permute.xlu0 %1162 }
  0xe8   : > { %v1262_v42 = vsel %vm6334_vm9, %v1163_v12, %v1261_v6  ;;  %1467 = vst.msk [vmem:[#allocation2 + $0x2c] sm:$0xf] %vm1457_vm10, %v1380_v40  ;;  %v1551_v6 = vpack.c.bf16 %v1519_v36, %v1519_v36  ;;  %v1785_v36 = vld [vmem:[%s6221_s17 + $0x99] sm:$0x7f] }
  0xe9   : > { %1263 = vst [vmem:[#allocation2 + $0x80] sm:$0xf] %v1262_v42  ;;  %v1799_v42 = vpack.c.bf16 %v1767_v38, %v1767_v38  ;;  %v1784_v38 = vld [vmem:[%s6221_s17 + $0x91] sm:$0xff] }
  0xec   : > { %1610 = vrot.lane.b32.xlu1 %v1534_v45, %s6013_s19  ;;  %1612 = vrot.lane.b32.xlu2 %v1535_v46, %s6013_s19  ;;  %v1800_v45 = vpack.c.bf16 %v1768_v39, %v1768_v39  ;;  %v1798_v46 = vpack.c.bf16 %v1766_v55, %v1766_v55  ;;  %v1817_v55 = vpack.c.bf16 %v1785_v36, %v1785_v36 }
  0xed   : > { %1608 = vrot.lane.b32.xlu0 %v1533_v47, %s6013_s19  ;;  %v1770_v47 = vld [vmem:[%s6221_s17 + $0x21] sm:$0xff] }
  0xee   : > { %v1366_v20 = vpop.permute.xlu1 %1365  ;;  %v1386_v50 = vpop.permute.xlu2 %1385 }
  0xef   : > { %1460 = vst.msk [vmem:[#allocation2 + $0x10] sm:$0xf] %vm1457_vm10, %v1366_v20  ;;  %v1364_v52 = vpop.permute.xlu0 %1363 }
  0xf0   : > { %1459 = vst.msk [vmem:[#allocation2 + $0xc] sm:$0xf] %vm1457_vm10, %v1364_v52  ;;  %v1802_v52 = vpack.c.bf16 %v1770_v47, %v1770_v47  ;;  %v1789_v47 = vld [vmem:[%s6221_s17 + $0xb9] sm:$0x7f] }
  0xf1   : > { %1470 = vst.msk [vmem:[#allocation2 + $0x38] sm:$0xf] %vm1457_vm10, %v1386_v50  ;;  %v1769_v50 = vld [vmem:[%s6221_s17 + $0x19] sm:$0x7f] }
  0xf4   : > { %1616 = vrot.lane.b32.xlu1 %v1537_v53, %s6013_s19  ;;  %1618 = vrot.lane.b32.xlu2 %v1538_v57, %s6013_s19  ;;  %v1803_v53 = vpack.c.bf16 %v1771_v48, %v1771_v48  ;;  %v1801_v57 = vpack.c.bf16 %v1769_v50, %v1769_v50 }
  0xf5   : > { %1614 = vrot.lane.b32.xlu0 %v1536_v58, %s6013_s19  ;;  %v1773_v58 = vld [vmem:[%s6221_s17 + $0x39] sm:$0x7f] }
  0xf6   : > { %v1372_v51 = vpop.permute.xlu1 %1371  ;;  %v1392_v60 = vpop.permute.xlu2 %1391 }
  0xf7   : > { %1463 = vst.msk [vmem:[#allocation2 + $0x1c] sm:$0xf] %vm1457_vm10, %v1372_v51  ;;  %v1370_v30 = vpop.permute.xlu0 %1369 }
  0xf8   : > { %1462 = vst.msk [vmem:[#allocation2 + $0x18] sm:$0xf] %vm1457_vm10, %v1370_v30 }
  0xf9   : > { %1473 = vst.msk [vmem:[#allocation2 + $0x44] sm:$0xf] %vm1457_vm10, %v1392_v60 }
  0xfc   : > { %1622 = vrot.lane.b32.xlu1 %v1540_v63, %s6013_s19  ;;  %1624 = vrot.lane.b32.xlu2 %v1541_v31, %s6013_s19  ;;  %v1805_v31 = vpack.c.bf16 %v1773_v58, %v1773_v58 }
  0xfd   : > { %1620 = vrot.lane.b32.xlu0 %v1539_v0, %s6013_s19  ;;  %v1806_v0 = vpack.c.bf16 %v1774_v59, %v1774_v59  ;;  %v1791_v59 = vld [vmem:[%s6221_s17 + $0xc9] sm:$0x7f] }
  0xfe   : > { %v1378_v4 = vpop.permute.xlu1 %1377  ;;  %v1398_v5 = vpop.permute.xlu2 %1397 }
  0xff   : > { %1466 = vst.msk [vmem:[#allocation2 + $0x28] sm:$0xf] %vm1457_vm10, %v1378_v4  ;;  %v1376_v32 = vpop.permute.xlu0 %1375  ;;  %v1776_v4 = vld [vmem:[%s6221_s17 + $0x51] sm:$0xff] }
 0x100   : > { %1465 = vst.msk [vmem:[#allocation2 + $0x24] sm:$0xf] %vm1457_vm10, %v1376_v32 }
 0x101   : > { %1476 = vst.msk [vmem:[#allocation2 + $0x50] sm:$0xf] %vm1457_vm10, %v1398_v5  ;;  %v1777_v5 = vld [vmem:[%s6221_s17 + $0x59] sm:$0x7f] }
 0x102   : > { %v1809_v14 = vpack.c.bf16 %v1777_v5, %v1777_v5 }
 0x104   : > { %1628 = vrot.lane.b32.xlu1 %v1543_v9, %s6013_s19  ;;  %1630 = vrot.lane.b32.xlu2 %v1544_v10, %s6013_s19  ;;  %v1775_v9 = vld [vmem:[%s6221_s17 + $0x49] sm:$0x7f] }
 0x105   : > { %1626 = vrot.lane.b32.xlu0 %v1542_v11, %s6013_s19  ;;  %v1808_v11 = vpack.c.bf16 %v1776_v4, %v1776_v4  ;;  %v1807_v15 = vpack.c.bf16 %v1775_v9, %v1775_v9  ;;  %v1795_v9 = vld [vmem:[%s6221_s17 + $0xe9] sm:$0x7f] }
 0x106   : > { %v1384_v16 = vpop.permute.xlu1 %1383  ;;  %v1404_v17 = vpop.permute.xlu2 %1403 }
 0x107   : > { %1469 = vst.msk [vmem:[#allocation2 + $0x34] sm:$0xf] %vm1457_vm10, %v1384_v16  ;;  %v1382_v44 = vpop.permute.xlu0 %1381  ;;  %v1779_v16 = vld [vmem:[%s6221_s17 + $0x69] sm:$0x7f] }
 0x108   : > { %1468 = vst.msk [vmem:[#allocation2 + $0x30] sm:$0xf] %vm1457_vm10, %v1382_v44  ;;  %v1811_v22 = vpack.c.bf16 %v1779_v16, %v1779_v16 }
 0x109   : > { %1479 = vst.msk [vmem:[#allocation2 + $0x5c] sm:$0xf] %vm1457_vm10, %v1404_v17  ;;  %v1780_v17 = vld [vmem:[%s6221_s17 + $0x71] sm:$0xff] }
 0x10a   : > { %v1812_v23 = vpack.c.bf16 %v1780_v17, %v1780_v17 }
 0x10c   : > { %1634 = vrot.lane.b32.xlu1 %v1546_v21, %s6013_s19  ;;  %1636 = vrot.lane.b32.xlu2 %v1547_v43, %s6013_s19  ;;  %v1778_v21 = vld [vmem:[%s6221_s17 + $0x61] sm:$0xff] }
 0x10d   : > { %1632 = vrot.lane.b32.xlu0 %v1545_v19, %s6013_s19 }
 0x10e   : > { %v1390_v24 = vpop.permute.xlu1 %1389  ;;  %v1410_v25 = vpop.permute.xlu2 %1409 }
 0x10f   : > { %1472 = vst.msk [vmem:[#allocation2 + $0x40] sm:$0xf] %vm1457_vm10, %v1390_v24  ;;  %v1388_v56 = vpop.permute.xlu0 %1387 }
 0x110   : > { %1471 = vst.msk [vmem:[#allocation2 + $0x3c] sm:$0xf] %vm1457_vm10, %v1388_v56  ;;  %v1783_v56 = vld [vmem:[%s6221_s17 + $0x89] sm:$0x7f] }
 0x111   : > { %1482 = vst.msk [vmem:[#allocation2 + $0x68] sm:$0xf] %vm1457_vm10, %v1410_v25  ;;  %v1810_v25 = vpack.c.bf16 %v1778_v21, %v1778_v21 }
 0x114   : > { %1640 = vrot.lane.b32.xlu1 %v1549_v8, %s6013_s19  ;;  %1642 = vrot.lane.b32.xlu2 %v1550_v26, %s6013_s19 }
 0x115   : > { %1638 = vrot.lane.b32.xlu0 %v1548_v29, %s6013_s19  ;;  %v1781_v29 = vld [vmem:[%s6221_s17 + $0x79] sm:$0x7f] }
 0x116   : > { %v1396_v34 = vpop.permute.xlu1 %1395  ;;  %v1416_v35 = vpop.permute.xlu2 %1415 }
 0x117   : > { %1475 = vst.msk [vmem:[#allocation2 + $0x4c] sm:$0xf] %vm1457_vm10, %v1396_v34  ;;  %v1394_v3 = vpop.permute.xlu0 %1393  ;;  %v1815_v34 = vpack.c.bf16 %v1783_v56, %v1783_v56 }
 0x118   : > { %1474 = vst.msk [vmem:[#allocation2 + $0x48] sm:$0xf] %vm1457_vm10, %v1394_v3  ;;  %v1786_v3 = vld [vmem:[%s6221_s17 + $0xa1] sm:$0xff] }
 0x119   : > { %1485 = vst.msk [vmem:[#allocation2 + $0x74] sm:$0xf] %vm1457_vm10, %v1416_v35  ;;  %v1813_v35 = vpack.c.bf16 %v1781_v29, %v1781_v29 }
 0x11c   : > { %1646 = vrot.lane.b32.xlu1 %v1552_v37, %s6013_s19  ;;  %1648 = vrot.lane.b32.xlu2 %v1553_v28, %s6013_s19 }
 0x11d   : > { %1644 = vrot.lane.b32.xlu0 %v1551_v6, %s6013_s19  ;;  %s5093_s19 = sshll.u32 %s7788_s18, 8 }
 0x11e   : > { %v1402_v13 = vpop.permute.xlu1 %1401  ;;  %v1422_v40 = vpop.permute.xlu2 %1421 }
 0x11f   : > { %1478 = vst.msk [vmem:[#allocation2 + $0x58] sm:$0xf] %vm1457_vm10, %v1402_v13  ;;  %v1400_v12 = vpop.permute.xlu0 %1399 }
 0x120   : > { %1477 = vst.msk [vmem:[#allocation2 + $0x54] sm:$0xf] %vm1457_vm10, %v1400_v12  ;;  %v1818_v12 = vpack.c.bf16 %v1786_v3, %v1786_v3 }
 0x121   : > { %1488 = vst.msk [vmem:[#allocation2 + $0x80] sm:$0xf] %vm1457_vm10, %v1422_v40 }
 0x124   : > { %1864 = vrot.lane.b32.xlu1 %v1799_v42, %s6014_s20  ;;  %1866 = vrot.lane.b32.xlu2 %v1800_v45, %s6014_s20  ;;  %v1816_v45 = vpack.c.bf16 %v1784_v38, %v1784_v38 }
 0x125   : > { %1862 = vrot.lane.b32.xlu0 %v1798_v46, %s6014_s20  ;;  %v1788_v46 = vld [vmem:[%s6221_s17 + $0xb1] sm:$0xff] }
 0x126   : > { %v1408_v49 = vpop.permute.xlu1 %1407  ;;  %v1589_v20 = vpop.permute.xlu2 %1588 }
 0x127   : > { %1481 = vst.msk [vmem:[#allocation2 + $0x64] sm:$0xf] %vm1457_vm10, %v1408_v49  ;;  %v1406_v62 = vpop.permute.xlu0 %1405 }
 0x128   : > { %1480 = vst.msk [vmem:[#allocation2 + $0x60] sm:$0xf] %vm1457_vm10, %v1406_v62 }
 0x129   : > { %1684 = vst.msk [vmem:[#allocation2 + $0xc] sm:$0xf] %vm1682_vm11, %v1589_v20  ;;  %v1787_v20 = vld [vmem:[%s6221_s17 + $0xa9] sm:$0x7f] }
 0x12a   : > { %v1819_v58 = vpack.c.bf16 %v1787_v20, %v1787_v20 }
 0x12c   : > { %1870 = vrot.lane.b32.xlu1 %v1802_v52, %s6014_s20  ;;  %1872 = vrot.lane.b32.xlu2 %v1803_v53, %s6014_s20  ;;  %v1820_v52 = vpack.c.bf16 %v1788_v46, %v1788_v46  ;;  %v1821_v53 = vpack.c.bf16 %v1789_v47, %v1789_v47  ;;  %v2030_v47 = vld [vmem:[%s6113_s13 + $0x21] sm:$0xff] }
 0x12d   : > { %1868 = vrot.lane.b32.xlu0 %v1801_v57, %s6014_s20 }
 0x12e   : > { %v1414_v51 = vpop.permute.xlu1 %1413  ;;  %v1595_v60 = vpop.permute.xlu2 %1594 }
 0x12f   : > { %1484 = vst.msk [vmem:[#allocation2 + $0x70] sm:$0xf] %vm1457_vm10, %v1414_v51  ;;  %v1412_v30 = vpop.permute.xlu0 %1411  ;;  %v1792_v51 = vld [vmem:[%s6221_s17 + $0xd1] sm:$0xff] }
 0x130   : > { %v1718_v63 = vld [vmem:[#allocation2 + $0xc] sm:$0x8]  ;;  %1483 = vst.msk [vmem:[#allocation2 + $0x6c] sm:$0xf] %vm1457_vm10, %v1412_v30  ;;  %v1824_v4 = vpack.c.bf16 %v1792_v51, %v1792_v51 }
 0x131   : > { %v1719_v1 = vsel %vm6710_vm14, 0, %v1718_v63  ;;  %1687 = vst.msk [vmem:[#allocation2 + $0x18] sm:$0xf] %vm1682_vm11, %v1595_v60  ;;  %v1790_v63 = vld [vmem:[%s6221_s17 + $0xc1] sm:$0xff] }
 0x132   : > { %1720 = vst [vmem:[#allocation2 + $0xc] sm:$0x8] %v1719_v1 }
 0x134   : > { %1876 = vrot.lane.b32.xlu1 %v1805_v31, %s6014_s20  ;;  %1878 = vrot.lane.b32.xlu2 %v1806_v0, %s6014_s20 }
 0x135   : > { %1874 = vrot.lane.b32.xlu0 %v1804_v2, %s6014_s20  ;;  %v1823_v2 = vpack.c.bf16 %v1791_v59, %v1791_v59  ;;  %v2035_v59 = vld [vmem:[%s6113_s13 + $0x49] sm:$0x7f] }
 0x136   : > { %v1420_v7 = vpop.permute.xlu1 %1419  ;;  %v1601_v32 = vpop.permute.xlu2 %1600 }
 0x137   : > { %1487 = vst.msk [vmem:[#allocation2 + $0x7c] sm:$0xf] %vm1457_vm10, %v1420_v7  ;;  %v1418_v10 = vpop.permute.xlu0 %1417  ;;  %v1822_v7 = vpack.c.bf16 %v1790_v63, %v1790_v63 }
 0x138   : > { %1486 = vst.msk [vmem:[#allocation2 + $0x78] sm:$0xf] %vm1457_vm10, %v1418_v10 }
 0x139   : > { %1690 = vst.msk [vmem:[#allocation2 + $0x24] sm:$0xf] %vm1682_vm11, %v1601_v32  ;;  %v1794_v32 = vld [vmem:[%s6221_s17 + $0xe1] sm:$0xff] }
 0x13a   : > { %v1826_v17 = vpack.c.bf16 %v1794_v32, %v1794_v32  ;;  %v2038_v32 = vld [vmem:[%s6113_s13 + $0x61] sm:$0xff] }
 0x13c   : > { %1882 = vrot.lane.b32.xlu1 %v1808_v11, %s6014_s20  ;;  %1884 = vrot.lane.b32.xlu2 %v1809_v14, %s6014_s20  ;;  %v1793_v14 = vld [vmem:[%s6221_s17 + $0xd9] sm:$0x7f] }
 0x13d   : > { %1880 = vrot.lane.b32.xlu0 %v1807_v15, %s6014_s20  ;;  %v1825_v21 = vpack.c.bf16 %v1793_v14, %v1793_v14  ;;  %v2036_v14 = vld [vmem:[%s6113_s13 + $0x51] sm:$0xff] }
 0x13e   : > { %v1587_v18 = vpop.permute.xlu1 %1586  ;;  %v1607_v44 = vpop.permute.xlu2 %1606 }
 0x13f   : > { %1683 = vst.msk [vmem:[#allocation2 + $0x8] sm:$0xf] %vm1682_vm11, %v1587_v18  ;;  %v1424_v43 = vpop.permute.xlu0 %1423  ;;  %v1827_v18 = vpack.c.bf16 %v1795_v9, %v1795_v9 }
 0x140   : > { %v1727_v19 = vld [vmem:[#allocation2 + $0x24] sm:$0x8]  ;;  %1489 = vst.msk [vmem:[#allocation2 + $0x84] sm:$0xf] %vm1457_vm10, %v1424_v43  ;;  %v1797_v43 = vld [vmem:[%s6221_s17 + $0xf9] sm:$0x7f] }
 0x141   : > { %v1728_v24 = vsel %vm6710_vm14, 0, %v1727_v19  ;;  %1693 = vst.msk [vmem:[#allocation2 + $0x30] sm:$0xf] %vm1682_vm11, %v1607_v44  ;;  %v2026_v19 = vld [vmem:[%s6113_s13 + $0x1] sm:$0xff]  ;;  %vm3516_vm10 = vcmask 261120  }
 0x142   : > { %1729 = vst [vmem:[#allocation2 + $0x24] sm:$0x8] %v1728_v24  ;;  %v2058_v29 = vpack.c.bf16 %v2026_v19, %v2026_v19 }
 0x144   : > { %1888 = vrot.lane.b32.xlu1 %v1811_v22, %s6014_s20  ;;  %1890 = vrot.lane.b32.xlu2 %v1812_v23, %s6014_s20 }
 0x145   : > { %1886 = vrot.lane.b32.xlu0 %v1810_v25, %s6014_s20  ;;  %v1796_v25 = vld [vmem:[%s6221_s17 + $0xf1] sm:$0xff] }
 0x146   : > { %v1593_v8 = vpop.permute.xlu1 %1592  ;;  %v1613_v26 = vpop.permute.xlu2 %1612 }
 0x147   : > { %1686 = vst.msk [vmem:[#allocation2 + $0x14] sm:$0xf] %vm1682_vm11, %v1593_v8  ;;  %v1591_v54 = vpop.permute.xlu0 %1590 }
 0x148   : > { %1685 = vst.msk [vmem:[#allocation2 + $0x10] sm:$0xf] %vm1682_vm11, %v1591_v54 }
 0x149   : > { %1696 = vst.msk [vmem:[#allocation2 + $0x3c] sm:$0xf] %vm1682_vm11, %v1613_v26  ;;  %v1829_v26 = vpack.c.bf16 %v1797_v43, %v1797_v43  ;;  %v2041_v43 = vld [vmem:[%s6113_s13 + $0x79] sm:$0x7f] }
 0x14c   : > { %1894 = vrot.lane.b32.xlu1 %v1814_v33, %s6014_s20  ;;  %1896 = vrot.lane.b32.xlu2 %v1815_v34, %s6014_s20  ;;  %v1828_v33 = vpack.c.bf16 %v1796_v25, %v1796_v25  ;;  %v2028_v34 = vld [vmem:[%s6113_s13 + $0x11] sm:$0xff] }
 0x14d   : > { %1892 = vrot.lane.b32.xlu0 %v1813_v35, %s6014_s20  ;;  %v2029_v35 = vld [vmem:[%s6113_s13 + $0x19] sm:$0x7f]  ;;  %v2060_v38 = vpack.c.bf16 %v2028_v34, %v2028_v34 }
 0x14e   : > { %v1721_v37 = vld [vmem:[#allocation2 + $0x14] sm:$0x8]  ;;  %v1599_v28 = vpop.permute.xlu1 %1598  ;;  %v1619_v6 = vpop.permute.xlu2 %1618 }
 0x14f   : > { %v1722_v39 = vsel %vm6710_vm14, 0, %v1721_v37  ;;  %1689 = vst.msk [vmem:[#allocation2 + $0x20] sm:$0xf] %vm1682_vm11, %v1599_v28  ;;  %v1597_v13 = vpop.permute.xlu0 %1596  ;;  %v2027_v37 = vld [vmem:[%s6113_s13 + $0x9] sm:$0x7f] }
 0x150   : > { %1723 = vst [vmem:[#allocation2 + $0x14] sm:$0x8] %v1722_v39  ;;  %v1736_v40 = vld [vmem:[#allocation2 + $0x3c] sm:$0x8]  ;;  %v2061_v39 = vpack.c.bf16 %v2029_v35, %v2029_v35  ;;  %v2043_v35 = vld [vmem:[%s6113_s13 + $0x89] sm:$0x7f] }
 0x151   : > { %v1737_v42 = vsel %vm6710_vm14, 0, %v1736_v40  ;;  %1688 = vst.msk [vmem:[#allocation2 + $0x1c] sm:$0xf] %vm1682_vm11, %v1597_v13  ;;  %v2059_v40 = vpack.c.bf16 %v2027_v37, %v2027_v37 }
 0x152   : > { %1738 = vst [vmem:[#allocation2 + $0x3c] sm:$0x8] %v1737_v42 }
 0x153   : > { %1699 = vst.msk [vmem:[#allocation2 + $0x48] sm:$0xf] %vm1682_vm11, %v1619_v6 }
 0x154   : > { %1900 = vrot.lane.b32.xlu1 %v1817_v55, %s6014_s20  ;;  %1902 = vrot.lane.b32.xlu2 %v1818_v12, %s6014_s20  ;;  %v2031_v55 = vld [vmem:[%s6113_s13 + $0x29] sm:$0x7f]  ;;  %v2032_v12 = vld [vmem:[%s6113_s13 + $0x31] sm:$0xff] }
 0x155   : > { %1898 = vrot.lane.b32.xlu0 %v1816_v45, %s6014_s20 }
 0x156   : > { %v1605_v48 = vpop.permute.xlu1 %1604  ;;  %v1625_v49 = vpop.permute.xlu2 %1624 }
 0x157   : > { %1692 = vst.msk [vmem:[#allocation2 + $0x2c] sm:$0xf] %vm1682_vm11, %v1605_v48  ;;  %v1603_v50 = vpop.permute.xlu0 %1602 }
 0x158   : > { %v1724_v62 = vld [vmem:[#allocation2 + $0x1c] sm:$0x8]  ;;  %1691 = vst.msk [vmem:[#allocation2 + $0x28] sm:$0xf] %vm1682_vm11, %v1603_v50  ;;  %v2063_v50 = vpack.c.bf16 %v2031_v55, %v2031_v55  ;;  %v2046_v55 = vld [vmem:[%s6113_s13 + $0xa1] sm:$0xff] }
 0x159   : > { %v1725_v57 = vsel %vm6710_vm14, 0, %v1724_v62  ;;  %1702 = vst.msk [vmem:[#allocation2 + $0x54] sm:$0xf] %vm1682_vm11, %v1625_v49  ;;  %v2064_v62 = vpack.c.bf16 %v2032_v12, %v2032_v12  ;;  %v2047_v12 = vld [vmem:[%s6113_s13 + $0xa9] sm:$0x7f] }
 0x15a   : > { %1726 = vst [vmem:[#allocation2 + $0x1c] sm:$0x8] %v1725_v57  ;;  %v5473_v57 = vld [vmem:[%s8231_s3 + $0x68] sm:$0xf] }
 0x15c   : > { %1906 = vrot.lane.b32.xlu1 %v1820_v52, %s6014_s20  ;;  %1908 = vrot.lane.b32.xlu2 %v1821_v53, %s6014_s20  ;;  %v2062_v53 = vpack.c.bf16 %v2030_v47, %v2030_v47 }
 0x15d   : > { %1904 = vrot.lane.b32.xlu0 %v1819_v58, %s6014_s20  ;;  %v2034_v58 = vld [vmem:[%s6113_s13 + $0x41] sm:$0xff] }
 0x15e   : > { %v1730_v60 = vld [vmem:[#allocation2 + $0x2c] sm:$0x8]  ;;  %v1611_v61 = vpop.permute.xlu1 %1610  ;;  %v1631_v30 = vpop.permute.xlu2 %1630 }
 0x15f   : > { %v1731_v31 = vsel %vm6710_vm14, 0, %v1730_v60  ;;  %1695 = vst.msk [vmem:[#allocation2 + $0x38] sm:$0xf] %vm1682_vm11, %v1611_v61  ;;  %v1609_v0 = vpop.permute.xlu0 %1608 }
 0x160   : > { %1732 = vst [vmem:[#allocation2 + $0x2c] sm:$0x8] %v1731_v31  ;;  %v1745_v1 = vld [vmem:[#allocation2 + $0x54] sm:$0x8] }
 0x161   : > { %v1746_v5 = vsel %vm6710_vm14, 0, %v1745_v1  ;;  %1694 = vst.msk [vmem:[#allocation2 + $0x34] sm:$0xf] %vm1682_vm11, %v1609_v0  ;;  %v1971_v61 = vld [vmem:[#allocation2 + $0x1c] sm:$0xf]  ;;  %v2066_v1 = vpack.c.bf16 %v2034_v58, %v2034_v58 }
 0x162   : > { %1747 = vst [vmem:[#allocation2 + $0x54] sm:$0x8] %v1746_v5  ;;  %v2049_v58 = vld [vmem:[%s6113_s13 + $0xb9] sm:$0x7f] }
 0x163   : > { %1705 = vst.msk [vmem:[#allocation2 + $0x60] sm:$0xf] %vm1682_vm11, %v1631_v30  ;;  %v2033_v30 = vld [vmem:[%s6113_s13 + $0x39] sm:$0x7f] }
 0x164   : > { %1912 = vrot.lane.b32.xlu1 %v1823_v2, %s6014_s20  ;;  %1914 = vrot.lane.b32.xlu2 %v1824_v4, %s6014_s20  ;;  %v2067_v2 = vpack.c.bf16 %v2035_v59, %v2035_v59  ;;  %v2065_v5 = vpack.c.bf16 %v2033_v30, %v2033_v30  ;;  %v2050_v59 = vld [vmem:[%s6113_s13 + $0xc1] sm:$0xff] }
 0x165   : > { %1910 = vrot.lane.b32.xlu0 %v1822_v7, %s6014_s20  ;;  %v2037_v7 = vld [vmem:[%s6113_s13 + $0x59] sm:$0x7f] }
 0x166   : > { %v1617_v10 = vpop.permute.xlu1 %1616  ;;  %v1637_v11 = vpop.permute.xlu2 %1636 }
 0x167   : > { %1698 = vst.msk [vmem:[#allocation2 + $0x44] sm:$0xf] %vm1682_vm11, %v1617_v10  ;;  %v1615_v15 = vpop.permute.xlu0 %1614 }
 0x168   : > { %v1733_v16 = vld [vmem:[#allocation2 + $0x34] sm:$0x8]  ;;  %1697 = vst.msk [vmem:[#allocation2 + $0x40] sm:$0xf] %vm1682_vm11, %v1615_v15 }
 0x169   : > { %v1734_v44 = vsel %vm6710_vm14, 0, %v1733_v16  ;;  %1708 = vst.msk [vmem:[#allocation2 + $0x6c] sm:$0xf] %vm1682_vm11, %v1637_v11 }
 0x16a   : > { %1735 = vst [vmem:[#allocation2 + $0x34] sm:$0x8] %v1734_v44  ;;  %v2068_v44 = vpack.c.bf16 %v2036_v14, %v2036_v14 }
 0x16c   : > { %1918 = vrot.lane.b32.xlu1 %v1826_v17, %s6014_s20  ;;  %1920 = vrot.lane.b32.xlu2 %v1827_v18, %s6014_s20  ;;  %v2069_v17 = vpack.c.bf16 %v2037_v7, %v2037_v7  ;;  %v2070_v18 = vpack.c.bf16 %v2038_v32, %v2038_v32 }
 0x16d   : > { %1916 = vrot.lane.b32.xlu0 %v1825_v21, %s6014_s20  ;;  %v2040_v21 = vld [vmem:[%s6113_s13 + $0x71] sm:$0xff] }
 0x16e   : > { %v1739_v22 = vld [vmem:[#allocation2 + $0x44] sm:$0x8]  ;;  %v1623_v23 = vpop.permute.xlu1 %1622  ;;  %v1643_v24 = vpop.permute.xlu2 %1642 }
 0x16f   : > { %v1740_v27 = vsel %vm6710_vm14, 0, %v1739_v22  ;;  %1701 = vst.msk [vmem:[#allocation2 + $0x50] sm:$0xf] %vm1682_vm11, %v1623_v23  ;;  %v1621_v56 = vpop.permute.xlu0 %1620  ;;  %v1963_v22 = vld [vmem:[#allocation2 + $0xc] sm:$0xf] }
 0x170   : > { %1741 = vst [vmem:[#allocation2 + $0x44] sm:$0x8] %v1740_v27  ;;  %v1754_v8 = vld [vmem:[#allocation2 + $0x6c] sm:$0x8] }
 0x171   : > { %v1755_v54 = vsel %vm6710_vm14, 0, %v1754_v8  ;;  %1700 = vst.msk [vmem:[#allocation2 + $0x4c] sm:$0xf] %vm1682_vm11, %v1621_v56  ;;  %v1983_v56 = vld [vmem:[#allocation2 + $0x34] sm:$0xf] }
 0x172   : > { %1756 = vst [vmem:[#allocation2 + $0x6c] sm:$0x8] %v1755_v54  ;;  %v2073_v54 = vpack.c.bf16 %v2041_v43, %v2041_v43 }
 0x173   : > { %1711 = vst.msk [vmem:[#allocation2 + $0x78] sm:$0xf] %vm1682_vm11, %v1643_v24  ;;  %v2039_v24 = vld [vmem:[%s6113_s13 + $0x69] sm:$0x7f] }
 0x174   : > { %1924 = vrot.lane.b32.xlu1 %v1829_v26, %s6014_s20  ;;  %2122 = vrot.lane.b32.xlu2 %v2058_v29, %s6015_s26  ;;  %v2072_v29 = vpack.c.bf16 %v2040_v21, %v2040_v21  ;;  %v2071_v34 = vpack.c.bf16 %v2039_v24, %v2039_v24 }
 0x175   : > { %1922 = vrot.lane.b32.xlu0 %v1828_v33, %s6014_s20  ;;  %s7799_s20 = scalar_lea.vmem [#allocation6], %s5093_s19 }
 0x176   : > { %v1629_v36 = vpop.permute.xlu1 %1628  ;;  %v1649_v3 = vpop.permute.xlu2 %1648 }
 0x177   : > { %1704 = vst.msk [vmem:[#allocation2 + $0x5c] sm:$0xf] %vm1682_vm11, %v1629_v36  ;;  %v1627_v28 = vpop.permute.xlu0 %1626  ;;  %v2044_v36 = vld [vmem:[%s6113_s13 + $0x91] sm:$0xff] }
 0x178   : > { %v1742_v6 = vld [vmem:[#allocation2 + $0x4c] sm:$0x8]  ;;  %1703 = vst.msk [vmem:[#allocation2 + $0x58] sm:$0xf] %vm1682_vm11, %v1627_v28  ;;  %v2042_v28 = vld [vmem:[%s6113_s13 + $0x81] sm:$0xff] }
 0x179   : > { %v1743_v13 = vsel %vm6710_vm14, 0, %v1742_v6  ;;  %1714 = vst.msk [vmem:[#allocation2 + $0x84] sm:$0xf] %vm1682_vm11, %v1649_v3  ;;  %v1967_v6 = vld [vmem:[#allocation2 + $0x14] sm:$0xf] }
 0x17a   : > { %1744 = vst [vmem:[#allocation2 + $0x4c] sm:$0x8] %v1743_v13  ;;  %v2076_v13 = vpack.c.bf16 %v2044_v36, %v2044_v36  ;;  %v5634_v36 = vld [vmem:[%s8231_s3 + $0x10] sm:$0xff] }
 0x17c   : > { %2126 = vrot.lane.b32.xlu1 %v2060_v38, %s6015_s26  ;;  %2128 = vrot.lane.b32.xlu2 %v2061_v39, %s6015_s26  ;;  %v2075_v39 = vpack.c.bf16 %v2043_v35, %v2043_v35  ;;  %v1991_v35 = vld [vmem:[#allocation2 + $0x44] sm:$0xf] }
 0x17d   : > { %2124 = vrot.lane.b32.xlu0 %v2059_v40, %s6015_s26  ;;  %v2074_v40 = vpack.c.bf16 %v2042_v28, %v2042_v28 }
 0x17e   : > { %v1748_v42 = vld [vmem:[#allocation2 + $0x5c] sm:$0x8]  ;;  %v1635_v45 = vpop.permute.xlu1 %1634  ;;  %v1867_v46 = vpop.permute.xlu2 %1866 }
 0x17f   : > { %v1749_v48 = vsel %vm6710_vm14, 0, %v1748_v42  ;;  %1707 = vst.msk [vmem:[#allocation2 + $0x68] sm:$0xf] %vm1682_vm11, %v1635_v45  ;;  %v1633_v49 = vpop.permute.xlu0 %1632  ;;  %v1975_v45 = vld [vmem:[#allocation2 + $0x24] sm:$0xf] }
 0x180   : > { %1750 = vst [vmem:[#allocation2 + $0x5c] sm:$0x8] %v1749_v48  ;;  %v1763_v20 = vld [vmem:[#allocation2 + $0x84] sm:$0x8]  ;;  %v2045_v48 = vld [vmem:[%s6113_s13 + $0x99] sm:$0x7f] }
 0x181   : > { %v1764_v52 = vsel %vm6710_vm14, 0, %v1763_v20  ;;  %1706 = vst.msk [vmem:[#allocation2 + $0x64] sm:$0xf] %vm1682_vm11, %v1633_v49  ;;  %v1995_v47 = vld [vmem:[#allocation2 + $0x4c] sm:$0xf] }
 0x182   : > { %1765 = vst [vmem:[#allocation2 + $0x84] sm:$0x8] %v1764_v52  ;;  %v2079_v52 = vpack.c.bf16 %v2047_v12, %v2047_v12 }
 0x183   : > { %1966 = vst.msk [vmem:[#allocation2 + $0x10] sm:$0xf] %vm1958_vm15, %v1867_v46 }
 0x184   : > { %2132 = vrot.lane.b32.xlu1 %v2063_v50, %s6015_s26  ;;  %2134 = vrot.lane.b32.xlu2 %v2064_v62, %s6015_s26  ;;  %v2078_v62 = vpack.c.bf16 %v2046_v55, %v2046_v55  ;;  %v1999_v55 = vld [vmem:[#allocation2 + $0x54] sm:$0xf] }
 0x185   : > { %2130 = vrot.lane.b32.xlu0 %v2062_v53, %s6015_s26  ;;  %v2077_v53 = vpack.c.bf16 %v2045_v48, %v2045_v48 }
 0x186   : > { %v1641_v51 = vpop.permute.xlu1 %1640  ;;  %v1873_v60 = vpop.permute.xlu2 %1872 }
 0x187   : > { %1710 = vst.msk [vmem:[#allocation2 + $0x74] sm:$0xf] %vm1682_vm11, %v1641_v51  ;;  %v1639_v63 = vpop.permute.xlu0 %1638  ;;  %v1972_v31 = vsel %vm6838_vm1, %v1873_v60, %v1971_v61  ;;  %v5159_v51 = vld [vmem:[%s8231_s3 + $0x30] sm:$0xf]  ;;  %v5638_v60 = vld [vmem:[%s8231_s3 + $0x30] sm:$0x30] }
 0x188   : > { %v1751_v0 = vld [vmem:[#allocation2 + $0x64] sm:$0x8]  ;;  %1709 = vst.msk [vmem:[#allocation2 + $0x70] sm:$0xf] %vm1682_vm11, %v1639_v63  ;;  %v2048_v63 = vld [vmem:[%s6113_s13 + $0xb1] sm:$0xff] }
 0x189   : > { %v1752_v4 = vsel %vm6710_vm14, 0, %v1751_v0  ;;  %1973 = vst [vmem:[#allocation2 + $0x1c] sm:$0xf] %v1972_v31  ;;  %v5160_v31 = vor.u32 %v5638_v60, %v5159_v51  ;;  %v2080_v32 = vpack.c.bf16 %v2048_v63, %v2048_v63  ;;  %v2003_v60 = vld [vmem:[#allocation2 + $0x5c] sm:$0xf]  ;;  %v5648_v63 = vld [vmem:[%s8231_s3 + $0x40] sm:$0xff] }
 0x18a   : > { %1753 = vst [vmem:[#allocation2 + $0x64] sm:$0x8] %v1752_v4  ;;  %v2081_v4 = vpack.c.bf16 %v2049_v58, %v2049_v58 }
 0x18b   : > { %v2429_v7 = vsel %vm2427_vm2, %v5160_v31, 0 }
 0x18c   : > { %2138 = vrot.lane.b32.xlu1 %v2066_v1, %s6015_s26  ;;  %2140 = vrot.lane.b32.xlu2 %v2067_v2, %s6015_s26  ;;  %v1979_v1 = vld [vmem:[#allocation2 + $0x2c] sm:$0xf] }
 0x18d   : > { %2136 = vrot.lane.b32.xlu0 %v2065_v5, %s6015_s26  ;;  %v2082_v5 = vpack.c.bf16 %v2050_v59, %v2050_v59  ;;  %2432 = vmatpush.bf16.msra.mxu0 %v2429_v7 }
 0x18e   : > { %v1757_v9 = vld [vmem:[#allocation2 + $0x74] sm:$0x8]  ;;  %v1647_v10 = vpop.permute.xlu1 %1646  ;;  %v1879_v11 = vpop.permute.xlu2 %1878  ;;  %5716 = vmatpush.bf16.msra.mxu2 %v2429_v7 }
 0x18f   : > { %v1758_v15 = vsel %vm6710_vm14, 0, %v1757_v9  ;;  %1713 = vst.msk [vmem:[#allocation2 + $0x80] sm:$0xf] %vm1682_vm11, %v1647_v10  ;;  %v1645_v16 = vpop.permute.xlu0 %1644  ;;  %v5637_v9 = vld [vmem:[%s8231_s3 + $0x28] sm:$0xff]  ;;  %v2052_v10 = vld [vmem:[%s6113_s13 + $0xd1] sm:$0xff] }
 0x190   : > { %1759 = vst [vmem:[#allocation2 + $0x74] sm:$0x8] %v1758_v15  ;;  %v1987_v15 = vld [vmem:[#allocation2 + $0x3c] sm:$0xf] }
 0x191   : > { %1712 = vst.msk [vmem:[#allocation2 + $0x7c] sm:$0xf] %vm1682_vm11, %v1645_v16  ;;  %2433 = vmatpush.bf16.msra.mxu0 %v5637_v9 }
 0x192   : > { %1978 = vst.msk [vmem:[#allocation2 + $0x28] sm:$0xf] %vm1958_vm15, %v1879_v11  ;;  %v2053_v11 = vld [vmem:[%s6113_s13 + $0xd9] sm:$0x7f]  ;;  %5717 = vmatpush.bf16.msra.mxu2 %v5637_v9 }
 0x193   : > { %v5647_v9 = vld [vmem:[%s8231_s3 + $0x38] sm:$0xff] }
 0x194   : > { %2144 = vrot.lane.b32.xlu1 %v2069_v17, %s6015_s26  ;;  %2146 = vrot.lane.b32.xlu2 %v2070_v18, %s6015_s26  ;;  %v2007_v17 = vld [vmem:[#allocation2 + $0x64] sm:$0xf]  ;;  %v2051_v18 = vld [vmem:[%s6113_s13 + $0xc9] sm:$0x7f] }
 0x195   : > { %2142 = vrot.lane.b32.xlu0 %v2068_v44, %s6015_s26  ;;  %v2083_v24 = vpack.c.bf16 %v2051_v18, %v2051_v18  ;;  %v2023_v18 = vld [vmem:[#allocation2 + $0x84] sm:$0xf] }
 0x196   : > { %v1865_v19 = vpop.permute.xlu1 %1864  ;;  %v1885_v23 = vpop.permute.xlu2 %1884 }
 0x197   : > { %v1964_v25 = vsel %vm6838_vm1, %v1865_v19, %v1963_v22  ;;  %v1863_v27 = vpop.permute.xlu0 %1862  ;;  %v1984_v26 = vsel %vm6838_vm1, %v1885_v23, %v1983_v56  ;;  %v5636_v19 = vld [vmem:[%s8231_s3 + $0x20] sm:$0xff]  ;;  %v2084_v22 = vpack.c.bf16 %v2052_v10, %v2052_v10  ;;  %v2085_v23 = vpack.c.bf16 %v2053_v11, %v2053_v11  ;;  %v5241_v56 = vld [vmem:[%s8231_s3 + $0x68] sm:$0xf] }
 0x198   : > { %v1760_v8 = vld [vmem:[#allocation2 + $0x7c] sm:$0x8]  ;;  %1965 = vst [vmem:[#allocation2 + $0xc] sm:$0xf] %v1964_v25  ;;  %2434 = vmatpush.bf16.msra.mxu0 %v5636_v19  ;;  %5718 = vmatpush.bf16.msra.mxu2 %v5636_v19 }
 0x199   : > { %v1761_v33 = vsel %vm6710_vm14, 0, %v1760_v8  ;;  %1959 = vst.msk [vmem:[#allocation2 + $0x8] sm:$0xf] %vm1958_vm15, %v1863_v27  ;;  %v5635_v25 = vld [vmem:[%s8231_s3 + $0x18] sm:$0xff]  ;;  %v2055_v27 = vld [vmem:[%s6113_s13 + $0xe9] sm:$0x7f] }
 0x19a   : > { %1762 = vst [vmem:[#allocation2 + $0x7c] sm:$0x8] %v1761_v33  ;;  %v5653_v8 = vld [vmem:[%s8231_s3 + $0x68] sm:$0x30] }
 0x19b   : > { %1985 = vst [vmem:[#allocation2 + $0x34] sm:$0xf] %v1984_v26  ;;  %v5242_v33 = vor.u32 %v5653_v8, %v5241_v56 }
 0x19c   : > { %2150 = vrot.lane.b32.xlu1 %v2072_v29, %s6015_s26  ;;  %2152 = vrot.lane.b32.xlu2 %v2073_v54, %s6015_s26  ;;  %v2054_v54 = vld [vmem:[%s6113_s13 + $0xe1] sm:$0xff] }
 0x19d   : > { %2148 = vrot.lane.b32.xlu0 %v2071_v34, %s6015_s26  ;;  %2435 = vmatpush.bf16.msra.mxu0 %v5635_v25  ;;  %v2633_v28 = vsel %vm2427_vm2, %v5242_v33, 0 }
 0x19e   : > { %v1871_v3 = vpop.permute.xlu1 %1870  ;;  %v1891_v37 = vpop.permute.xlu2 %1890  ;;  %5719 = vmatpush.bf16.msra.mxu2 %v5635_v25  ;;  %2636 = vmatpush.bf16.msra.mxu1 %v2633_v28 }
 0x19f   : > { %1970 = vst.msk [vmem:[#allocation2 + $0x18] sm:$0xf] %vm1958_vm15, %v1871_v3  ;;  %v1869_v41 = vpop.permute.xlu0 %1868  ;;  %5723 = vmatpush.bf16.msra.mxu3 %v2633_v28  ;;  %v2222_v33 = vld [vmem:[#allocation2 + $0xc] sm:$0xf]  ;;  %v2230_v28 = vld [vmem:[#allocation2 + $0x1c] sm:$0xf] }
 0x1a0   : > { %v1968_v38 = vsel %vm6838_vm1, %v1869_v41, %v1967_v6  ;;  %1990 = vst.msk [vmem:[#allocation2 + $0x40] sm:$0xf] %vm1958_vm15, %v1891_v37  ;;  %v2087_v37 = vpack.c.bf16 %v2055_v27, %v2055_v27  ;;  %v2086_v41 = vpack.c.bf16 %v2054_v54, %v2054_v54  ;;  %v5633_v6 = vld [vmem:[%s8231_s3 + $0x8] sm:$0xff] }
 0x1a1   : > { %1969 = vst [vmem:[#allocation2 + $0x14] sm:$0xf] %v1968_v38  ;;  %2436 = vmatpush.bf16.msra.mxu0 %v5634_v36  ;;  %v2056_v38 = vld [vmem:[%s6113_s13 + $0xf1] sm:$0xff]  ;;  %v5698_v27 = vld [vmem:[%s8231_s3 + $0x68] sm:$0x30] }
 0x1a2   : > { %5720 = vmatpush.bf16.msra.mxu2 %v5634_v36  ;;  %v5697_v36 = vld [vmem:[%s8231_s3 + $0x60] sm:$0xff] }
 0x1a4   : > { %2156 = vrot.lane.b32.xlu1 %v2075_v39, %s6015_s26  ;;  %2158 = vrot.lane.b32.xlu2 %v2076_v13, %s6015_s26  ;;  %v5652_v39 = vld [vmem:[%s8231_s3 + $0x60] sm:$0xff]  ;;  %v2088_v13 = vpack.c.bf16 %v2056_v38, %v2056_v38 }
 0x1a5   : > { %2154 = vrot.lane.b32.xlu0 %v2074_v40, %s6015_s26  ;;  %v6016_v40 = vmov 0   ;;  %2437 = vmatpush.bf16.msra.mxu0 %v5633_v6 }
 0x1a6   : > { %v1877_v42 = vpop.permute.xlu1 %1876  ;;  %v1897_v46 = vpop.permute.xlu2 %1896  ;;  %303 = vst.msk [vmem:[#allocation2] sm:$0xf] %vm302_vm3, %v6016_v40  ;;  %2637 = vmatpush.bf16.msra.mxu1 %v5652_v39  ;;  %5724 = vmatpush.bf16.msra.mxu3 %v5652_v39 }
 0x1a7   : > { %v1976_v49 = vsel %vm6838_vm1, %v1877_v42, %v1975_v45  ;;  %v1875_v20 = vpop.permute.xlu0 %1874  ;;  %v1996_v50 = vsel %vm6838_vm1, %v1897_v46, %v1995_v47  ;;  %304 = vst.msk [vmem:[#allocation2 + $0x4] sm:$0xf] %vm302_vm3, %v6016_v40  ;;  %v2019_v45 = vld [vmem:[#allocation2 + $0x7c] sm:$0xf]  ;;  %5721 = vmatpush.bf16.msra.mxu2 %v5633_v6 }
 0x1a8   : > { %1977 = vst [vmem:[#allocation2 + $0x24] sm:$0xf] %v1976_v49  ;;  %v2057_v46 = vld [vmem:[%s6113_s13 + $0xf9] sm:$0x7f]  ;;  %s7948_s13 = scalar_lea.vmem [#allocation4], %s5093_s19  ;;  %s5935_s19 = scalar_lea.hbm %s8234_s6, 512 }
 0x1a9   : > { %1974 = vst.msk [vmem:[#allocation2 + $0x20] sm:$0xf] %vm1958_vm15, %v1875_v20  ;;  %v5632_v20 = vld [vmem:[%s8231_s3] sm:$0xff] }
 0x1aa   : > { %1997 = vst [vmem:[#allocation2 + $0x4c] sm:$0xf] %v1996_v50  ;;  %v5651_v50 = vld [vmem:[%s8231_s3 + $0x58] sm:$0xff]  ;;  %2438 = vmatpush.bf16.msra.mxu0 %v5632_v20 }
 0x1ab   : > { %306 = vst.msk [vmem:[#allocation2 + $0x88] sm:$0xf] %vm302_vm3, %v6016_v40  ;;  %2638 = vmatpush.bf16.msra.mxu1 %v5651_v50  ;;  %5725 = vmatpush.bf16.msra.mxu3 %v5651_v50 }
 0x1ac   : > { %2162 = vrot.lane.b32.xlu1 %v2078_v62, %s6015_s26  ;;  %2164 = vrot.lane.b32.xlu2 %v2079_v52, %s6015_s26  ;;  %307 = vst.msk [vmem:[#allocation2 + $0x8c] sm:$0xf] %vm302_vm3, %v6016_v40  ;;  %v2089_v62 = vpack.c.bf16 %v2057_v46, %v2057_v46  ;;  %v5650_v52 = vld [vmem:[%s8231_s3 + $0x50] sm:$0xff]  ;;  %v5696_v40 = vld [vmem:[%s8231_s3 + $0x58] sm:$0xff] }
 0x1ad   : > { %2160 = vrot.lane.b32.xlu0 %v2077_v53, %s6015_s26  ;;  %5722 = vmatpush.bf16.msra.mxu2 %v5632_v20  ;;  %v5555_v46 = vld [vmem:[%s8231_s3 + $0xa0] sm:$0xf] }
 0x1ae   : > { %v1883_v61 = vpop.permute.xlu1 %1882  ;;  %v1903_v30 = vpop.permute.xlu2 %1902  ;;  %v5624_v53 = vld [vmem:[#allocation2] sm:$0xff] }
 0x1af   : > { %1982 = vst.msk [vmem:[#allocation2 + $0x30] sm:$0xf] %vm1958_vm15, %v1883_v61  ;;  %v1881_v0 = vpop.permute.xlu0 %1880  ;;  %5161 = vmatmul.msk.bf16.vlgmr.msra.gmra.mxu0 %vm2402_vm4, %v5624_v53  ;;  %2639 = vmatpush.bf16.msra.mxu1 %v5650_v52  ;;  %v5649_v61 = vld [vmem:[%s8231_s3 + $0x48] sm:$0xff] }
 0x1b0   : > { %v1980_v2 = vsel %vm6838_vm1, %v1881_v0, %v1979_v1  ;;  %2002 = vst.msk [vmem:[#allocation2 + $0x58] sm:$0xf] %vm1958_vm15, %v1903_v30  ;;  %5726 = vmatpush.bf16.msra.mxu3 %v5650_v52  ;;  %v2011_v1 = vld [vmem:[#allocation2 + $0x6c] sm:$0xf] }
 0x1b1   : > { %1981 = vst [vmem:[#allocation2 + $0x2c] sm:$0xf] %v1980_v2  ;;  %v5694_v52 = vld [vmem:[%s8231_s3 + $0x48] sm:$0xff] }
 0x1b3   : > { %2640 = vmatpush.bf16.msra.mxu1 %v5649_v61 }
 0x1b4   : > { %2168 = vrot.lane.b32.xlu1 %v2081_v4, %s6015_s26  ;;  %2170 = vrot.lane.b32.xlu2 %v2082_v5, %s6015_s26  ;;  %v2226_v4 = vld [vmem:[#allocation2 + $0x14] sm:$0xf] }
 0x1b5   : > { %2166 = vrot.lane.b32.xlu0 %v2080_v32, %s6015_s26  ;;  %5727 = vmatpush.bf16.msra.mxu3 %v5649_v61 }
 0x1b6   : > { %v1889_v14 = vpop.permute.xlu1 %1888  ;;  %v1909_v16 = vpop.permute.xlu2 %1908 }
 0x1b7   : > { %v1988_v44 = vsel %vm6838_vm1, %v1889_v14, %v1987_v15  ;;  %v1887_v21 = vpop.permute.xlu0 %1886  ;;  %v2008_v43 = vsel %vm6838_vm1, %v1909_v16, %v2007_v17  ;;  %2641 = vmatpush.bf16.msra.mxu1 %v5648_v63  ;;  %v2015_v15 = vld [vmem:[#allocation2 + $0x74] sm:$0xf] }
 0x1b8   : > { %1989 = vst [vmem:[#allocation2 + $0x3c] sm:$0xf] %v1988_v44 }
 0x1b9   : > { %1986 = vst.msk [vmem:[#allocation2 + $0x38] sm:$0xf] %vm1958_vm15, %v1887_v21  ;;  %5728 = vmatpush.bf16.msra.mxu3 %v5648_v63  ;;  %v2238_v21 = vld [vmem:[#allocation2 + $0x2c] sm:$0xf] }
 0x1ba   : > { %2009 = vst [vmem:[#allocation2 + $0x64] sm:$0xf] %v2008_v43 }
 0x1bb   : > { %2642 = vmatpush.bf16.msra.mxu1 %v5647_v9 }
 0x1bc   : > { %2174 = vrot.lane.b32.xlu1 %v2084_v22, %s6015_s26  ;;  %2176 = vrot.lane.b32.xlu2 %v2085_v23, %s6015_s26  ;;  %v5323_v23 = vld [vmem:[%s8231_s3 + $0xa0] sm:$0xf] }
 0x1bd   : > { %2172 = vrot.lane.b32.xlu0 %v2083_v24, %s6015_s26  ;;  %5729 = vmatpush.bf16.msra.mxu3 %v5647_v9  ;;  %v5668_v24 = vld [vmem:[%s8231_s3 + $0xa0] sm:$0x30] }
 0x1be   : > { %v1895_v26 = vpop.permute.xlu1 %1894  ;;  %v1915_v29 = vpop.permute.xlu2 %1914  ;;  %v5324_v25 = vor.u32 %v5668_v24, %v5323_v23  ;;  %v5664_v24 = vld [vmem:[%s8231_s3 + $0x80] sm:$0xff] }
 0x1bf   : > { %1994 = vst.msk [vmem:[#allocation2 + $0x48] sm:$0xf] %vm1958_vm15, %v1895_v26  ;;  %v1893_v34 = vpop.permute.xlu0 %1892 }
 0x1c0   : > { %v1992_v3 = vsel %vm6838_vm1, %v1893_v34, %v1991_v35  ;;  %2014 = vst.msk [vmem:[#allocation2 + $0x70] sm:$0xf] %vm1958_vm15, %v1915_v29  ;;  %v2870_v26 = vsel %vm2427_vm2, %v5324_v25, 0  ;;  %v5474_v29 = vor.u32 %v5698_v27, %v5473_v57  ;;  %v5682_v25 = vld [vmem:[%s8231_s3 + $0x28] sm:$0xff]  ;;  %v5708_v57 = vld [vmem:[%s8231_s3 + $0x78] sm:$0xff]  ;;  %v5681_v27 = vld [vmem:[%s8231_s3 + $0x20] sm:$0xff] }
 0x1c1   : > { %1993 = vst [vmem:[#allocation2 + $0x44] sm:$0xf] %v1992_v3  ;;  %2873 = vmatpush.bf16.msrb.mxu2 %v2870_v26  ;;  %v5667_v3 = vld [vmem:[%s8231_s3 + $0x98] sm:$0xff] }
 0x1c2   : > { %v3954_v35 = vsel %vm2427_vm2, %v5474_v29, 0 }
 0x1c3   : > { %3957 = vmatpush.bf16.msrb.mxu0 %v3954_v35 }
 0x1c4   : > { %2180 = vrot.lane.b32.xlu1 %v2087_v37, %s6015_s26  ;;  %2182 = vrot.lane.b32.xlu2 %v2088_v13, %s6015_s26 }
 0x1c5   : > { %2178 = vrot.lane.b32.xlu0 %v2086_v41, %s6015_s26  ;;  %2874 = vmatpush.bf16.msrb.mxu2 %v5667_v3 }
 0x1c6   : > { %v1901_v12 = vpop.permute.xlu1 %1900  ;;  %v1921_v42 = vpop.permute.xlu2 %1920 }
 0x1c7   : > { %v2000_v47 = vsel %vm6838_vm1, %v1901_v12, %v1999_v55  ;;  %v1899_v48 = vpop.permute.xlu0 %1898  ;;  %v2020_v49 = vsel %vm6838_vm1, %v1921_v42, %v2019_v45  ;;  %3958 = vmatpush.bf16.msrb.mxu0 %v5697_v36  ;;  %v5695_v42 = vld [vmem:[%s8231_s3 + $0x50] sm:$0xff] }
 0x1c8   : > { %2001 = vst [vmem:[#allocation2 + $0x54] sm:$0xf] %v2000_v47  ;;  %v2250_v6 = vld [vmem:[#allocation2 + $0x44] sm:$0xf]  ;;  %v5666_v45 = vld [vmem:[%s8231_s3 + $0x90] sm:$0xff] }
 0x1c9   : > { %1998 = vst.msk [vmem:[#allocation2 + $0x50] sm:$0xf] %vm1958_vm15, %v1899_v48  ;;  %2875 = vmatpush.bf16.msrb.mxu2 %v5666_v45  ;;  %v5713_v47 = vld [vmem:[%s8231_s3 + $0xa0] sm:$0x30]  ;;  %v5707_v36 = vld [vmem:[%s8231_s3 + $0x70] sm:$0xff]  ;;  %v5678_v45 = vld [vmem:[%s8231_s3 + $0x8] sm:$0xff] }
 0x1ca   : > { %2021 = vst [vmem:[#allocation2 + $0x7c] sm:$0xf] %v2020_v49  ;;  %v5556_v20 = vor.u32 %v5713_v47, %v5555_v46  ;;  %v5677_v46 = vld [vmem:[%s8231_s3] sm:$0xff] }
 0x1cb   : > { %3959 = vmatpush.bf16.msrb.mxu0 %v5696_v40 }
 0x1cd   : > { %2184 = vrot.lane.b32.xlu0 %v2089_v62, %s6015_s26  ;;  %v2234_v62 = vld [vmem:[#allocation2 + $0x24] sm:$0xf]  ;;  %s7182_s26 = scalar_lea.vmem %s8230_s2, %s6107_s10 }
 0x1ce   : > { %v1907_v58 = vpop.permute.xlu1 %1906  ;;  %v2123_v59 = vpop.permute.xlu2 %2122  ;;  %v3100_v31 = vld [vmem:[%s7182_s26] sm:$0xff] }
 0x1cf   : > { %2006 = vst.msk [vmem:[#allocation2 + $0x60] sm:$0xf] %vm1958_vm15, %v1907_v58  ;;  %v1905_v51 = vpop.permute.xlu0 %1904  ;;  %3960 = vmatpush.bf16.msrb.mxu0 %v5695_v42  ;;  %v4190_v58 = vsel %vm2427_vm2, %v5556_v20, 0  ;;  %v2258_v40 = vld [vmem:[#allocation2 + $0x54] sm:$0xf]  ;;  %3132 = vrot.lane.b32.xlu1 %v3100_v31, %s6017_s11 }
 0x1d0   : > { %v2004_v30 = vsel %vm6838_vm1, %v1905_v51, %v2003_v60  ;;  %2219 = vst.msk [vmem:[#allocation2 + $0x8] sm:$0xf] %vm2218_vm5, %v2123_v59  ;;  %4193 = vmatpush.bf16.msrb.mxu1 %v4190_v58  ;;  %v5693_v59 = vld [vmem:[%s8231_s3 + $0x40] sm:$0xff]  ;;  %v5712_v51 = vld [vmem:[%s8231_s3 + $0x98] sm:$0xff]  ;;  %v5665_v60 = vld [vmem:[%s8231_s3 + $0x88] sm:$0xff] }
 0x1d1   : > { %2005 = vst [vmem:[#allocation2 + $0x5c] sm:$0xf] %v2004_v30  ;;  %2876 = vmatpush.bf16.msrb.mxu2 %v5665_v60  ;;  %v2242_v30 = vld [vmem:[#allocation2 + $0x34] sm:$0xf] }
 0x1d2   : > { %v5662_v42 = vld [vmem:[%s8231_s3 + $0x70] sm:$0xff] }
 0x1d3   : > { %3961 = vmatpush.bf16.msrb.mxu0 %v5694_v52 }
 0x1d4   : > { %4194 = vmatpush.bf16.msrb.mxu1 %v5712_v51 }
 0x1d5   : > { %2877 = vmatpush.bf16.msrb.mxu2 %v5664_v24 }
 0x1d6   : > { %v1913_v0 = vpop.permute.xlu1 %1912  ;;  %v2129_v2 = vpop.permute.xlu2 %2128 }
 0x1d7   : > { %v2012_v5 = vsel %vm6838_vm1, %v1913_v0, %v2011_v1  ;;  %v1911_v7 = vpop.permute.xlu0 %1910  ;;  %v2227_v32 = vsel %vm6996_vm6, %v2129_v2, %v2226_v4  ;;  %3962 = vmatpush.bf16.msrb.mxu0 %v5693_v59 }
 0x1d8   : > { %2013 = vst [vmem:[#allocation2 + $0x6c] sm:$0xf] %v2012_v5  ;;  %v2262_v0 = vld [vmem:[#allocation2 + $0x5c] sm:$0xf] }
 0x1d9   : > { %2010 = vst.msk [vmem:[#allocation2 + $0x68] sm:$0xf] %vm1958_vm15, %v1911_v7  ;;  %v5692_v7 = vld [vmem:[%s8231_s3 + $0x38] sm:$0xff] }
 0x1da   : > { %2228 = vst [vmem:[#allocation2 + $0x14] sm:$0xf] %v2227_v32  ;;  %v5711_v32 = vld [vmem:[%s8231_s3 + $0x90] sm:$0xff] }
 0x1db   : > { %3963 = vmatpush.bf16.msrb.mxu0 %v5692_v7  ;;  %4195 = vmatpush.bf16.msrb.mxu1 %v5711_v32 }
 0x1de   : > { %v1919_v10 = vpop.permute.xlu1 %1918  ;;  %v2135_v11 = vpop.permute.xlu2 %2134 }
 0x1df   : > { %2018 = vst.msk [vmem:[#allocation2 + $0x78] sm:$0xf] %vm1958_vm15, %v1919_v10  ;;  %v1917_v14 = vpop.permute.xlu0 %1916  ;;  %v2270_v51 = vld [vmem:[#allocation2 + $0x6c] sm:$0xf] }
 0x1e0   : > { %v2016_v16 = vsel %vm6838_vm1, %v1917_v14, %v2015_v15  ;;  %2233 = vst.msk [vmem:[#allocation2 + $0x20] sm:$0xf] %vm2218_vm5, %v2135_v11  ;;  %v5710_v14 = vld [vmem:[%s8231_s3 + $0x88] sm:$0xff]  ;;  %v5391_v15 = vld [vmem:[%s8231_s3 + $0x30] sm:$0xf] }
 0x1e1   : > { %2017 = vst [vmem:[#allocation2 + $0x74] sm:$0xf] %v2016_v16  ;;  %v5683_v16 = vld [vmem:[%s8231_s3 + $0x30] sm:$0x30]  ;;  %4196 = vmatpush.bf16.msrb.mxu1 %v5710_v14 }
 0x1e6   : > { %v1925_v17 = vpop.permute.xlu1 %1924  ;;  %v2141_v44 = vpop.permute.xlu2 %2140 }
 0x1e7   : > { %v2024_v43 = vsel %vm6838_vm1, %v1925_v17, %v2023_v18  ;;  %v1923_v19 = vpop.permute.xlu0 %1922  ;;  %v2239_v22 = vsel %vm6996_vm6, %v2141_v44, %v2238_v21  ;;  %v5392_v17 = vor.u32 %v5683_v16, %v5391_v15 }
 0x1e8   : > { %2025 = vst [vmem:[#allocation2 + $0x84] sm:$0xf] %v2024_v43  ;;  %v2274_v29 = vld [vmem:[#allocation2 + $0x74] sm:$0xf] }
 0x1e9   : > { %2022 = vst.msk [vmem:[#allocation2 + $0x80] sm:$0xf] %vm1958_vm15, %v1923_v19  ;;  %v3750_v21 = vsel %vm2427_vm2, %v5392_v17, 0  ;;  %v2246_v19 = vld [vmem:[#allocation2 + $0x3c] sm:$0xf] }
 0x1ea   : > { %2240 = vst [vmem:[#allocation2 + $0x2c] sm:$0xf] %v2239_v22  ;;  %3753 = vmatpush.bf16.msrb.mxu3 %v3750_v21  ;;  %v5709_v22 = vld [vmem:[%s8231_s3 + $0x80] sm:$0xff]  ;;  %v3102_v21 = vld [vmem:[%s7182_s26 + $0x10] sm:$0xff] }
 0x1eb   : > { %4197 = vmatpush.bf16.msrb.mxu1 %v5709_v22  ;;  %3136 = vrot.lane.b32.xlu0 %v3102_v21, %s6017_s11 }
 0x1ee   : > { %v2127_v56 = vpop.permute.xlu1 %2126  ;;  %v2147_v8 = vpop.permute.xlu2 %2146  ;;  %3754 = vmatpush.bf16.msrb.mxu3 %v5682_v25  ;;  %v3101_v25 = vld [vmem:[%s7182_s26 + $0x8] sm:$0xff] }
 0x1ef   : > { %2225 = vst.msk [vmem:[#allocation2 + $0x10] sm:$0xf] %vm2218_vm5, %v2127_v56  ;;  %v2125_v54 = vpop.permute.xlu0 %2124  ;;  %4198 = vmatpush.bf16.msrb.mxu1 %v5708_v57  ;;  %v2282_v32 = vld [vmem:[#allocation2 + $0x84] sm:$0xf]  ;;  %3134 = vrot.lane.b32.xlu2 %v3101_v25, %s6017_s11 }
 0x1f0   : > { %v2223_v34 = vsel %vm6996_vm6, %v2125_v54, %v2222_v33  ;;  %2245 = vst.msk [vmem:[#allocation2 + $0x38] sm:$0xf] %vm2218_vm5, %v2147_v8  ;;  %v2254_v8 = vld [vmem:[#allocation2 + $0x4c] sm:$0xf] }
 0x1f1   : > { %2224 = vst [vmem:[#allocation2 + $0xc] sm:$0xf] %v2223_v34 }
 0x1f2   : > { %3755 = vmatpush.bf16.msrb.mxu3 %v5681_v27  ;;  %v3105_v27 = vld [vmem:[%s7182_s26 + $0x28] sm:$0xff] }
 0x1f3   : > { %4199 = vmatpush.bf16.msrb.mxu1 %v5707_v36  ;;  %3142 = vrot.lane.b32.xlu0 %v3105_v27, %s6017_s11 }
 0x1f6   : > { %v2133_v37 = vpop.permute.xlu1 %2132  ;;  %v2153_v41 = vpop.permute.xlu2 %2152  ;;  %v5626_v9 = vld [vmem:[#allocation2 + $0x10] sm:$0xff] }
 0x1f7   : > { %v2231_v38 = vsel %vm6996_vm6, %v2133_v37, %v2230_v28  ;;  %v2131_v39 = vpop.permute.xlu0 %2130  ;;  %v2251_v13 = vsel %vm6996_vm6, %v2153_v41, %v2250_v6  ;;  %v5640_v11 = vld [vmem:[#allocation2 + $0x10] sm:$0xff]  ;;  %v5663_v41 = vld [vmem:[%s8231_s3 + $0x78] sm:$0xff] }
 0x1f8   : > { %2232 = vst [vmem:[#allocation2 + $0x1c] sm:$0xf] %v2231_v38  ;;  %v5625_v55 = vld [vmem:[#allocation2 + $0x8] sm:$0xff]  ;;  %v5680_v6 = vld [vmem:[%s8231_s3 + $0x18] sm:$0xff]  ;;  %2878 = vmatpush.bf16.msrb.mxu2 %v5663_v41  ;;  %v5679_v38 = vld [vmem:[%s8231_s3 + $0x10] sm:$0xff] }
 0x1f9   : > { %v5639_v12 = vld [vmem:[#allocation2 + $0x8] sm:$0xff]  ;;  %2229 = vst.msk [vmem:[#allocation2 + $0x18] sm:$0xf] %vm2218_vm5, %v2131_v39  ;;  %5162 = vmatmul.msk.bf16.gmra.mxu0 %vm2402_vm4, %v5625_v55  ;;  %3756 = vmatpush.bf16.msrb.mxu3 %v5680_v6 }
 0x1fa   : > { %2252 = vst [vmem:[#allocation2 + $0x44] sm:$0xf] %v2251_v13  ;;  %5243 = vmatmul.msk.bf16.vlgmr.msra.gmra.mxu1 %vm2402_vm4, %v5639_v12  ;;  %v3109_v6 = vld [vmem:[%s7182_s26 + $0x48] sm:$0xff] }
 0x1fc   : > { %2879 = vmatpush.bf16.msrb.mxu2 %v5662_v42 }
 0x1fd   : > { %3757 = vmatpush.bf16.msrb.mxu3 %v5679_v38 }
 0x1fe   : > { %v2139_v48 = vpop.permute.xlu1 %2138  ;;  %v2159_v49 = vpop.permute.xlu2 %2158 }
 0x1ff   : > { %2237 = vst.msk [vmem:[#allocation2 + $0x28] sm:$0xf] %vm2218_vm5, %v2139_v48  ;;  %v2137_v50 = vpop.permute.xlu0 %2136  ;;  %v2266_v48 = vld [vmem:[#allocation2 + $0x64] sm:$0xf] }
 0x200   : > { %v2235_v53 = vsel %vm6996_vm6, %v2137_v50, %v2234_v62  ;;  %2257 = vst.msk [vmem:[#allocation2 + $0x50] sm:$0xf] %vm2218_vm5, %v2159_v49  ;;  %v5627_v3 = vld [vmem:[#allocation2 + $0x18] sm:$0xff] }
 0x201   : > { %2236 = vst [vmem:[#allocation2 + $0x24] sm:$0xf] %v2235_v53  ;;  %v5641_v28 = vld [vmem:[#allocation2 + $0x18] sm:$0xff]  ;;  %3758 = vmatpush.bf16.msrb.mxu3 %v5678_v45 }
 0x202   : > { %v5655_v17 = vld [vmem:[#allocation2 + $0x18] sm:$0xff] }
 0x203   : > { %v3111_v45 = vld [vmem:[%s7182_s26 + $0x58] sm:$0xff] }
 0x205   : > { %3759 = vmatpush.bf16.msrb.mxu3 %v5677_v46  ;;  %v5706_v46 = vld [vmem:[#allocation2 + $0x88] sm:$0xff] }
 0x206   : > { %v2145_v61 = vpop.permute.xlu1 %2144  ;;  %v2165_v63 = vpop.permute.xlu2 %2164  ;;  %v5643_v1 = vld [vmem:[#allocation2 + $0x28] sm:$0xff] }
 0x207   : > { %v2243_v2 = vsel %vm6996_vm6, %v2145_v61, %v2242_v30  ;;  %v2143_v4 = vpop.permute.xlu0 %2142  ;;  %v2263_v5 = vsel %vm6996_vm6, %v2165_v63, %v2262_v0  ;;  %5247 = vmatmul.msk.bf16.vlgmr.msra.gmra.mxu3 %vm2402_vm4, %v5643_v1  ;;  %v5629_v37 = vld [vmem:[#allocation2 + $0x28] sm:$0xff]  ;;  %v2278_v30 = vld [vmem:[#allocation2 + $0x7c] sm:$0xf] }
 0x208   : > { %2244 = vst [vmem:[#allocation2 + $0x34] sm:$0xf] %v2243_v2  ;;  %v5628_v10 = vld [vmem:[#allocation2 + $0x20] sm:$0xff] }
 0x209   : > { %2241 = vst.msk [vmem:[#allocation2 + $0x30] sm:$0xf] %vm2218_vm5, %v2143_v4  ;;  %5163 = vmatmul.msk.bf16.gmra.mxu0 %vm2402_vm4, %v5626_v9  ;;  %5165 = vmatmul.msk.bf16.vlgmr.msra.gmra.mxu2 %vm2402_vm4, %v5628_v10  ;;  %v5642_v53 = vld [vmem:[#allocation2 + $0x20] sm:$0xff] }
 0x20a   : > { %2264 = vst [vmem:[#allocation2 + $0x5c] sm:$0xf] %v2263_v5  ;;  %5244 = vmatmul.msk.bf16.gmra.mxu1 %vm2402_vm4, %v5640_v11  ;;  %v5654_v11 = vld [vmem:[#allocation2 + $0x10] sm:$0xff]  ;;  %v5656_v22 = vld [vmem:[#allocation2 + $0x20] sm:$0xff] }
 0x20e   : > { %v2151_v18 = vpop.permute.xlu1 %2150  ;;  %v2171_v44 = vpop.permute.xlu2 %2170 }
 0x20f   : > { %2249 = vst.msk [vmem:[#allocation2 + $0x40] sm:$0xf] %vm2218_vm5, %v2151_v18  ;;  %v2149_v43 = vpop.permute.xlu0 %2148 }
 0x210   : > { %v2247_v23 = vsel %vm6996_vm6, %v2149_v43, %v2246_v19  ;;  %2269 = vst.msk [vmem:[#allocation2 + $0x68] sm:$0xf] %vm2218_vm5, %v2171_v44  ;;  %v5644_v54 = vld [vmem:[#allocation2 + $0x30] sm:$0xff]  ;;  %v3103_v43 = vld [vmem:[%s7182_s26 + $0x18] sm:$0xff] }
 0x211   : > { %2248 = vst [vmem:[#allocation2 + $0x3c] sm:$0xf] %v2247_v23  ;;  %v5630_v62 = vld [vmem:[#allocation2 + $0x30] sm:$0xff]  ;;  %3138 = vrot.lane.b32.xlu1 %v3103_v43, %s6017_s11 }
 0x216   : > { %v2157_v56 = vpop.permute.xlu1 %2156  ;;  %v2177_v26 = vpop.permute.xlu2 %2176  ;;  %v5646_v63 = vld [vmem:[#allocation2 + $0x40] sm:$0xff] }
 0x217   : > { %v2255_v33 = vsel %vm6996_vm6, %v2157_v56, %v2254_v8  ;;  %v2155_v34 = vpop.permute.xlu0 %2154  ;;  %v2275_v35 = vsel %vm6996_vm6, %v2177_v26, %v2274_v29  ;;  %5248 = vmatmul.msk.bf16.gmra.mxu3 %vm2402_vm4, %v5644_v54  ;;  %v5669_v10 = vld [vmem:[#allocation2 + $0x40] sm:$0xff]  ;;  %v5657_v56 = vld [vmem:[#allocation2 + $0x28] sm:$0xff]  ;;  %v3106_v29 = vld [vmem:[%s7182_s26 + $0x30] sm:$0xff] }
 0x218   : > { %2256 = vst [vmem:[#allocation2 + $0x4c] sm:$0xf] %v2255_v33  ;;  %v5645_v49 = vld [vmem:[#allocation2 + $0x38] sm:$0xff]  ;;  %v3104_v33 = vld [vmem:[%s7182_s26 + $0x20] sm:$0xff] }
 0x219   : > { %2253 = vst.msk [vmem:[#allocation2 + $0x48] sm:$0xf] %vm2218_vm5, %v2155_v34  ;;  %5164 = vmatmul.msk.bf16.gmra.mxu0 %vm2402_vm4, %v5627_v3  ;;  %5166 = vmatmul.msk.bf16.gmra.mxu2 %vm2402_vm4, %v5629_v37  ;;  %v5631_v2 = vld [vmem:[#allocation2 + $0x38] sm:$0xff]  ;;  %v5658_v34 = vld [vmem:[#allocation2 + $0x30] sm:$0xff]  ;;  %v3108_v37 = vld [vmem:[%s7182_s26 + $0x40] sm:$0xff] }
 0x21a   : > { %2276 = vst [vmem:[#allocation2 + $0x74] sm:$0xf] %v2275_v35  ;;  %5245 = vmatmul.msk.bf16.gmra.mxu1 %vm2402_vm4, %v5641_v28  ;;  %3144 = vrot.lane.b32.xlu1 %v3106_v29, %s6017_s11  ;;  %v5659_v38 = vld [vmem:[#allocation2 + $0x38] sm:$0xff] }
 0x21b   : > { %3140 = vrot.lane.b32.xlu2 %v3104_v33, %s6017_s11  ;;  %3148 = vrot.lane.b32.xlu0 %v3108_v37, %s6017_s11 }
 0x21e   : > { %v2163_v39 = vpop.permute.xlu1 %2162  ;;  %v2183_v12 = vpop.permute.xlu2 %2182 }
 0x21f   : > { %2261 = vst.msk [vmem:[#allocation2 + $0x58] sm:$0xf] %vm2218_vm5, %v2163_v39  ;;  %v2161_v13 = vpop.permute.xlu0 %2160 }
 0x220   : > { %v2259_v55 = vsel %vm6996_vm6, %v2161_v13, %v2258_v40  ;;  %2281 = vst.msk [vmem:[#allocation2 + $0x80] sm:$0xf] %vm2218_vm5, %v2183_v12  ;;  %v5684_v52 = vld [vmem:[#allocation2 + $0x48] sm:$0xff] }
 0x221   : > { %2260 = vst [vmem:[#allocation2 + $0x54] sm:$0xf] %v2259_v55  ;;  %v5670_v16 = vld [vmem:[#allocation2 + $0x48] sm:$0xff]  ;;  %v3107_v55 = vld [vmem:[%s7182_s26 + $0x38] sm:$0xff] }
 0x222   : > { %3150 = vrot.lane.b32.xlu1 %v3109_v6, %s6017_s11 }
 0x223   : > { %3146 = vrot.lane.b32.xlu2 %v3107_v55, %s6017_s11  ;;  %3154 = vrot.lane.b32.xlu0 %v3111_v45, %s6017_s11 }
 0x226   : > { %v2169_v47 = vpop.permute.xlu1 %2168  ;;  %v5686_v14 = vld [vmem:[#allocation2 + $0x58] sm:$0xff] }
 0x227   : > { %v2267_v20 = vsel %vm6996_vm6, %v2169_v47, %v2266_v48  ;;  %v2167_v50 = vpop.permute.xlu0 %2166  ;;  %5249 = vmatmul.msk.bf16.gmra.mxu3 %vm2402_vm4, %v5645_v49  ;;  %v5700_v15 = vld [vmem:[#allocation2 + $0x58] sm:$0xff]  ;;  %v5660_v47 = vld [vmem:[#allocation2 + $0x40] sm:$0xff] }
 0x228   : > { %2268 = vst [vmem:[#allocation2 + $0x64] sm:$0xf] %v2267_v20  ;;  %v5685_v4 = vld [vmem:[#allocation2 + $0x50] sm:$0xff]  ;;  %v5672_v57 = vld [vmem:[#allocation2 + $0x58] sm:$0xff]  ;;  %v3112_v49 = vld [vmem:[%s7182_s26 + $0x60] sm:$0xff] }
 0x229   : > { %2265 = vst.msk [vmem:[#allocation2 + $0x60] sm:$0xf] %vm2218_vm5, %v2167_v50  ;;  %5167 = vmatmul.msk.bf16.gmra.mxu2 %vm2402_vm4, %v5630_v62  ;;  %5475 = vmatmul.msk.bf16.vlgmr.msrb.gmra.mxu0 %vm2402_vm4, %v5684_v52  ;;  %v5699_v5 = vld [vmem:[#allocation2 + $0x50] sm:$0xff]  ;;  %v5661_v52 = vld [vmem:[#allocation2 + $0x48] sm:$0xff] }
 0x22a   : > { %5246 = vmatmul.msk.bf16.gmra.mxu1 %vm2402_vm4, %v5642_v53  ;;  %v5671_v19 = vld [vmem:[#allocation2 + $0x50] sm:$0xff]  ;;  %3156 = vrot.lane.b32.xlu1 %v3112_v49, %s6017_s11  ;;  %v3113_v53 = vld [vmem:[%s7182_s26 + $0x68] sm:$0xff] }
 0x22b   : > { %v3110_v20 = vld [vmem:[%s7182_s26 + $0x50] sm:$0xff] }
 0x22c   : > { %3152 = vrot.lane.b32.xlu2 %v3110_v20, %s6017_s11 }
 0x22e   : > { %v2175_v58 = vpop.permute.xlu1 %2174 }
 0x22f   : > { %2273 = vst.msk [vmem:[#allocation2 + $0x70] sm:$0xf] %vm2218_vm5, %v2175_v58  ;;  %v2173_v59 = vpop.permute.xlu0 %2172 }
 0x230   : > { %v2271_v60 = vsel %vm6996_vm6, %v2173_v59, %v2270_v51  ;;  %v5687_v18 = vld [vmem:[#allocation2 + $0x60] sm:$0xff]  ;;  %v2440_v59 = vpop.f32.mrf.mxu0 }
 0x231   : > { %2272 = vst [vmem:[#allocation2 + $0x6c] sm:$0xf] %v2271_v60  ;;  %v5701_v44 = vld [vmem:[#allocation2 + $0x60] sm:$0xff]  ;;  %v3114_v60 = vld [vmem:[%s7182_s26 + $0x70] sm:$0xff] }
 0x232   : > { %v5673_v54 = vld [vmem:[#allocation2 + $0x60] sm:$0xff]  ;;  %3160 = vrot.lane.b32.xlu0 %v3114_v60, %s6017_s11 }
 0x234   : > { %3158 = vrot.lane.b32.xlu2 %v3113_v53, %s6017_s11 }
 0x236   : > { %v2181_v61 = vpop.permute.xlu1 %2180  ;;  %v5689_v8 = vld [vmem:[#allocation2 + $0x70] sm:$0xff] }
 0x237   : > { %v2279_v0 = vsel %vm6996_vm6, %v2181_v61, %v2278_v30  ;;  %v2179_v1 = vpop.permute.xlu0 %2178  ;;  %5250 = vmatmul.msk.bf16.gmra.mxu3 %vm2402_vm4, %v5646_v63  ;;  %v5703_v26 = vld [vmem:[#allocation2 + $0x70] sm:$0xff]  ;;  %v2286_v63 = vlaneseq }
 0x238   : > { %2280 = vst [vmem:[#allocation2 + $0x7c] sm:$0xf] %v2279_v0  ;;  %v5688_v23 = vld [vmem:[#allocation2 + $0x68] sm:$0xff]  ;;  %v5675_v42 = vld [vmem:[#allocation2 + $0x70] sm:$0xff]  ;;  %v2442_v0 = vpop.f32.mrf.mxu0 }
 0x239   : > { %2277 = vst.msk [vmem:[#allocation2 + $0x78] sm:$0xf] %vm2218_vm5, %v2179_v1  ;;  %5168 = vmatmul.msk.bf16.gmra.mxu2 %vm2402_vm4, %v5631_v2  ;;  %5476 = vmatmul.msk.bf16.gmra.mxu0 %vm2402_vm4, %v5685_v4  ;;  %v5702_v24 = vld [vmem:[#allocation2 + $0x68] sm:$0xff]  ;;  %v3115_v1 = vld [vmem:[%s7182_s26 + $0x78] sm:$0xff]  ;;  %v2287_v2 = vand.u32 127, %v2286_v63 }
 0x23a   : > { %5557 = vmatmul.msk.bf16.vlgmr.msrb.gmra.mxu1 %vm2402_vm4, %v5699_v5  ;;  %v5674_v41 = vld [vmem:[#allocation2 + $0x68] sm:$0xff]  ;;  %3162 = vrot.lane.b32.xlu1 %v3115_v1, %s6017_s11  ;;  %v7263_v5 = vld [vmem:[%s8232_s4] ss:$0 sm:$0xff] }
 0x23b   : > { %vm2288_vm7 = vcmp.ge.s32.totalorder %v2287_v2, 64  ;;  %vm2289_vm8 = vcmp.lt.s32.totalorder %v2287_v2, 96 }
 0x23c   : > { %vm7266_vm9 = vmand %vm2288_vm7, %vm2289_vm8 }
 0x23f   : > { %v2185_v7 = vpop.permute.xlu0 %2184 }
 0x240   : > { %v2283_v9 = vsel %vm6996_vm6, %v2185_v7, %v2282_v32  ;;  %v5690_v35 = vld [vmem:[#allocation2 + $0x78] sm:$0xff] }
 0x241   : > { %2284 = vst [vmem:[#allocation2 + $0x84] sm:$0xf] %v2283_v9  ;;  %v5704_v36 = vld [vmem:[#allocation2 + $0x78] sm:$0xff] }
 0x242   : > { %v5676_v62 = vld [vmem:[#allocation2 + $0x78] sm:$0xff] }
 0x247   : > { %5393 = vmatmul.msk.bf16.vlgmr.msrb.gmra.mxu3 %vm2402_vm4, %v5669_v10 }
 0x248   : > { %v5691_v39 = vld [vmem:[#allocation2 + $0x80] sm:$0xff] }
 0x249   : > { %5325 = vmatmul.msk.bf16.vlgmr.msrb.gmra.mxu2 %vm2402_vm4, %v5654_v11  ;;  %5477 = vmatmul.msk.bf16.gmra.mxu0 %vm2402_vm4, %v5686_v14  ;;  %v5705_v13 = vld [vmem:[#allocation2 + $0x80] sm:$0xff] }
 0x24a   : > { %5558 = vmatmul.msk.bf16.gmra.mxu1 %vm2402_vm4, %v5700_v15 }
 0x257   : > { %5394 = vmatmul.msk.bf16.gmra.mxu3 %vm2402_vm4, %v5670_v16 }
 0x259   : > { %5326 = vmatmul.msk.bf16.gmra.mxu2 %vm2402_vm4, %v5655_v17  ;;  %5478 = vmatmul.msk.bf16.gmra.mxu0 %vm2402_vm4, %v5687_v18 }
 0x25a   : > { %5559 = vmatmul.msk.bf16.gmra.mxu1 %vm2402_vm4, %v5701_v44 }
 0x267   : > { %5395 = vmatmul.msk.bf16.gmra.mxu3 %vm2402_vm4, %v5671_v19 }
 0x269   : > { %5327 = vmatmul.msk.bf16.gmra.mxu2 %vm2402_vm4, %v5656_v22  ;;  %5479 = vmatmul.msk.bf16.gmra.mxu0 %vm2402_vm4, %v5688_v23 }
 0x26a   : > { %5560 = vmatmul.msk.bf16.gmra.mxu1 %vm2402_vm4, %v5702_v24 }
 0x276   : > { %v2445_v11 = vpop.f32.mrf.mxu0 }
 0x277   : > { %5396 = vmatmul.msk.bf16.gmra.mxu3 %vm2402_vm4, %v5672_v57  ;;  %v2644_v58 = vpop.f32.mrf.mxu1 }
 0x278   : > { %v2700_v4 = vadd.f32 %v2644_v58, %v2440_v59 }
 0x279   : > { %5328 = vmatmul.msk.bf16.gmra.mxu2 %vm2402_vm4, %v5657_v56  ;;  %5480 = vmatmul.msk.bf16.gmra.mxu0 %vm2402_vm4, %v5689_v8 }
 0x27a   : > { %5561 = vmatmul.msk.bf16.gmra.mxu1 %vm2402_vm4, %v5703_v26 }
 0x27e   : > { %v2447_v19 = vpop.f32.mrf.mxu0 }
 0x27f   : > { %v2646_v61 = vpop.f32.mrf.mxu1 }
 0x280   : > { %v2701_v31 = vadd.f32 %v2646_v61, %v2442_v0 }
 0x287   : > { %5397 = vmatmul.msk.bf16.gmra.mxu3 %vm2402_vm4, %v5673_v54  ;;  %v2649_v9 = vpop.f32.mrf.mxu1 }
 0x288   : > { %v2702_v23 = vadd.f32 %v2649_v9, %v2445_v11 }
 0x289   : > { %5329 = vmatmul.msk.bf16.gmra.mxu2 %vm2402_vm4, %v5658_v34  ;;  %5481 = vmatmul.msk.bf16.gmra.mxu0 %vm2402_vm4, %v5690_v35 }
 0x28a   : > { %5562 = vmatmul.msk.bf16.gmra.mxu1 %vm2402_vm4, %v5704_v36  ;;  %v2450_v36 = vpop.f32.mrf.mxu0  ;;  %v2664_v61 = vpop.f32.mrf.mxu3 }
 0x28c   : > { %v7217_v3 = vpop.f32.mrf.mxu2 }
 0x28f   : > { %v2651_v21 = vpop.f32.mrf.mxu1 }
 0x290   : > { %v2703_v34 = vadd.f32 %v2651_v21, %v2447_v19 }
 0x294   : > { %v7221_v28 = vpop.f32.mrf.mxu2 }
 0x297   : > { %5398 = vmatmul.msk.bf16.gmra.mxu3 %vm2402_vm4, %v5674_v41  ;;  %v2654_v54 = vpop.f32.mrf.mxu1 }
 0x298   : > { %v2704_v45 = vadd.f32 %v2654_v54, %v2450_v36 }
 0x299   : > { %5330 = vmatmul.msk.bf16.gmra.mxu2 %vm2402_vm4, %v5659_v38  ;;  %5482 = vmatmul.msk.bf16.gmra.mxu0 %vm2402_vm4, %v5691_v39 }
 0x29a   : > { %5563 = vmatmul.msk.bf16.gmra.mxu1 %vm2402_vm4, %v5705_v13 }
 0x29c   : > { %v7229_v40 = vpop.f32.mrf.mxu2 }
 0x2a4   : > { %v7233_v12 = vpop.f32.mrf.mxu2 }
 0x2a7   : > { %5399 = vmatmul.msk.bf16.gmra.mxu3 %vm2402_vm4, %v5675_v42 }
 0x2a9   : > { %5331 = vmatmul.msk.bf16.gmra.mxu2 %vm2402_vm4, %v5660_v47  ;;  %v2656_v47 = vpop.f32.mrf.mxu1 }
 0x2aa   : > { %5564 = vmatmul.msk.bf16.gmra.mxu1 %vm2402_vm4, %v5706_v46 }
 0x2ac   : > { %v7240_v48 = vpop.f32.mrf.mxu2 }
 0x2b4   : > { %v7246_v50 = vpop.f32.mrf.mxu2 }
 0x2b7   : > { %5400 = vmatmul.msk.bf16.gmra.mxu3 %vm2402_vm4, %v5676_v62 }
 0x2b9   : > { %5332 = vmatmul.msk.bf16.gmra.mxu2 %vm2402_vm4, %v5661_v52  ;;  %v2452_v52 = vpop.f32.mrf.mxu0 }
 0x2ba   : > { %v2705_v0 = vadd.f32 %v2656_v47, %v2452_v52 }
 0x2bc   : > { %v7252_v51 = vpop.f32.mrf.mxu2 }
 0x2c1   : > { %v2455_v11 = vpop.f32.mrf.mxu0 }
 0x2c4   : > { %v7256_v30 = vpop.f32.mrf.mxu2 }
 0x2cc   : > { %v2881_v7 = vpop.f32.mrf.mxu2 }
 0x2cd   : > { %v2937_v32 = vadd.f32 %v2881_v7, %v2700_v4 }
 0x2cf   : > { %v2988_v10 = vadd.f32 %v7263_v5, %v2937_v32  ;;  %v2659_v32 = vpop.f32.mrf.mxu1 }
 0x2d1   : > { %v3004_v15 = vmul.f32 0.5, %v2988_v10 }
 0x2d3   : > { %v3020_v16 = vsel %vm7266_vm9, %v2988_v10, %v3004_v15 }
 0x2d4   : > { %v2883_v17 = vpop.f32.mrf.mxu2  ;;  %5786 = vtanh.f32 %v3020_v16 }
 0x2d5   : > { %v2938_v18 = vadd.f32 %v2883_v17, %v2701_v31  ;;  %v2706_v17 = vadd.f32 %v2659_v32, %v2455_v11 }
 0x2d7   : > { %v2989_v44 = vadd.f32 %v7263_v5, %v2938_v18 }
 0x2d9   : > { %v3005_v43 = vmul.f32 0.5, %v2989_v44 }
 0x2da   : > { %v5787_v22 = vpop.eup %5786 }
 0x2db   : > { %v3021_v24 = vsel %vm7266_vm9, %v2989_v44, %v3005_v43  ;;  %v3052_v57 = vmul.f32 0.5, %v5787_v22  ;;  %v2666_v44 = vpop.f32.mrf.mxu3 }
 0x2dc   : > { %v2886_v25 = vpop.f32.mrf.mxu2  ;;  %5788 = vtanh.f32 %v3021_v24  ;;  %v2661_v24 = vpop.f32.mrf.mxu1 }
 0x2dd   : > { %v2939_v27 = vadd.f32 %v2886_v25, %v2702_v23  ;;  %v3068_v56 = vadd.f32 0.5, %v3052_v57 }
 0x2df   : > { %v2990_v8 = vadd.f32 %v7263_v5, %v2939_v27  ;;  %v7278_v26 = vsel %vm7266_vm9, %v5787_v22, %v3068_v56  ;;  %v2457_v27 = vpop.f32.mrf.mxu0 }
 0x2e0   : > { %3212 = vrot.lane.b32.xlu2 %v7278_v26, %s6018_s14 }
 0x2e1   : > { %v3006_v29 = vmul.f32 0.5, %v2990_v8 }
 0x2e2   : > { %v5789_v33 = vpop.eup %5788 }
 0x2e3   : > { %v3022_v35 = vsel %vm7266_vm9, %v2990_v8, %v3006_v29  ;;  %v3053_v41 = vmul.f32 0.5, %v5789_v33  ;;  %v2707_v8 = vadd.f32 %v2661_v24, %v2457_v27 }
 0x2e4   : > { %v2888_v37 = vpop.f32.mrf.mxu2  ;;  %5790 = vtanh.f32 %v3022_v35  ;;  %v2669_v35 = vpop.f32.mrf.mxu3 }
 0x2e5   : > { %v2940_v6 = vadd.f32 %v2888_v37, %v2703_v34  ;;  %v3069_v38 = vadd.f32 0.5, %v3053_v41  ;;  %v2710_v32 = vadd.f32 %v2669_v35, %v7229_v40 }
 0x2e7   : > { %v2991_v39 = vadd.f32 %v7263_v5, %v2940_v6  ;;  %v7287_v13 = vsel %vm7266_vm9, %v5789_v33, %v3069_v38 }
 0x2e8   : > { %3214 = vrot.lane.b32.xlu0 %v7287_v13, %s6018_s14 }
 0x2e9   : > { %v3007_v55 = vmul.f32 0.5, %v2991_v39 }
 0x2ea   : > { %v5791_v42 = vpop.eup %5790 }
 0x2eb   : > { %v3023_v46 = vsel %vm7266_vm9, %v2991_v39, %v3007_v55  ;;  %v3054_v20 = vmul.f32 0.5, %v5791_v42  ;;  %v2708_v39 = vadd.f32 %v2664_v61, %v7217_v3 }
 0x2ec   : > { %v2891_v49 = vpop.f32.mrf.mxu2  ;;  %5792 = vtanh.f32 %v3023_v46 }
 0x2ed   : > { %v2941_v62 = vadd.f32 %v2891_v49, %v2704_v45  ;;  %v3070_v53 = vadd.f32 0.5, %v3054_v20  ;;  %v2671_v20 = vpop.f32.mrf.mxu3 }
 0x2ef   : > { %v2992_v58 = vadd.f32 %v7263_v5, %v2941_v62  ;;  %v7296_v59 = vsel %vm7266_vm9, %v5791_v42, %v3070_v53  ;;  %v2709_v53 = vadd.f32 %v2666_v44, %v7221_v28 }
 0x2f0   : > { %3216 = vrot.lane.b32.xlu1 %v7296_v59, %s6018_s14 }
 0x2f1   : > { %v3008_v60 = vmul.f32 0.5, %v2992_v58 }
 0x2f2   : > { %v5793_v63 = vpop.eup %5792 }
 0x2f3   : > { %v3024_v1 = vsel %vm7266_vm9, %v2992_v58, %v3008_v60  ;;  %v3055_v4 = vmul.f32 0.5, %v5793_v63 }
 0x2f4   : > { %v2893_v2 = vpop.f32.mrf.mxu2  ;;  %5794 = vtanh.f32 %v3024_v1 }
 0x2f5   : > { %v2942_v7 = vadd.f32 %v2893_v2, %v2705_v0  ;;  %v3071_v9 = vadd.f32 0.5, %v3055_v4 }
 0x2f7   : > { %v2993_v10 = vadd.f32 %v7263_v5, %v2942_v7  ;;  %v7305_v15 = vsel %vm7266_vm9, %v5793_v63, %v3071_v9  ;;  %v2674_v7 = vpop.f32.mrf.mxu3 }
 0x2f8   : > { %3218 = vrot.lane.b32.xlu2 %v7305_v15, %s6018_s14 }
 0x2f9   : > { %v3009_v31 = vmul.f32 0.5, %v2993_v10 }
 0x2fa   : > { %v5795_v16 = vpop.eup %5794 }
 0x2fb   : > { %v3025_v18 = vsel %vm7266_vm9, %v2993_v10, %v3009_v31  ;;  %v3056_v43 = vmul.f32 0.5, %v5795_v16 }
 0x2fc   : > { %v2896_v21 = vpop.f32.mrf.mxu2  ;;  %5796 = vtanh.f32 %v3025_v18  ;;  %v7351_v18 = vpop.permute.xlu2 %3134 }
 0x2fd   : > { %v2943_v19 = vadd.f32 %v2896_v21, %v2706_v17  ;;  %v3072_v22 = vadd.f32 0.5, %v3056_v43  ;;  %v2711_v43 = vadd.f32 %v2671_v20, %v7233_v12 }
 0x2ff   : > { %v2994_v23 = vadd.f32 %v7263_v5, %v2943_v19  ;;  %v7314_v25 = vsel %vm7266_vm9, %v5795_v16, %v3072_v22  ;;  %v2676_v22 = vpop.f32.mrf.mxu3 }
 0x300   : > { %3220 = vrot.lane.b32.xlu0 %v7314_v25, %s6018_s14 }
 0x301   : > { %v3010_v57 = vmul.f32 0.5, %v2994_v23 }
 0x302   : > { %v5797_v56 = vpop.eup %5796 }
 0x303   : > { %v3026_v29 = vsel %vm7266_vm9, %v2994_v23, %v3010_v57  ;;  %v3057_v33 = vmul.f32 0.5, %v5797_v56 }
 0x304   : > { %v2898_v54 = vpop.f32.mrf.mxu2  ;;  %5798 = vtanh.f32 %v3026_v29 }
 0x305   : > { %v2944_v34 = vadd.f32 %v2898_v54, %v2707_v8  ;;  %v3073_v36 = vadd.f32 0.5, %v3057_v33  ;;  %v7363_v8 = vpop.permute.xlu2 %3140  ;;  %v2712_v33 = vadd.f32 %v2674_v7, %v7240_v48 }
 0x307   : > { %v2995_v37 = vadd.f32 %v7263_v5, %v2944_v34  ;;  %v7323_v41 = vsel %vm7266_vm9, %v5797_v56, %v3073_v36 }
 0x308   : > { %3222 = vrot.lane.b32.xlu1 %v7323_v41, %s6018_s14 }
 0x309   : > { %v3011_v6 = vmul.f32 0.5, %v2995_v37 }
 0x30a   : > { %v5799_v38 = vpop.eup %5798 }
 0x30b   : > { %v3027_v55 = vsel %vm7266_vm9, %v2995_v37, %v3011_v6  ;;  %v3058_v45 = vmul.f32 0.5, %v5799_v38  ;;  %v2679_v6 = vpop.f32.mrf.mxu3 }
 0x30c   : > { %v2901_v42 = vpop.f32.mrf.mxu2  ;;  %5800 = vtanh.f32 %v3027_v55 }
 0x30d   : > { %v2945_v46 = vadd.f32 %v2901_v42, %v2708_v39  ;;  %v3074_v47 = vadd.f32 0.5, %v3058_v45  ;;  %v7375_v55 = vpop.permute.xlu2 %3146 }
 0x30f   : > { %v2996_v49 = vadd.f32 %v7263_v5, %v2945_v46  ;;  %v7333_v62 = vsel %vm7266_vm9, %v5799_v38, %v3074_v47  ;;  %v2713_v46 = vadd.f32 %v2676_v22, %v7246_v50  ;;  %v7384_v47 = vpop.permute.xlu1 %3132 }
 0x310   : > { %3224 = vrot.lane.b32.xlu2 %v7333_v62, %s6018_s14 }
 0x311   : > { %v3012_v52 = vmul.f32 0.5, %v2996_v49 }
 0x312   : > { %v5801_v3 = vpop.eup %5800 }
 0x313   : > { %v3028_v58 = vsel %vm7266_vm9, %v2996_v49, %v3012_v52  ;;  %v3059_v61 = vmul.f32 0.5, %v5801_v3  ;;  %v7386_v49 = vpop.permute.xlu0 %3136 }
 0x314   : > { %v2903_v60 = vpop.f32.mrf.mxu2  ;;  %5802 = vtanh.f32 %v3028_v58 }
 0x315   : > { %v2946_v63 = vadd.f32 %v2903_v60, %v2709_v53  ;;  %v3075_v0 = vadd.f32 0.5, %v3059_v61  ;;  %v2681_v61 = vpop.f32.mrf.mxu3 }
 0x317   : > { %v2997_v1 = vadd.f32 %v7263_v5, %v2946_v63  ;;  %v7343_v2 = vsel %vm7266_vm9, %v5801_v3, %v3075_v0  ;;  %v7391_v63 = vpop.permute.xlu2 %3152  ;;  %v7400_v7 = vpop.permute.xlu1 %3138 }
 0x318   : > { %3226 = vrot.lane.b32.xlu0 %v7343_v2, %s6018_s14 }
 0x319   : > { %v3013_v4 = vmul.f32 0.5, %v2997_v1 }
 0x31a   : > { %v5803_v28 = vpop.eup %5802 }
 0x31b   : > { %v3029_v9 = vsel %vm7266_vm9, %v2997_v1, %v3013_v4  ;;  %v3060_v11 = vmul.f32 0.5, %v5803_v28  ;;  %v2714_v4 = vadd.f32 %v2679_v6, %v7252_v51 }
 0x31c   : > { %v2906_v10 = vpop.f32.mrf.mxu2  ;;  %5804 = vtanh.f32 %v3029_v9 }
 0x31d   : > { %v2947_v31 = vadd.f32 %v2906_v10, %v2710_v32  ;;  %v3076_v16 = vadd.f32 0.5, %v3060_v11  ;;  %v7413_v51 = vpop.f32.mrf.mxu3 }
 0x31f   : > { %v2998_v17 = vadd.f32 %v7263_v5, %v2947_v31  ;;  %v7355_v44 = vsel %vm7266_vm9, %v5803_v28, %v3076_v16  ;;  %v7402_v28 = vpop.permute.xlu0 %3142  ;;  %v7418_v22 = vpop.permute.xlu1 %3144 }
 0x320   : > { %3228 = vrot.lane.b32.xlu1 %v7355_v44, %s6018_s14 }
 0x321   : > { %v3014_v21 = vmul.f32 0.5, %v2998_v17 }
 0x322   : > { %v5805_v40 = vpop.eup %5804 }
 0x323   : > { %v3030_v19 = vsel %vm7266_vm9, %v2998_v17, %v3014_v21  ;;  %v3061_v24 = vmul.f32 0.5, %v5805_v40 }
 0x324   : > { %v2908_v23 = vpop.f32.mrf.mxu2  ;;  %5806 = vtanh.f32 %v3030_v19  ;;  %v2715_v19 = vadd.f32 %v2681_v61, %v7256_v30 }
 0x325   : > { %v2948_v57 = vadd.f32 %v2908_v23, %v2711_v43  ;;  %v3077_v27 = vadd.f32 0.5, %v3061_v24 }
 0x327   : > { %v2999_v56 = vadd.f32 %v7263_v5, %v2948_v57  ;;  %v7367_v29 = vsel %vm7266_vm9, %v5805_v40, %v3077_v27  ;;  %v7415_v40 = vpop.permute.xlu2 %3158  ;;  %v7420_v23 = vpop.permute.xlu0 %3148 }
 0x328   : > { %3230 = vrot.lane.b32.xlu2 %v7367_v29, %s6018_s14 }
 0x329   : > { %v3015_v54 = vmul.f32 0.5, %v2999_v56 }
 0x32a   : > { %v5807_v12 = vpop.eup %5806 }
 0x32b   : > { %v3031_v34 = vsel %vm7266_vm9, %v2999_v56, %v3015_v54  ;;  %v3062_v35 = vmul.f32 0.5, %v5807_v12  ;;  %v7424_v56 = vpop.f32.mrf.mxu0 }
 0x32c   : > { %v2911_v36 = vpop.f32.mrf.mxu2  ;;  %5808 = vtanh.f32 %v3031_v34  ;;  %v7427_v34 = vpop.f32.mrf.mxu1 }
 0x32d   : > { %v2949_v37 = vadd.f32 %v2911_v36, %v2712_v33  ;;  %v3078_v38 = vadd.f32 0.5, %v3062_v35 }
 0x32f   : > { %v3000_v39 = vadd.f32 %v7263_v5, %v2949_v37  ;;  %v7379_v42 = vsel %vm7266_vm9, %v5807_v12, %v3078_v38  ;;  %v7435_v37 = vpop.permute.xlu1 %3150  ;;  %v7437_v6 = vpop.permute.xlu0 %3154 }
 0x330   : > { %3232 = vrot.lane.b32.xlu0 %v7379_v42, %s6018_s14 }
 0x331   : > { %v3016_v45 = vmul.f32 0.5, %v3000_v39 }
 0x332   : > { %v5809_v48 = vpop.eup %5808 }
 0x333   : > { %v3032_v20 = vsel %vm7266_vm9, %v3000_v39, %v3016_v45  ;;  %v3063_v3 = vmul.f32 0.5, %v5809_v48 }
 0x334   : > { %v2913_v52 = vpop.f32.mrf.mxu2  ;;  %5810 = vtanh.f32 %v3032_v20  ;;  %v3967_v20 = vpop.f32.mrf.mxu0 }
 0x335   : > { %v2950_v53 = vadd.f32 %v2913_v52, %v2713_v46  ;;  %v3079_v58 = vadd.f32 0.5, %v3063_v3 }
 0x337   : > { %v3001_v60 = vadd.f32 %v7263_v5, %v2950_v53  ;;  %v7395_v50 = vsel %vm7266_vm9, %v5809_v48, %v3079_v58  ;;  %v3763_v48 = vpop.f32.mrf.mxu3  ;;  %v4203_v58 = vpop.f32.mrf.mxu1 }
 0x338   : > { %3234 = vrot.lane.b32.xlu1 %v7395_v50, %s6018_s14  ;;  %v7451_v61 = vpop.permute.xlu0 %3160 }
 0x339   : > { %v3017_v0 = vmul.f32 0.5, %v3001_v60 }
 0x33a   : > { %v5811_v1 = vpop.eup %5810  ;;  %v3213_v45 = vpop.permute.xlu2 %3212 }
 0x33b   : > { %v3033_v32 = vsel %vm7266_vm9, %v3001_v60, %v3017_v0  ;;  %v3064_v10 = vmul.f32 0.5, %v5811_v1  ;;  %v3260_v52 = vmul.f32 %v3213_v45, %v7278_v26  ;;  %v7449_v60 = vpop.permute.xlu1 %3156 }
 0x33c   : > { %v2916_v9 = vpop.f32.mrf.mxu2  ;;  %5812 = vtanh.f32 %v3033_v32 }
 0x33d   : > { %v2951_v11 = vadd.f32 %v2916_v9, %v2714_v4  ;;  %v3080_v31 = vadd.f32 0.5, %v3064_v10 }
 0x33f   : > { %v3002_v16 = vadd.f32 %v7263_v5, %v2951_v11  ;;  %v7409_v17 = vsel %vm7266_vm9, %v5811_v1, %v3080_v31  ;;  %v7453_v32 = vpop.f32.mrf.mxu3  ;;  %v7462_v11 = vpop.f32.mrf.mxu0 }
 0x340   : > { %3236 = vrot.lane.b32.xlu2 %v7409_v17, %s6018_s14 }
 0x341   : > { %v3018_v21 = vmul.f32 0.5, %v3002_v16 }
 0x342   : > { %v5813_v43 = vpop.eup %5812 }
 0x343   : > { %v3034_v24 = vsel %vm7266_vm9, %v3002_v16, %v3018_v21  ;;  %v3065_v27 = vmul.f32 0.5, %v5813_v43  ;;  %v7465_v31 = vpop.permute.xlu1 %3162 }
 0x344   : > { %5814 = vtanh.f32 %v3034_v24  ;;  %v2918_v57 = vpop.f32.mrf.mxu2 }
 0x345   : > { %v2952_v54 = vadd.f32 %v2918_v57, %v2715_v19  ;;  %v3081_v12 = vadd.f32 0.5, %v3065_v27  ;;  %v5567_v19 = vld [vmem:[%s7182_s26 + $0x90] sm:$0xff] }
 0x347   : > { %v3003_v33 = vadd.f32 %v7263_v5, %v2952_v54  ;;  %v7431_v30 = vsel %vm7266_vm9, %v5813_v43, %v3081_v12  ;;  %v7468_v43 = vpop.f32.mrf.mxu1  ;;  %v7472_v24 = vpop.f32.mrf.mxu3  ;;  %v5565_v54 = vld [vmem:[%s7182_s26 + $0x80] sm:$0xff] }
 0x348   : > { %3238 = vrot.lane.b32.xlu0 %v7431_v30, %s6018_s14  ;;  %v7475_v57 = vpop.f32.mrf.mxu0 }
 0x349   : > { %v3019_v35 = vmul.f32 0.5, %v3003_v33 }
 0x34a   : > { %v5815_v36 = vpop.eup %5814 }
 0x34b   : > { %v3035_v38 = vsel %vm7266_vm9, %v3003_v33, %v3019_v35  ;;  %v3066_v39 = vmul.f32 0.5, %v5815_v36  ;;  %v5570_v33 = vld [vmem:[%s7182_s26 + $0xa8] sm:$0xff] }
 0x34c   : > { %5816 = vtanh.f32 %v3035_v38  ;;  %v5566_v38 = vld [vmem:[%s7182_s26 + $0x88] sm:$0xff] }
 0x34d   : > { %v3082_v46 = vadd.f32 0.5, %v3066_v39 }
 0x34f   : > { %v7444_v3 = vsel %vm7266_vm9, %v5815_v36, %v3082_v46  ;;  %v7482_v35 = vpop.f32.mrf.mxu1  ;;  %v3771_v36 = vpop.f32.mrf.mxu3 }
 0x350   : > { %3240 = vrot.lane.b32.xlu1 %v7444_v3, %s6018_s14  ;;  %3292 = vrot.lane.b32.xlu0 %v3260_v52, %s6017_s11  ;;  %v3975_v45 = vpop.f32.mrf.mxu0 }
 0x352   : > { %v5817_v53 = vpop.eup %5816  ;;  %v3219_v1 = vpop.permute.xlu2 %3218 }
 0x353   : > { %v3067_v0 = vmul.f32 0.5, %v5817_v53  ;;  %v3263_v9 = vmul.f32 %v3219_v1, %v7305_v15  ;;  %v4022_v1 = vadd.f32 %v3967_v20, %v3763_v48  ;;  %v5568_v20 = vld [vmem:[%s7182_s26 + $0x98] sm:$0xff] }
 0x355   : > { %v3083_v4 = vadd.f32 0.5, %v3067_v0  ;;  %v5569_v0 = vld [vmem:[%s7182_s26 + $0xa0] sm:$0xff] }
 0x357   : > { %v7458_v10 = vsel %vm7266_vm9, %v5817_v53, %v3083_v4  ;;  %v4211_v52 = vpop.f32.mrf.mxu1 }
 0x358   : > { %3242 = vrot.lane.b32.xlu2 %v7458_v10, %s6018_s14  ;;  %3298 = vrot.lane.b32.xlu0 %v3263_v9, %s6017_s11  ;;  %v7491_v9 = vpop.f32.mrf.mxu3 }
 0x35a   : > { %v3215_v16 = vpop.permute.xlu0 %3214 }
 0x35b   : > { %v3261_v21 = vmul.f32 %v3215_v16, %v7287_v13  ;;  %v5573_v16 = vld [vmem:[%s7182_s26 + $0xc0] sm:$0xff] }
 0x35d   : > { %3294 = vrot.lane.b32.xlu1 %v3261_v21, %s6017_s11  ;;  %v7496_v21 = vpop.f32.mrf.mxu0 }
 0x360   : > { %4454 = vrot.lane.b32.xlu0 %v5567_v19, %s6017_s11  ;;  %v4258_v19 = vadd.f32 %v4203_v58, %v4022_v1  ;;  %v4021_v58 = vadd.f32 %v7424_v56, %v7413_v51 }
 0x362   : > { %v3217_v27 = vpop.permute.xlu1 %3216  ;;  %v4257_v1 = vadd.f32 %v7427_v34, %v4021_v58 }
 0x363   : > { %v3262_v12 = vmul.f32 %v3217_v27, %v7296_v59  ;;  %v7499_v27 = vpop.f32.mrf.mxu1 }
 0x364   : > { %v4305_v56 = vadd.f32 %v7263_v5, %v4257_v1 }
 0x365   : > { %4450 = vrot.lane.b32.xlu1 %v5565_v54, %s6017_s11  ;;  %3296 = vrot.lane.b32.xlu2 %v3262_v12, %s6017_s11  ;;  %v4306_v54 = vadd.f32 %v7263_v5, %v4258_v19 }
 0x368   : > { %4460 = vrot.lane.b32.xlu0 %v5570_v33, %s6017_s11  ;;  %v5576_v33 = vld [vmem:[%s7182_s26 + $0xd8] sm:$0xff] }
 0x36a   : > { %v3225_v39 = vpop.permute.xlu2 %3224 }
 0x36b   : > { %v3266_v46 = vmul.f32 %v3225_v39, %v7333_v62  ;;  %v4322_v39 = vmul.f32 0.5, %v4306_v54 }
 0x36d   : > { %4452 = vrot.lane.b32.xlu2 %v5566_v38, %s6017_s11  ;;  %v3776_v38 = vpop.f32.mrf.mxu3 }
 0x370   : > { %3304 = vrot.lane.b32.xlu0 %v3266_v46, %s6017_s11  ;;  %v3980_v46 = vpop.f32.mrf.mxu0 }
 0x372   : > { %v3221_v53 = vpop.permute.xlu0 %3220 }
 0x373   : > { %v3264_v4 = vmul.f32 %v3221_v53, %v7314_v25  ;;  %v5571_v53 = vld [vmem:[%s7182_s26 + $0xb0] sm:$0xff] }
 0x375   : > { %3300 = vrot.lane.b32.xlu1 %v3264_v4, %s6017_s11  ;;  %4458 = vrot.lane.b32.xlu2 %v5569_v0, %s6017_s11  ;;  %v5572_v0 = vld [vmem:[%s7182_s26 + $0xb8] sm:$0xff]  ;;  %v4338_v4 = vsel %vm7266_vm9, %v4306_v54, %v4322_v39  ;;  %v5575_v54 = vld [vmem:[%s7182_s26 + $0xd0] sm:$0xff] }
 0x376   : > { %5818 = vtanh.f32 %v4338_v4 }
 0x378   : > { %4466 = vrot.lane.b32.xlu0 %v5573_v16, %s6017_s11  ;;  %v4025_v16 = vadd.f32 %v3975_v45, %v3771_v36  ;;  %v3982_v34 = vpop.f32.mrf.mxu0  ;;  %v4321_v36 = vmul.f32 0.5, %v4305_v56 }
 0x37a   : > { %v3223_v48 = vpop.permute.xlu1 %3222  ;;  %v4337_v4 = vsel %vm7266_vm9, %v4305_v56, %v4321_v36 }
 0x37b   : > { %v3265_v12 = vmul.f32 %v3223_v48, %v7323_v41  ;;  %v4216_v48 = vpop.f32.mrf.mxu1  ;;  %5820 = vtanh.f32 %v4337_v4 }
 0x37d   : > { %4456 = vrot.lane.b32.xlu1 %v5568_v20, %s6017_s11  ;;  %3302 = vrot.lane.b32.xlu2 %v3265_v12, %s6017_s11  ;;  %v4261_v20 = vadd.f32 %v4211_v52, %v4025_v16  ;;  %v3778_v12 = vpop.f32.mrf.mxu3  ;;  %v4023_v52 = vadd.f32 %v7462_v11, %v7453_v32 }
 0x37e   : > { %v4028_v58 = vadd.f32 %v3982_v34, %v3778_v12 }
 0x37f   : > { %v4309_v45 = vadd.f32 %v7263_v5, %v4261_v20  ;;  %v4024_v20 = vadd.f32 %v7475_v57, %v7472_v24  ;;  %v4259_v12 = vadd.f32 %v7468_v43, %v4023_v52  ;;  %v4027_v52 = vadd.f32 %v3980_v46, %v3776_v38 }
 0x380   : > { %4472 = vrot.lane.b32.xlu0 %v5576_v33, %s6017_s11 }
 0x381   : > { %v4325_v16 = vmul.f32 0.5, %v4309_v45  ;;  %v4260_v36 = vadd.f32 %v7482_v35, %v4024_v20  ;;  %v4307_v24 = vadd.f32 %v7263_v5, %v4259_v12  ;;  %v5578_v35 = vld [vmem:[%s7182_s26 + $0xe8] sm:$0xff] }
 0x382   : > { %v3231_v19 = vpop.permute.xlu2 %3230 }
 0x383   : > { %v3269_v51 = vmul.f32 %v3231_v19, %v7367_v29  ;;  %v4218_v1 = vpop.f32.mrf.mxu1  ;;  %v4341_v32 = vsel %vm7266_vm9, %v4309_v45, %v4325_v16  ;;  %v4323_v4 = vmul.f32 0.5, %v4307_v24 }
 0x384   : > { %v4264_v19 = vadd.f32 %v4218_v1, %v4028_v58  ;;  %5822 = vtanh.f32 %v4341_v32  ;;  %v5577_v1 = vld [vmem:[%s7182_s26 + $0xe0] sm:$0xff] }
 0x385   : > { %4462 = vrot.lane.b32.xlu1 %v5571_v53, %s6017_s11  ;;  %4464 = vrot.lane.b32.xlu2 %v5572_v0, %s6017_s11  ;;  %v5819_v53 = vpop.eup %5818  ;;  %v5579_v0 = vld [vmem:[%s7182_s26 + $0xf0] sm:$0xff]  ;;  %v3781_v43 = vpop.f32.mrf.mxu3  ;;  %v4339_v46 = vsel %vm7266_vm9, %v4307_v24, %v4323_v4 }
 0x386   : > { %v4312_v11 = vadd.f32 %v7263_v5, %v4264_v19  ;;  %v5821_v58 = vpop.eup %5820 }
 0x388   : > { %3310 = vrot.lane.b32.xlu0 %v3269_v51, %s6017_s11  ;;  %v4370_v51 = vmul.f32 0.5, %v5819_v53  ;;  %v4328_v57 = vmul.f32 0.5, %v4312_v11 }
 0x38a   : > { %v3227_v33 = vpop.permute.xlu0 %3226  ;;  %v4344_v16 = vsel %vm7266_vm9, %v4312_v11, %v4328_v57  ;;  %v4026_v11 = vadd.f32 %v7496_v21, %v7491_v9 }
 0x38b   : > { %v3267_v39 = vmul.f32 %v3227_v33, %v7343_v2  ;;  %v5574_v33 = vld [vmem:[%s7182_s26 + $0xc8] sm:$0xff]  ;;  %v4221_v12 = vpop.f32.mrf.mxu1  ;;  %5824 = vtanh.f32 %v4344_v16 }
 0x38c   : > { %5826 = vtanh.f32 %v4339_v46  ;;  %v5580_v46 = vld [vmem:[%s7182_s26 + $0xf8] sm:$0xff]  ;;  %s4966_s26 = scalar_lea.hbm %s8234_s6, %s5714_s28 }
 0x38d   : > { %4470 = vrot.lane.b32.xlu2 %v5575_v54, %s6017_s11  ;;  %3306 = vrot.lane.b32.xlu1 %v3267_v39, %s6017_s11  ;;  %v4386_v54 = vadd.f32 0.5, %v4370_v51  ;;  %v4308_v39 = vadd.f32 %v7263_v5, %v4260_v36  ;;  %v5823_v51 = vpop.eup %5822  ;;  %s4969_s10 = sshll.u32 %s4966_s26, 4  ;;  %s4970_s10 = int_to_ptr.hbm [resolvable:$true] %s4969_s10 }
 0x38f   : > { %v7545_v45 = vsel %vm7266_vm9, %v5819_v53, %v4386_v54  ;;  %v4324_v20 = vmul.f32 0.5, %v4308_v39  ;;  %v4263_v53 = vadd.f32 %v4216_v48, %v4027_v52 }
 0x390   : > { %4478 = vrot.lane.b32.xlu0 %v5579_v0, %s6017_s11  ;;  %v3985_v0 = vpop.f32.mrf.mxu0 }
 0x391   : > { %v4340_v32 = vsel %vm7266_vm9, %v4308_v39, %v4324_v20  ;;  %v4311_v48 = vadd.f32 %v7263_v5, %v4263_v53  ;;  %v4029_v53 = vadd.f32 %v3985_v0, %v3781_v43 }
 0x392   : > { %v3229_v34 = vpop.permute.xlu1 %3228  ;;  %5828 = vtanh.f32 %v4340_v32 }
 0x393   : > { %v3268_v56 = vmul.f32 %v3229_v34, %v7355_v44  ;;  %v4369_v34 = vmul.f32 0.5, %v5821_v58  ;;  %v4327_v39 = vmul.f32 0.5, %v4311_v48  ;;  %v4223_v21 = vpop.f32.mrf.mxu1 }
 0x395   : > { %3308 = vrot.lane.b32.xlu2 %v3268_v56, %s6017_s11  ;;  %4468 = vrot.lane.b32.xlu1 %v5574_v33, %s6017_s11  ;;  %v4373_v33 = vmul.f32 0.5, %v5823_v51  ;;  %v3783_v56 = vpop.f32.mrf.mxu3  ;;  %v4385_v54 = vadd.f32 0.5, %v4369_v34  ;;  %v4343_v20 = vsel %vm7266_vm9, %v4311_v48, %v4327_v39 }
 0x396   : > { %5830 = vtanh.f32 %v4343_v20 }
 0x397   : > { %v4389_v24 = vadd.f32 0.5, %v4373_v33  ;;  %v7569_v9 = vsel %vm7266_vm9, %v5821_v58, %v4385_v54 }
 0x398   : > { %4532 = vrot.lane.b32.xlu0 %v7545_v45, %s6018_s14  ;;  %v3987_v36 = vpop.f32.mrf.mxu0 }
 0x399   : > { %v7576_v4 = vsel %vm7266_vm9, %v5823_v51, %v4389_v24  ;;  %v4030_v39 = vadd.f32 %v3987_v36, %v3783_v56 }
 0x39a   : > { %v3237_v19 = vpop.permute.xlu2 %3236 }
 0x39b   : > { %v3272_v38 = vmul.f32 %v3237_v19, %v7409_v17  ;;  %v4226_v24 = vpop.f32.mrf.mxu1 }
 0x39d   : > { %4476 = vrot.lane.b32.xlu2 %v5578_v35, %s6017_s11  ;;  %4474 = vrot.lane.b32.xlu1 %v5577_v1, %s6017_s11  ;;  %v5825_v35 = vpop.eup %5824  ;;  %v4262_v1 = vadd.f32 %v7499_v27, %v4026_v11  ;;  %v3786_v34 = vpop.f32.mrf.mxu3 }
 0x39e   : > { %v4376_v16 = vmul.f32 0.5, %v5825_v35  ;;  %v5827_v19 = vpop.eup %5826 }
 0x39f   : > { %v4310_v27 = vadd.f32 %v7263_v5, %v4262_v1  ;;  %v5829_v58 = vpop.eup %5828  ;;  %v4371_v32 = vmul.f32 0.5, %v5827_v19 }
 0x3a0   : > { %3316 = vrot.lane.b32.xlu0 %v3272_v38, %s6017_s11  ;;  %v4392_v51 = vadd.f32 0.5, %v4376_v16  ;;  %v3990_v54 = vpop.f32.mrf.mxu0  ;;  %v5831_v16 = vpop.eup %5830 }
 0x3a1   : > { %v4326_v11 = vmul.f32 0.5, %v4310_v27  ;;  %v4387_v0 = vadd.f32 0.5, %v4371_v32  ;;  %v4031_v56 = vadd.f32 %v3990_v54, %v3786_v34 }
 0x3a2   : > { %v3233_v57 = vpop.permute.xlu0 %3232  ;;  %v7589_v43 = vsel %vm7266_vm9, %v5825_v35, %v4392_v51 }
 0x3a3   : > { %v3270_v52 = vmul.f32 %v3233_v57, %v7379_v42  ;;  %v4265_v57 = vadd.f32 %v4221_v12, %v4029_v53  ;;  %8255 = vst [vmem:[#allocation10_spill] sm:$0xff] %v7589_v43  ;;  %v4342_v48 = vsel %vm7266_vm9, %v4310_v27, %v4326_v11  ;;  %v7598_v53 = vsel %vm7266_vm9, %v5827_v19, %v4387_v0  ;;  %v4228_v34 = vpop.f32.mrf.mxu1 }
 0x3a4   : > { %5832 = vtanh.f32 %v4342_v48  ;;  %v4267_v11 = vadd.f32 %v4226_v24, %v4031_v56 }
 0x3a5   : > { %4530 = vrot.lane.b32.xlu2 %v7569_v9, %s6018_s14  ;;  %3312 = vrot.lane.b32.xlu1 %v3270_v52, %s6017_s11  ;;  %v4372_v52 = vmul.f32 0.5, %v5829_v58  ;;  %v4313_v1 = vadd.f32 %v7263_v5, %v4265_v57 }
 0x3a7   : > { %v4388_v12 = vadd.f32 0.5, %v4372_v52  ;;  %v4329_v35 = vmul.f32 0.5, %v4313_v1 }
 0x3a8   : > { %4538 = vrot.lane.b32.xlu0 %v7576_v4, %s6018_s14  ;;  %v3992_v36 = vpop.f32.mrf.mxu0 }
 0x3a9   : > { %v7602_v27 = vsel %vm7266_vm9, %v5829_v58, %v4388_v12  ;;  %v4345_v19 = vsel %vm7266_vm9, %v4313_v1, %v4329_v35  ;;  %v4315_v1 = vadd.f32 %v7263_v5, %v4267_v11 }
 0x3aa   : > { %v3235_v38 = vpop.permute.xlu1 %3234  ;;  %v5833_v32 = vpop.eup %5832  ;;  %5834 = vtanh.f32 %v4345_v19 }
 0x3ab   : > { %v3271_v33 = vmul.f32 %v3235_v38, %v7395_v50  ;;  %v4266_v38 = vadd.f32 %v4223_v21, %v4030_v39  ;;  %v4374_v48 = vmul.f32 0.5, %v5833_v32 }
 0x3ad   : > { %3314 = vrot.lane.b32.xlu2 %v3271_v33, %s6017_s11  ;;  %4480 = vrot.lane.b32.xlu1 %v5580_v46, %s6017_s11  ;;  %v3788_v46 = vpop.f32.mrf.mxu3  ;;  %v4375_v33 = vmul.f32 0.5, %v5831_v16  ;;  %v4314_v21 = vadd.f32 %v7263_v5, %v4266_v38  ;;  %v4390_v38 = vadd.f32 0.5, %v4374_v48 }
 0x3ae   : > { %v4032_v35 = vadd.f32 %v3992_v36, %v3788_v46 }
 0x3af   : > { %v4391_v58 = vadd.f32 0.5, %v4375_v33  ;;  %v4330_v52 = vmul.f32 0.5, %v4314_v21 }
 0x3b0   : > { %4544 = vrot.lane.b32.xlu0 %v7589_v43, %s6018_s14  ;;  %v3995_v12 = vpop.f32.mrf.mxu0  ;;  %v5835_v33 = vpop.eup %5834  ;;  %v4268_v11 = vadd.f32 %v4228_v34, %v4032_v35 }
 0x3b1   : > { %v7616_v0 = vsel %vm7266_vm9, %v5831_v16, %v4391_v58  ;;  %v4331_v16 = vmul.f32 0.5, %v4315_v1  ;;  %v4231_v58 = vpop.f32.mrf.mxu1 }
 0x3b2   : > { %v3243_v20 = vpop.permute.xlu2 %3242  ;;  %v4316_v34 = vadd.f32 %v7263_v5, %v4268_v11 }
 0x3b3   : > { %v3275_v51 = vmul.f32 %v3243_v20, %v7458_v10  ;;  %v4346_v20 = vsel %vm7266_vm9, %v4314_v21, %v4330_v52  ;;  %v4347_v43 = vsel %vm7266_vm9, %v4315_v1, %v4331_v16  ;;  %v3180_v21 = vmul.f32 %v7384_v47, %v7278_v26 }
 0x3b4   : > { %5836 = vtanh.f32 %v4346_v20  ;;  %v4332_v16 = vmul.f32 0.5, %v4316_v34 }
 0x3b5   : > { %4536 = vrot.lane.b32.xlu2 %v7602_v27, %s6018_s14  ;;  %4534 = vrot.lane.b32.xlu1 %v7598_v53, %s6018_s14  ;;  %v3791_v39 = vpop.f32.mrf.mxu3  ;;  %5838 = vtanh.f32 %v4347_v43  ;;  %v3181_v43 = vmul.f32 %v7351_v18, %v7287_v13 }
 0x3b6   : > { %v4033_v46 = vadd.f32 %v3995_v12, %v3791_v39 }
 0x3b8   : > { %3322 = vrot.lane.b32.xlu0 %v3275_v51, %s6017_s11  ;;  %v3997_v20 = vpop.f32.mrf.mxu0 }
 0x3ba   : > { %v3239_v54 = vpop.permute.xlu0 %3238  ;;  %v5837_v48 = vpop.eup %5836 }
 0x3bb   : > { %v3273_v57 = vmul.f32 %v3239_v54, %v7431_v30  ;;  %v7629_v54 = vsel %vm7266_vm9, %v5833_v32, %v4390_v38  ;;  %v4269_v38 = vadd.f32 %v4231_v58, %v4033_v46  ;;  %v4378_v12 = vmul.f32 0.5, %v5837_v48  ;;  %v5839_v47 = vpop.eup %5838 }
 0x3bd   : > { %4542 = vrot.lane.b32.xlu2 %v7616_v0, %s6018_s14  ;;  %3318 = vrot.lane.b32.xlu1 %v3273_v57, %s6017_s11  ;;  %v4377_v57 = vmul.f32 0.5, %v5835_v33  ;;  %v3793_v32 = vpop.f32.mrf.mxu3  ;;  %v4394_v46 = vadd.f32 0.5, %v4378_v12 }
 0x3bf   : > { %v7622_v24 = vpop.permute.xlu2 %3296  ;;  %v4393_v52 = vadd.f32 0.5, %v4377_v57 }
 0x3c1   : > { %v7645_v39 = vsel %vm7266_vm9, %v5835_v33, %v4393_v52  ;;  %v4348_v33 = vsel %vm7266_vm9, %v4316_v34, %v4332_v16  ;;  %v3182_v34 = vmul.f32 %v7386_v49, %v7296_v59 }
 0x3c2   : > { %v3241_v56 = vpop.permute.xlu1 %3240  ;;  %v3293_v19 = vpop.permute.xlu0 %3292 }
 0x3c3   : > { %v3274_v51 = vmul.f32 %v3241_v56, %v7444_v3  ;;  %v3340_v35 = vadd.f32 %v3293_v19, %v3180_v21  ;;  %v4034_v56 = vadd.f32 %v3997_v20, %v3793_v32  ;;  %v4317_v19 = vadd.f32 %v7263_v5, %v4269_v38 }
 0x3c4   : > { %v4379_v32 = vmul.f32 0.5, %v5839_v47  ;;  %v7662_v38 = vsel %vm7266_vm9, %v5837_v48, %v4394_v46 }
 0x3c5   : > { %3320 = vrot.lane.b32.xlu2 %v3274_v51, %s6017_s11  ;;  %4540 = vrot.lane.b32.xlu1 %v7629_v54, %s6018_s14  ;;  %v4233_v51 = vpop.f32.mrf.mxu1  ;;  %5840 = vtanh.f32 %v3340_v35  ;;  %v3796_v52 = vpop.f32.mrf.mxu3  ;;  %v4333_v18 = vmul.f32 0.5, %v4317_v19 }
 0x3c6   : > { %v4270_v21 = vadd.f32 %v4233_v51, %v4034_v56  ;;  %5842 = vtanh.f32 %v4348_v33  ;;  %v4395_v12 = vadd.f32 0.5, %v4379_v32  ;;  %v3342_v51 = vadd.f32 %v7622_v24, %v3182_v34 }
 0x3c7   : > { %v7636_v36 = vpop.permute.xlu2 %4452  ;;  %v3183_v34 = vmul.f32 %v7400_v7, %v7305_v15 }
 0x3c8   : > { %8256 = vst [vmem:[#allocation11_spill] sm:$0xff] %v7636_v36  ;;  %v4000_v36 = vpop.f32.mrf.mxu0  ;;  %v4318_v16 = vadd.f32 %v7263_v5, %v4270_v21  ;;  %v7675_v5 = vsel %vm7266_vm9, %v5839_v47, %v4395_v12  ;;  %v5914_v12 = vld [vmem:[%s8232_s4] ss:$0 sm:$0xff] }
 0x3ca   : > { %v7641_v1 = vpop.permute.xlu0 %3298  ;;  %v4334_v46 = vmul.f32 0.5, %v4318_v16 }
 0x3cc   : > { %v4350_v24 = vsel %vm7266_vm9, %v4318_v16, %v4334_v46 }
 0x3cd   : > { %4546 = vrot.lane.b32.xlu1 %v7645_v39, %s6018_s14  ;;  %3468 = vrot.lane.b32.xlu2 %v3340_v35, %s6019_s15  ;;  %v5841_v35 = vpop.eup %5840  ;;  %v4236_v56 = vpop.f32.mrf.mxu1 }
 0x3ce   : > { %v5843_v33 = vpop.eup %5842 }
 0x3cf   : > { %v3295_v58 = vpop.permute.xlu1 %3294  ;;  %v7653_v11 = vpop.permute.xlu2 %4458  ;;  %v4380_v32 = vmul.f32 0.5, %v5843_v33 }
 0x3d0   : > { %8257 = vst [vmem:[#allocation12_spill] sm:$0xff] %v7653_v11  ;;  %v3341_v57 = vadd.f32 %v3295_v58, %v3181_v43  ;;  %v4349_v43 = vsel %vm7266_vm9, %v4317_v19, %v4333_v18  ;;  %v4035_v58 = vadd.f32 %v4000_v36, %v3796_v52  ;;  %v3798_v19 = vpop.f32.mrf.mxu3  ;;  %v4002_v36 = vpop.f32.mrf.mxu0 }
 0x3d1   : > { %v4036_v47 = vadd.f32 %v4002_v36, %v3798_v19 }
 0x3d2   : > { %3470 = vrot.lane.b32.xlu0 %v3341_v57, %s6019_s15  ;;  %v7658_v20 = vpop.permute.xlu0 %4454  ;;  %5844 = vtanh.f32 %v3341_v57  ;;  %v4271_v21 = vadd.f32 %v4236_v56, %v4035_v58 }
 0x3d3   : > { %5846 = vtanh.f32 %v4349_v43  ;;  %v4396_v43 = vadd.f32 0.5, %v4380_v32  ;;  %v3184_v32 = vmul.f32 %v7363_v8, %v7314_v25 }
 0x3d4   : > { %5848 = vtanh.f32 %v3342_v51  ;;  %v4319_v16 = vadd.f32 %v5914_v12, %v4271_v21 }
 0x3d5   : > { %4548 = vrot.lane.b32.xlu2 %v7662_v38, %s6018_s14  ;;  %3388 = vrot.lane.b32.xlu1 %v5841_v35, %s6018_s14  ;;  %5850 = vtanh.f32 %v4350_v24  ;;  %v4238_v56 = vpop.f32.mrf.mxu1  ;;  %v7698_v36 = vsel %vm7266_vm9, %v5843_v33, %v4396_v43 }
 0x3d6   : > { %v4335_v19 = vmul.f32 0.5, %v4319_v16 }
 0x3d7   : > { %v3303_v48 = vpop.permute.xlu2 %3302  ;;  %v7685_v52 = vpop.permute.xlu1 %4450 }
 0x3d8   : > { %v5845_v57 = vpop.eup %5844 }
 0x3d9   : > { %v5847_v35 = vpop.eup %5846 }
 0x3da   : > { %4550 = vrot.lane.b32.xlu0 %v7675_v5, %s6018_s14  ;;  %v7679_v49 = vpop.permute.xlu0 %4460  ;;  %v5849_v58 = vpop.eup %5848  ;;  %v4381_v7 = vmul.f32 0.5, %v5847_v35 }
 0x3db   : > { %v5851_v21 = vpop.eup %5850 }
 0x3dc   : > { %v4382_v43 = vmul.f32 0.5, %v5851_v21 }
 0x3dd   : > { %3390 = vrot.lane.b32.xlu2 %v5845_v57, %s6018_s14  ;;  %3472 = vrot.lane.b32.xlu1 %v3342_v51, %s6019_s15  ;;  %v3343_v51 = vadd.f32 %v7641_v1, %v3183_v34  ;;  %v4272_v57 = vadd.f32 %v4238_v56, %v4036_v47  ;;  %v4351_v47 = vsel %vm7266_vm9, %v4319_v16, %v4335_v19  ;;  %v4397_v56 = vadd.f32 0.5, %v4381_v7 }
 0x3de   : > { %v4398_v16 = vadd.f32 0.5, %v4382_v43 }
 0x3df   : > { %v7687_v18 = vpop.permute.xlu2 %4464  ;;  %5852 = vtanh.f32 %v3343_v51  ;;  %v4320_v1 = vadd.f32 %v5914_v12, %v4272_v57  ;;  %v7714_v8 = vsel %vm7266_vm9, %v5847_v35, %v4397_v56  ;;  %v3185_v12 = vmul.f32 %v7402_v28, %v7323_v41 }
 0x3e0   : > { %8258 = vst [vmem:[#allocation13_spill] sm:$0xff] %v7687_v18  ;;  %5854 = vtanh.f32 %v4351_v47  ;;  %v7727_v35 = vsel %vm7266_vm9, %v5851_v21, %v4398_v16  ;;  %v3186_v21 = vmul.f32 %v7418_v22, %v7333_v62 }
 0x3e1   : > { %v4336_v18 = vmul.f32 0.5, %v4320_v1  ;;  %v3345_v57 = vadd.f32 %v3303_v48, %v3185_v12 }
 0x3e2   : > { %3392 = vrot.lane.b32.xlu0 %v5849_v58, %s6018_s14  ;;  %v3305_v46 = vpop.permute.xlu0 %3304 }
 0x3e3   : > { %v3346_v56 = vadd.f32 %v3305_v46, %v3186_v21 }
 0x3e5   : > { %4552 = vrot.lane.b32.xlu1 %v7698_v36, %s6018_s14  ;;  %3474 = vrot.lane.b32.xlu2 %v3343_v51, %s6019_s15  ;;  %v5853_v11 = vpop.eup %5852  ;;  %v4352_v51 = vsel %vm7266_vm9, %v4320_v1, %v4336_v18 }
 0x3e7   : > { %v3301_v24 = vpop.permute.xlu1 %3300  ;;  %v7705_v34 = vpop.permute.xlu2 %4470 }
 0x3e8   : > { %v3344_v33 = vadd.f32 %v3301_v24, %v3184_v32  ;;  %v5855_v32 = vpop.eup %5854 }
 0x3e9   : > { %v4383_v24 = vmul.f32 0.5, %v5855_v32 }
 0x3ea   : > { %3476 = vrot.lane.b32.xlu0 %v3344_v33, %s6019_s15  ;;  %v7710_v58 = vpop.permute.xlu0 %4466  ;;  %5856 = vtanh.f32 %v3344_v33 }
 0x3eb   : > { %5858 = vtanh.f32 %v4352_v51  ;;  %v4399_v47 = vadd.f32 0.5, %v4383_v24  ;;  %v3187_v51 = vmul.f32 %v7375_v55, %v7343_v2 }
 0x3ec   : > { %5860 = vtanh.f32 %v3345_v57 }
 0x3ed   : > { %4554 = vrot.lane.b32.xlu2 %v7714_v8, %s6018_s14  ;;  %3394 = vrot.lane.b32.xlu1 %v5853_v11, %s6018_s14  ;;  %v7744_v12 = vsel %vm7266_vm9, %v5855_v32, %v4399_v47  ;;  %5862 = vtanh.f32 %v3346_v56  ;;  %v3188_v47 = vmul.f32 %v7420_v23, %v7355_v44 }
 0x3ef   : > { %v7723_v19 = vpop.permute.xlu1 %4456  ;;  %v3309_v7 = vpop.permute.xlu2 %3308 }
 0x3f0   : > { %v5857_v11 = vpop.eup %5856  ;;  %v3348_v55 = vadd.f32 %v3309_v7, %v3188_v47  ;;  %v3189_v7 = vmul.f32 %v7435_v37, %v7367_v29 }
 0x3f1   : > { %v5859_v1 = vpop.eup %5858 }
 0x3f2   : > { %4556 = vrot.lane.b32.xlu0 %v7727_v35, %s6018_s14  ;;  %v7731_v28 = vpop.permute.xlu0 %4472  ;;  %v5861_v33 = vpop.eup %5860  ;;  %v4384_v16 = vmul.f32 0.5, %v5859_v1 }
 0x3f3   : > { %v5863_v24 = vpop.eup %5862 }
 0x3f5   : > { %3396 = vrot.lane.b32.xlu2 %v5857_v11, %s6018_s14  ;;  %3478 = vrot.lane.b32.xlu1 %v3345_v57, %s6019_s15  ;;  %v4400_v11 = vadd.f32 0.5, %v4384_v16 }
 0x3f7   : > { %v7735_v48 = vpop.permute.xlu1 %4462  ;;  %v7737_v18 = vpop.permute.xlu2 %4476  ;;  %v7756_v32 = vsel %vm7266_vm9, %v5859_v1, %v4400_v11  ;;  %v3190_v11 = vmul.f32 %v7391_v63, %v7379_v42 }
 0x3fa   : > { %3398 = vrot.lane.b32.xlu0 %v5861_v33, %s6018_s14  ;;  %v3311_v43 = vpop.permute.xlu0 %3310 }
 0x3fd   : > { %4558 = vrot.lane.b32.xlu1 %v7744_v12, %s6018_s14  ;;  %3480 = vrot.lane.b32.xlu2 %v3346_v56, %s6019_s15 }
 0x3ff   : > { %v4531_v22 = vpop.permute.xlu2 %4530  ;;  %v3307_v57 = vpop.permute.xlu1 %3306 }
 0x400   : > { %v3347_v46 = vadd.f32 %v3307_v57, %v3187_v51  ;;  %v4578_v16 = vmul.f32 %v4531_v22, %v7569_v9 }
 0x402   : > { %3482 = vrot.lane.b32.xlu0 %v3347_v46, %s6019_s15  ;;  %v7752_v21 = vpop.permute.xlu0 %4478  ;;  %5864 = vtanh.f32 %v3347_v46  ;;  %v3349_v46 = vadd.f32 %v3311_v43, %v3189_v7 }
 0x403   : > { %5866 = vtanh.f32 %v3348_v55 }
 0x404   : > { %5868 = vtanh.f32 %v3349_v46 }
 0x405   : > { %4560 = vrot.lane.b32.xlu2 %v7756_v32, %s6018_s14  ;;  %3400 = vrot.lane.b32.xlu1 %v5863_v24, %s6018_s14 }
 0x407   : > { %v3315_v33 = vpop.permute.xlu2 %3314  ;;  %v7763_v56 = vpop.permute.xlu1 %4468 }
 0x408   : > { %v5865_v14 = vpop.eup %5864 }
 0x409   : > { %v5867_v57 = vpop.eup %5866 }
 0x40a   : > { %4610 = vrot.lane.b32.xlu0 %v4578_v16, %s6017_s11  ;;  %v4533_v23 = vpop.permute.xlu0 %4532  ;;  %v5869_v43 = vpop.eup %5868  ;;  %v3191_v16 = vmul.f32 %v7437_v6, %v7395_v50 }
 0x40b   : > { %v4579_v22 = vmul.f32 %v4533_v23, %v7545_v45 }
 0x40d   : > { %3484 = vrot.lane.b32.xlu1 %v3348_v55, %s6019_s15  ;;  %3402 = vrot.lane.b32.xlu2 %v5865_v14, %s6018_s14  ;;  %v3351_v14 = vadd.f32 %v3315_v33, %v3191_v16  ;;  %v3192_v33 = vmul.f32 %v7449_v60, %v7409_v17  ;;  %v3194_v60 = vmul.f32 %v7451_v61, %v7444_v3 }
 0x40e   : > { %v3193_v16 = vmul.f32 %v7415_v40, %v7431_v30  ;;  %v3195_v40 = vmul.f32 %v7465_v31, %v7458_v10 }
 0x40f   : > { %v4537_v1 = vpop.permute.xlu2 %4536  ;;  %v7769_v51 = vpop.permute.xlu1 %4474  ;;  %5870 = vtanh.f32 %v3351_v14 }
 0x410   : > { %v4581_v63 = vmul.f32 %v4537_v1, %v7602_v27 }
 0x412   : > { %3404 = vrot.lane.b32.xlu0 %v5867_v57, %s6018_s14  ;;  %v3317_v55 = vpop.permute.xlu0 %3316 }
 0x415   : > { %4612 = vrot.lane.b32.xlu1 %v4579_v22, %s6017_s11  ;;  %3486 = vrot.lane.b32.xlu2 %v3349_v46, %s6019_s15  ;;  %v5871_v1 = vpop.eup %5870 }
 0x417   : > { %v7779_v24 = vpop.permute.xlu2 %4542  ;;  %v3313_v47 = vpop.permute.xlu1 %3312 }
 0x418   : > { %v3350_v37 = vadd.f32 %v3313_v47, %v3190_v11  ;;  %v3352_v11 = vadd.f32 %v3317_v55, %v3192_v33 }
 0x41a   : > { %3488 = vrot.lane.b32.xlu0 %v3350_v37, %s6019_s15  ;;  %v4539_v57 = vpop.permute.xlu0 %4538  ;;  %5872 = vtanh.f32 %v3350_v37 }
 0x41b   : > { %v4582_v47 = vmul.f32 %v4539_v57, %v7576_v4  ;;  %5874 = vtanh.f32 %v3352_v11 }
 0x41d   : > { %3406 = vrot.lane.b32.xlu1 %v5869_v43, %s6018_s14 }
 0x41f   : > { %v3321_v23 = vpop.permute.xlu2 %3320  ;;  %v7785_v7 = vpop.permute.xlu1 %4480 }
 0x422   : > { %4616 = vrot.lane.b32.xlu0 %v4581_v63, %s6017_s11  ;;  %v4545_v43 = vpop.permute.xlu0 %4544 }
 0x425   : > { %3490 = vrot.lane.b32.xlu1 %v3351_v14, %s6019_s15  ;;  %v3354_v14 = vadd.f32 %v3321_v23, %v3194_v60 }
 0x427   : > { %v4535_v6 = vpop.permute.xlu1 %4534  ;;  %v3469_v46 = vpop.permute.xlu2 %3468  ;;  %5876 = vtanh.f32 %v3354_v14 }
 0x428   : > { %v4580_v22 = vmul.f32 %v4535_v6, %v7598_v53  ;;  %3517 = vst.msk [vmem:[%s7799_s20] sm:$0xff] %vm3516_vm10, %v3469_v46  ;;  %v5873_v46 = vpop.eup %5872 }
 0x429   : > { %v5875_v37 = vpop.eup %5874 }
 0x42a   : > { %3410 = vrot.lane.b32.xlu0 %v5871_v1, %s6018_s14  ;;  %4614 = vrot.lane.b32.xlu2 %v4580_v22, %s6017_s11  ;;  %v3323_v61 = vpop.permute.xlu0 %3322 }
 0x42b   : > { %v3355_v22 = vadd.f32 %v3323_v61, %v3195_v40  ;;  %v4584_v40 = vmul.f32 %v7779_v24, %v7616_v0 }
 0x42d   : > { %4618 = vrot.lane.b32.xlu1 %v4582_v47, %s6017_s11  ;;  %v5877_v23 = vpop.eup %5876  ;;  %5878 = vtanh.f32 %v3355_v22 }
 0x42f   : > { %v3319_v63 = vpop.permute.xlu1 %3318  ;;  %v4549_v55 = vpop.permute.xlu2 %4548 }
 0x430   : > { %v3353_v6 = vadd.f32 %v3319_v63, %v3193_v16 }
 0x432   : > { %3494 = vrot.lane.b32.xlu0 %v3353_v6, %s6019_s15  ;;  %3408 = vrot.lane.b32.xlu2 %v5873_v46, %s6018_s14  ;;  %5880 = vtanh.f32 %v3353_v6 }
 0x433   : > { %v5879_v16 = vpop.eup %5878 }
 0x435   : > { %3412 = vrot.lane.b32.xlu1 %v5875_v37, %s6018_s14 }
 0x437   : > { %v4541_v57 = vpop.permute.xlu1 %4540  ;;  %v3391_v33 = vpop.permute.xlu2 %3390 }
 0x438   : > { %v4583_v60 = vmul.f32 %v4541_v57, %v7629_v54  ;;  %v5881_v46 = vpop.eup %5880  ;;  %v3437_v37 = vmul.f32 %v3391_v33, %v7287_v13 }
 0x43a   : > { %3416 = vrot.lane.b32.xlu0 %v5877_v23, %s6018_s14  ;;  %3492 = vrot.lane.b32.xlu2 %v3352_v11, %s6019_s15 }
 0x43d   : > { %3496 = vrot.lane.b32.xlu1 %v3354_v14, %s6019_s15 }
 0x43f   : > { %v4547_v1 = vpop.permute.xlu1 %4546  ;;  %v3475_v47 = vpop.permute.xlu2 %3474 }
 0x440   : > { %3520 = vst.msk [vmem:[%s7799_s20 + $0x18] sm:$0xff] %vm3516_vm10, %v3475_v47 }
 0x442   : > { %4620 = vrot.lane.b32.xlu2 %v4583_v60, %s6017_s11  ;;  %v4587_v60 = vmul.f32 %v4549_v55, %v7662_v38 }
 0x444   : > { %v3471_v31 = vpop.permute.xlu0 %3470 }
 0x445   : > { %3518 = vst.msk [vmem:[%s7799_s20 + $0x8] sm:$0xff] %vm3516_vm10, %v3471_v31  ;;  %3418 = vrot.lane.b32.xlu1 %v5879_v16, %s6018_s14  ;;  %v4586_v16 = vmul.f32 %v4547_v1, %v7645_v39 }
 0x447   : > { %v3389_v11 = vpop.permute.xlu1 %3388  ;;  %v4555_v63 = vpop.permute.xlu2 %4554 }
 0x448   : > { %v3436_v14 = vmul.f32 %v3389_v11, %v7278_v26  ;;  %v8259_v26 = vld [vmem:[#allocation10_spill] sm:$0xff] }
 0x449   : > { %v4585_v23 = vmul.f32 %v4545_v43, %v8259_v26 }
 0x44a   : > { %3549 = vrot.lane.b32.xlu0 %v3436_v14, %s6017_s11  ;;  %3414 = vrot.lane.b32.xlu2 %v5881_v46, %s6018_s14 }
 0x44c   : > { %v4551_v6 = vpop.permute.xlu0 %4550 }
 0x44d   : > { %3551 = vrot.lane.b32.xlu1 %v3437_v37, %s6017_s11  ;;  %v4588_v24 = vmul.f32 %v4551_v6, %v7675_v5  ;;  %v4590_v6 = vmul.f32 %v4555_v63, %v7714_v8 }
 0x44f   : > { %v3473_v61 = vpop.permute.xlu1 %3472  ;;  %v3397_v57 = vpop.permute.xlu2 %3396 }
 0x450   : > { %3519 = vst.msk [vmem:[%s7799_s20 + $0x10] sm:$0xff] %vm3516_vm10, %v3473_v61  ;;  %v3440_v11 = vmul.f32 %v3397_v57, %v7314_v25 }
 0x452   : > { %4622 = vrot.lane.b32.xlu0 %v4584_v40, %s6017_s11  ;;  %3498 = vrot.lane.b32.xlu2 %v3355_v22, %s6019_s15 }
 0x454   : > { %v3393_v47 = vpop.permute.xlu0 %3392 }
 0x455   : > { %4624 = vrot.lane.b32.xlu1 %v4585_v23, %s6017_s11  ;;  %v3438_v55 = vmul.f32 %v3393_v47, %v7296_v59 }
 0x457   : > { %v4553_v13 = vpop.permute.xlu1 %4552  ;;  %v3481_v33 = vpop.permute.xlu2 %3480 }
 0x458   : > { %3523 = vst.msk [vmem:[%s7799_s20 + $0x30] sm:$0xff] %vm3516_vm10, %v3481_v33  ;;  %v4589_v61 = vmul.f32 %v4553_v13, %v7698_v36 }
 0x45a   : > { %4628 = vrot.lane.b32.xlu0 %v4587_v60, %s6017_s11  ;;  %4626 = vrot.lane.b32.xlu2 %v4586_v16, %s6017_s11  ;;  %v4498_v60 = vmul.f32 %v7685_v52, %v7569_v9 }
 0x45c   : > { %v3477_v22 = vpop.permute.xlu0 %3476 }
 0x45d   : > { %3521 = vst.msk [vmem:[%s7799_s20 + $0x20] sm:$0xff] %vm3516_vm10, %v3477_v22  ;;  %4630 = vrot.lane.b32.xlu1 %v4588_v24, %s6017_s11 }
 0x45f   : > { %v3395_v43 = vpop.permute.xlu1 %3394  ;;  %v4561_v31 = vpop.permute.xlu2 %4560 }
 0x460   : > { %v3439_v1 = vmul.f32 %v3395_v43, %v7305_v15  ;;  %v4593_v40 = vmul.f32 %v4561_v31, %v7756_v32 }
 0x462   : > { %3555 = vrot.lane.b32.xlu0 %v3439_v1, %s6017_s11  ;;  %3553 = vrot.lane.b32.xlu2 %v3438_v55, %s6017_s11  ;;  %v8260_v1 = vld [vmem:[#allocation11_spill] sm:$0xff] }
 0x463   : > { %v4499_v52 = vmul.f32 %v8260_v1, %v7545_v45 }
 0x464   : > { %v4557_v14 = vpop.permute.xlu0 %4556 }
 0x465   : > { %3557 = vrot.lane.b32.xlu1 %v3440_v11, %s6017_s11  ;;  %v4591_v59 = vmul.f32 %v4557_v14, %v7727_v35 }
 0x467   : > { %v3479_v46 = vpop.permute.xlu1 %3478  ;;  %v3403_v37 = vpop.permute.xlu2 %3402 }
 0x468   : > { %3522 = vst.msk [vmem:[%s7799_s20 + $0x28] sm:$0xff] %vm3516_vm10, %v3479_v46 }
 0x46a   : > { %4634 = vrot.lane.b32.xlu0 %v4590_v6, %s6017_s11  ;;  %4632 = vrot.lane.b32.xlu2 %v4589_v61, %s6017_s11 }
 0x46c   : > { %v3399_v15 = vpop.permute.xlu0 %3398 }
 0x46d   : > { %4636 = vrot.lane.b32.xlu1 %v4591_v59, %s6017_s11  ;;  %v3441_v13 = vmul.f32 %v3399_v15, %v7323_v41  ;;  %v4500_v41 = vmul.f32 %v7658_v20, %v7598_v53  ;;  %v3443_v20 = vmul.f32 %v3403_v37, %v7343_v2 }
 0x46f   : > { %v4559_v25 = vpop.permute.xlu1 %4558  ;;  %v3487_v57 = vpop.permute.xlu2 %3486 }
 0x470   : > { %v4592_v63 = vmul.f32 %v4559_v25, %v7744_v12  ;;  %3526 = vst.msk [vmem:[%s7799_s20 + $0x48] sm:$0xff] %vm3516_vm10, %v3487_v57  ;;  %v4501_v25 = vmul.f32 %v7723_v19, %v7602_v27 }
 0x472   : > { %4640 = vrot.lane.b32.xlu0 %v4593_v40, %s6017_s11  ;;  %4638 = vrot.lane.b32.xlu2 %v4592_v63, %s6017_s11  ;;  %v4503_v63 = vmul.f32 %v7679_v49, %v7629_v54 }
 0x474   : > { %v3483_v23 = vpop.permute.xlu0 %3482 }
 0x475   : > { %3524 = vst.msk [vmem:[%s7799_s20 + $0x38] sm:$0xff] %vm3516_vm10, %v3483_v23 }
 0x477   : > { %v3401_v47 = vpop.permute.xlu1 %3400 }
 0x478   : > { %v3442_v33 = vmul.f32 %v3401_v47, %v7333_v62 }
 0x47a   : > { %3561 = vrot.lane.b32.xlu0 %v3442_v33, %s6017_s11  ;;  %3559 = vrot.lane.b32.xlu2 %v3441_v13, %s6017_s11  ;;  %v8261_v33 = vld [vmem:[#allocation12_spill] sm:$0xff] }
 0x47c   : > { %v4611_v16 = vpop.permute.xlu0 %4610 }
 0x47d   : > { %v7877_v24 = vadd.f32 %v4611_v16, %v4498_v60  ;;  %v4502_v60 = vmul.f32 %v8261_v33, %v7576_v4 }
 0x47f   : > { %5882 = vtanh.f32 %v7877_v24  ;;  %v3485_v22 = vpop.permute.xlu1 %3484 }
 0x480   : > { %3525 = vst.msk [vmem:[%s7799_s20 + $0x40] sm:$0xff] %vm3516_vm10, %v3485_v22 }
 0x484   : > { %v3405_v62 = vpop.permute.xlu0 %3404  ;;  %v4615_v43 = vpop.permute.xlu2 %4614 }
 0x485   : > { %v5883_v31 = vpop.eup %5882  ;;  %v7884_v55 = vadd.f32 %v4615_v43, %v4500_v41 }
 0x486   : > { %4706 = vrot.lane.b32.xlu1 %v5883_v31, %s6018_s14 }
 0x487   : > { %5884 = vtanh.f32 %v7884_v55  ;;  %v4613_v11 = vpop.permute.xlu1 %4612 }
 0x488   : > { %v7890_v14 = vadd.f32 %v4613_v11, %v4499_v52 }
 0x48a   : > { %5886 = vtanh.f32 %v7890_v14 }
 0x48c   : > { %v3489_v46 = vpop.permute.xlu0 %3488  ;;  %v7894_v6 = vpop.permute.xlu2 %3408 }
 0x48d   : > { %v5885_v61 = vpop.eup %5884  ;;  %3527 = vst.msk [vmem:[%s7799_s20 + $0x50] sm:$0xff] %vm3516_vm10, %v3489_v46 }
 0x48e   : > { %3563 = vrot.lane.b32.xlu1 %v3443_v20, %s6017_s11  ;;  %4710 = vrot.lane.b32.xlu0 %v5885_v61, %s6018_s14  ;;  %v3444_v20 = vmul.f32 %v3405_v62, %v7355_v44  ;;  %v4506_v61 = vmul.f32 %v7710_v58, %v7645_v39  ;;  %v4509_v62 = vmul.f32 %v7731_v28, %v7698_v36 }
 0x48f   : > { %v3407_v59 = vpop.permute.xlu1 %3406 }
 0x490   : > { %v5887_v15 = vpop.eup %5886  ;;  %v3445_v52 = vmul.f32 %v3407_v59, %v7367_v29 }
 0x491   : > { %4708 = vrot.lane.b32.xlu2 %v5887_v15, %s6018_s14 }
 0x494   : > { %v4617_v57 = vpop.permute.xlu0 %4616  ;;  %v3493_v2 = vpop.permute.xlu2 %3492 }
 0x495   : > { %v7903_v37 = vadd.f32 %v4617_v57, %v4501_v25  ;;  %3529 = vst.msk [vmem:[%s7799_s20 + $0x60] sm:$0xff] %vm3516_vm10, %v3493_v2 }
 0x497   : > { %5888 = vtanh.f32 %v7903_v37  ;;  %v3491_v40 = vpop.permute.xlu1 %3490 }
 0x498   : > { %3528 = vst.msk [vmem:[%s7799_s20 + $0x58] sm:$0xff] %vm3516_vm10, %v3491_v40  ;;  %v4504_v40 = vmul.f32 %v7735_v48, %v7616_v0 }
 0x49c   : > { %v7912_v23 = vpop.permute.xlu0 %3410  ;;  %v4621_v47 = vpop.permute.xlu2 %4620 }
 0x49d   : > { %v5889_v13 = vpop.eup %5888  ;;  %v7914_v19 = vadd.f32 %v4621_v47, %v4503_v63 }
 0x49e   : > { %4712 = vrot.lane.b32.xlu1 %v5889_v13, %s6018_s14 }
 0x49f   : > { %5890 = vtanh.f32 %v7914_v19  ;;  %v4619_v16 = vpop.permute.xlu1 %4618 }
 0x4a0   : > { %v7920_v22 = vadd.f32 %v4619_v16, %v4502_v60  ;;  %v8262_v60 = vld [vmem:[#allocation13_spill] sm:$0xff] }
 0x4a1   : > { %v4505_v16 = vmul.f32 %v8262_v60, %v8259_v26  ;;  %v3447_v60 = vmul.f32 %v7912_v23, %v7395_v50  ;;  %v4513_v50 = vmul.f32 %v7785_v7, %v7756_v32 }
 0x4a2   : > { %5892 = vtanh.f32 %v7920_v22 }
 0x4a4   : > { %v3495_v49 = vpop.permute.xlu0 %3494  ;;  %v7923_v41 = vpop.permute.xlu2 %3414 }
 0x4a5   : > { %v5891_v43 = vpop.eup %5890  ;;  %3530 = vst.msk [vmem:[%s7799_s20 + $0x68] sm:$0xff] %vm3516_vm10, %v3495_v49 }
 0x4a6   : > { %4716 = vrot.lane.b32.xlu0 %v5891_v43, %s6018_s14 }
 0x4a7   : > { %v3413_v31 = vpop.permute.xlu1 %3412 }
 0x4a8   : > { %v5893_v1 = vpop.eup %5892 }
 0x4a9   : > { %4714 = vrot.lane.b32.xlu2 %v5893_v1, %s6018_s14 }
 0x4ac   : > { %v3499_v11 = vpop.permute.xlu2 %3498  ;;  %v7939_v15 = vpop.permute.xlu0 %3416 }
 0x4ad   : > { %3532 = vst.msk [vmem:[%s7799_s20 + $0x78] sm:$0xff] %vm3516_vm10, %v3499_v11  ;;  %v4508_v11 = vmul.f32 %v7705_v34, %v7675_v5 }
 0x4ae   : > { %3567 = vrot.lane.b32.xlu0 %v3445_v52, %s6017_s11 }
 0x4af   : > { %v3497_v46 = vpop.permute.xlu1 %3496 }
 0x4b0   : > { %3531 = vst.msk [vmem:[%s7799_s20 + $0x70] sm:$0xff] %vm3516_vm10, %v3497_v46 }
 0x4b1   : > { %3565 = vrot.lane.b32.xlu2 %v3444_v20, %s6017_s11 }
 0x4b4   : > { %v4627_v25 = vpop.permute.xlu2 %4626 }
 0x4b5   : > { %v7941_v29 = vadd.f32 %v4627_v25, %v4506_v61  ;;  %v4507_v25 = vmul.f32 %v7763_v56, %v7662_v38 }
 0x4b7   : > { %5894 = vtanh.f32 %v7941_v29  ;;  %v7944_v59 = vpop.permute.xlu1 %3418 }
 0x4bc   : > { %v3550_v57 = vpop.permute.xlu0 %3549  ;;  %v3554_v2 = vpop.permute.xlu2 %3553 }
 0x4bd   : > { %v5895_v44 = vpop.eup %5894  ;;  %3597 = vst.msk [vmem:[%s7948_s13] sm:$0xff] %vm3516_vm10, %v3550_v57  ;;  %v4512_v57 = vmul.f32 %v7752_v21, %v7744_v12 }
 0x4be   : > { %3599 = vst.msk [vmem:[%s7948_s13 + $0x10] sm:$0xff] %vm3516_vm10, %v3554_v2  ;;  %4722 = vrot.lane.b32.xlu0 %v5895_v44, %s6018_s14  ;;  %v3446_v2 = vmul.f32 %v7894_v6, %v7379_v42  ;;  %v4510_v42 = vmul.f32 %v7769_v51, %v7714_v8 }
 0x4bf   : > { %v3552_v58 = vpop.permute.xlu1 %3551 }
 0x4c0   : > { %3598 = vst.msk [vmem:[%s7948_s13 + $0x8] sm:$0xff] %vm3516_vm10, %v3552_v58 }
 0x4c4   : > { %v4623_v63 = vpop.permute.xlu0 %4622  ;;  %v4633_v47 = vpop.permute.xlu2 %4632 }
 0x4c5   : > { %v7961_v13 = vadd.f32 %v4623_v63, %v4504_v40  ;;  %v7963_v33 = vadd.f32 %v4633_v47, %v4509_v62  ;;  %v3448_v40 = vmul.f32 %v3413_v31, %v7409_v17  ;;  %v4511_v47 = vmul.f32 %v7737_v18, %v7727_v35 }
 0x4c7   : > { %5896 = vtanh.f32 %v7961_v13  ;;  %v4625_v49 = vpop.permute.xlu1 %4624 }
 0x4c8   : > { %5898 = vtanh.f32 %v7963_v33  ;;  %v7969_v43 = vadd.f32 %v4625_v49, %v4505_v16 }
 0x4ca   : > { %5900 = vtanh.f32 %v7969_v43 }
 0x4cc   : > { %v4629_v28 = vpop.permute.xlu0 %4628  ;;  %v4639_v48 = vpop.permute.xlu2 %4638 }
 0x4cd   : > { %v5897_v1 = vpop.eup %5896  ;;  %v7984_v34 = vadd.f32 %v4629_v28, %v4507_v25  ;;  %v7988_v44 = vadd.f32 %v4639_v48, %v4512_v57  ;;  %v3449_v48 = vmul.f32 %v7923_v41, %v7431_v30  ;;  %v3450_v30 = vmul.f32 %v7939_v15, %v7444_v3 }
 0x4ce   : > { %v5899_v52 = vpop.eup %5898  ;;  %4718 = vrot.lane.b32.xlu1 %v5897_v1, %s6018_s14 }
 0x4cf   : > { %4728 = vrot.lane.b32.xlu0 %v5899_v52, %s6018_s14  ;;  %v4631_v20 = vpop.permute.xlu1 %4630  ;;  %v3451_v52 = vmul.f32 %v7944_v59, %v7458_v10 }
 0x4d0   : > { %v5901_v46 = vpop.eup %5900  ;;  %v7976_v61 = vadd.f32 %v4631_v20, %v4508_v11 }
 0x4d1   : > { %4720 = vrot.lane.b32.xlu2 %v5901_v46, %s6018_s14 }
 0x4d2   : > { %5902 = vtanh.f32 %v7976_v61 }
 0x4d3   : > { %5904 = vtanh.f32 %v7984_v34 }
 0x4d4   : > { %v3556_v58 = vpop.permute.xlu0 %3555  ;;  %v3560_v62 = vpop.permute.xlu2 %3559  ;;  %5906 = vtanh.f32 %v7988_v44 }
 0x4d5   : > { %3600 = vst.msk [vmem:[%s7948_s13 + $0x18] sm:$0xff] %vm3516_vm10, %v3556_v58 }
 0x4d6   : > { %3602 = vst.msk [vmem:[%s7948_s13 + $0x28] sm:$0xff] %vm3516_vm10, %v3560_v62  ;;  %3569 = vrot.lane.b32.xlu1 %v3446_v2, %s6017_s11 }
 0x4d7   : > { %3573 = vrot.lane.b32.xlu0 %v3448_v40, %s6017_s11  ;;  %v3558_v21 = vpop.permute.xlu1 %3557 }
 0x4d8   : > { %v5903_v56 = vpop.eup %5902  ;;  %3601 = vst.msk [vmem:[%s7948_s13 + $0x20] sm:$0xff] %vm3516_vm10, %v3558_v21 }
 0x4d9   : > { %4726 = vrot.lane.b32.xlu2 %v5903_v56, %s6018_s14  ;;  %v5905_v6 = vpop.eup %5904 }
 0x4da   : > { %v5907_v63 = vpop.eup %5906 }
 0x4dc   : > { %v4635_v17 = vpop.permute.xlu0 %4634 }
 0x4dd   : > { %v4670_v31 = vadd.f32 %v4635_v17, %v4510_v42 }
 0x4de   : > { %4724 = vrot.lane.b32.xlu1 %v5905_v6, %s6018_s14 }
 0x4df   : > { %5908 = vtanh.f32 %v4670_v31  ;;  %4734 = vrot.lane.b32.xlu0 %v5907_v63, %s6018_s14  ;;  %v4637_v16 = vpop.permute.xlu1 %4636 }
 0x4e0   : > { %v4671_v49 = vadd.f32 %v4637_v16, %v4511_v47 }
 0x4e1   : > { %3571 = vrot.lane.b32.xlu2 %v3447_v60, %s6017_s11 }
 0x4e2   : > { %5910 = vtanh.f32 %v4671_v49 }
 0x4e4   : > { %v4641_v51 = vpop.permute.xlu0 %4640 }
 0x4e5   : > { %v5909_v28 = vpop.eup %5908  ;;  %v4673_v23 = vadd.f32 %v4641_v51, %v4513_v50 }
 0x4e6   : > { %4730 = vrot.lane.b32.xlu1 %v5909_v28, %s6018_s14 }
 0x4e7   : > { %4788 = vrot.lane.b32.xlu0 %v7890_v14, %s6019_s15  ;;  %5912 = vtanh.f32 %v4673_v23 }
 0x4e8   : > { %v5911_v18 = vpop.eup %5910 }
 0x4e9   : > { %4732 = vrot.lane.b32.xlu2 %v5911_v18, %s6018_s14 }
 0x4eb   : > { %v4709_v14 = vpop.permute.xlu2 %4708 }
 0x4ec   : > { %v3562_v1 = vpop.permute.xlu0 %3561 }
 0x4ed   : > { %3603 = vst.msk [vmem:[%s7948_s13 + $0x30] sm:$0xff] %vm3516_vm10, %v3562_v1  ;;  %v5913_v7 = vpop.eup %5912 }
 0x4ee   : > { %3575 = vrot.lane.b32.xlu1 %v3449_v48, %s6017_s11 }
 0x4ef   : > { %3579 = vrot.lane.b32.xlu0 %v3451_v52, %s6017_s11 }
 0x4f1   : > { %4786 = vrot.lane.b32.xlu2 %v7877_v24, %s6019_s15 }
 0x4f6   : > { %4736 = vrot.lane.b32.xlu1 %v5913_v7, %s6018_s14  ;;  %s5929_s14 = sshra.s32 %s4970_s10, 4  ;;  %s5930_s14 = int_to_ptr.hbm [resolvable:$true] %s5929_s14 }
 0x4f7   : > { %4794 = vrot.lane.b32.xlu0 %v7920_v22, %s6019_s15  ;;  %p5936_p0 = scmp.lt.s32.totalorder %s5930_s14, %s8234_s6 }
 0x4f8   : > { %v4707_v10 = vpop.permute.xlu1 %4706 }
 0x4f9   : > { %3577 = vrot.lane.b32.xlu2 %v3450_v30, %s6017_s11 }
 0x4fe   : > { %4790 = vrot.lane.b32.xlu1 %v7884_v55, %s6019_s15 }
 0x4ff   : > { %4800 = vrot.lane.b32.xlu0 %v7969_v43, %s6019_s15 }
 0x500   : > { %v3564_v24 = vpop.permute.xlu1 %3563 }
 0x501   : > { %3604 = vst.msk [vmem:[%s7948_s13 + $0x38] sm:$0xff] %vm3516_vm10, %v3564_v24  ;;  %4792 = vrot.lane.b32.xlu2 %v7903_v37, %s6019_s15  ;;  %v4711_v37 = vpop.permute.xlu0 %4710 }
 0x502   : > { %v4756_v59 = vmul.f32 %v4711_v37, %v7598_v53 }
 0x503   : > { %v4715_v3 = vpop.permute.xlu2 %4714 }
 0x506   : > { %4796 = vrot.lane.b32.xlu1 %v7914_v19, %s6019_s15  ;;  %v4754_v19 = vmul.f32 %v4707_v10, %v7569_v9  ;;  %v4755_v9 = vmul.f32 %v4709_v14, %v7545_v45 }
 0x507   : > { %4806 = vrot.lane.b32.xlu0 %v7976_v61, %s6019_s15 }
 0x509   : > { %4798 = vrot.lane.b32.xlu2 %v7961_v13, %s6019_s15  ;;  %v4758_v13 = vmul.f32 %v4715_v3, %v7576_v4 }
 0x50b   : > { %v3566_v55 = vpop.permute.xlu2 %3565 }
 0x50c   : > { %3605 = vst.msk [vmem:[%s7948_s13 + $0x40] sm:$0xff] %vm3516_vm10, %v3566_v55 }
 0x50e   : > { %4802 = vrot.lane.b32.xlu1 %v7941_v29, %s6019_s15 }
 0x50f   : > { %4812 = vrot.lane.b32.xlu0 %v4671_v49, %s6019_s15 }
 0x510   : > { %v4713_v41 = vpop.permute.xlu1 %4712 }
 0x511   : > { %4804 = vrot.lane.b32.xlu2 %v7984_v34, %s6019_s15  ;;  %v4757_v15 = vmul.f32 %v4713_v41, %v7602_v27 }
 0x516   : > { %4808 = vrot.lane.b32.xlu1 %v7963_v33, %s6019_s15 }
 0x517   : > { %4867 = vrot.lane.b32.xlu0 %v4754_v19, %s6017_s11 }
 0x518   : > { %v4717_v22 = vpop.permute.xlu0 %4716 }
 0x519   : > { %4810 = vrot.lane.b32.xlu2 %v4670_v31, %s6019_s15  ;;  %v4759_v33 = vmul.f32 %v4717_v22, %v7629_v54 }
 0x51e   : > { %4814 = vrot.lane.b32.xlu1 %v7988_v44, %s6019_s15 }
 0x51f   : > { %4873 = vrot.lane.b32.xlu0 %v4757_v15, %s6017_s11 }
 0x520   : > { %v3568_v29 = vpop.permute.xlu0 %3567 }
 0x521   : > { %3606 = vst.msk [vmem:[%s7948_s13 + $0x48] sm:$0xff] %vm3516_vm10, %v3568_v29  ;;  %4816 = vrot.lane.b32.xlu2 %v4673_v23, %s6019_s15  ;;  %s5931_s15 = scalar_lea.hbm %s5930_s14, 256 }
 0x522   : > { %p5932_p11 = scmp.ne.s32.totalorder %s5930_s14, %s5931_s15  ;;  %p5937_p1 = scmp.lt.s32.totalorder %s5935_s19, %s5931_s15 }
 0x524   : > { %p5933_p12 = pnand %p5932_p11, %p6095_p5  ;;  %p5938_p2 = por %p5937_p1, %p5936_p0 }
 0x526   : > { %4869 = vrot.lane.b32.xlu1 %v4755_v9, %s6017_s11  ;;  %p5934_p13 = pneg %p5933_p12 }
 0x528   : > { %p5939_p3 = pnand %p5938_p2, %p5934_p13 }
 0x529   : > { %4871 = vrot.lane.b32.xlu2 %v4756_v59, %s6017_s11 }
 0x52b   : > { %v4721_v27 = vpop.permute.xlu2 %4720 }
 0x52c   : > { %v4761_v11 = vmul.f32 %v4721_v27, %v8259_v26 }
 0x52e   : > { %4875 = vrot.lane.b32.xlu1 %v4758_v13, %s6017_s11 }
 0x530   : > { %v4723_v45 = vpop.permute.xlu0 %4722 }
 0x531   : > { %4877 = vrot.lane.b32.xlu2 %v4759_v33, %s6017_s11  ;;  %v4762_v20 = vmul.f32 %v4723_v45, %v7645_v39 }
 0x533   : > { %v4727_v43 = vpop.permute.xlu2 %4726 }
 0x534   : > { %v4764_v4 = vmul.f32 %v4727_v43, %v7675_v5 }
 0x536   : > { %4881 = vrot.lane.b32.xlu1 %v4761_v11, %s6017_s11 }
 0x539   : > { %4883 = vrot.lane.b32.xlu2 %v4762_v20, %s6017_s11 }
 0x53b   : > { %v3572_v53 = vpop.permute.xlu2 %3571 }
 0x53c   : > { %3608 = vst.msk [vmem:[%s7948_s13 + $0x58] sm:$0xff] %vm3516_vm10, %v3572_v53 }
 0x53e   : > { %4887 = vrot.lane.b32.xlu1 %v4764_v4, %s6017_s11 }
 0x540   : > { %v4719_v54 = vpop.permute.xlu1 %4718 }
 0x541   : > { %v4760_v26 = vmul.f32 %v4719_v54, %v7616_v0  ;;  %v4729_v46 = vpop.permute.xlu0 %4728 }
 0x542   : > { %v4765_v61 = vmul.f32 %v4729_v46, %v7698_v36 }
 0x543   : > { %4879 = vrot.lane.b32.xlu0 %v4760_v26, %s6017_s11  ;;  %v4733_v39 = vpop.permute.xlu2 %4732 }
 0x544   : > { %4889 = vrot.lane.b32.xlu2 %v4765_v61, %s6017_s11  ;;  %v4767_v25 = vmul.f32 %v4733_v39, %v7727_v35 }
 0x546   : > { %4893 = vrot.lane.b32.xlu1 %v4767_v25, %s6017_s11 }
 0x548   : > { %v3570_v5 = vpop.permute.xlu1 %3569 }
 0x549   : > { %3607 = vst.msk [vmem:[%s7948_s13 + $0x50] sm:$0xff] %vm3516_vm10, %v3570_v5  ;;  %v3574_v57 = vpop.permute.xlu0 %3573 }
 0x54a   : > { %3609 = vst.msk [vmem:[%s7948_s13 + $0x60] sm:$0xff] %vm3516_vm10, %v3574_v57 }
 0x54b   : > { %v4787_v0 = vpop.permute.xlu2 %4786 }
 0x54c   : > { %5581 = vst.msk [vmem:[%s7799_s20 + $0x80] sm:$0xff] %vm3516_vm10, %v4787_v0 }
 0x550   : > { %v4725_v36 = vpop.permute.xlu1 %4724 }
 0x551   : > { %v4763_v34 = vmul.f32 %v4725_v36, %v7662_v38  ;;  %v4735_v2 = vpop.permute.xlu0 %4734 }
 0x552   : > { %v4768_v35 = vmul.f32 %v4735_v2, %v7744_v12 }
 0x553   : > { %4885 = vrot.lane.b32.xlu0 %v4763_v34, %s6017_s11  ;;  %v3578_v44 = vpop.permute.xlu2 %3577 }
 0x554   : > { %4895 = vrot.lane.b32.xlu2 %v4768_v35, %s6017_s11  ;;  %3611 = vst.msk [vmem:[%s7948_s13 + $0x70] sm:$0xff] %vm3516_vm10, %v3578_v44 }
 0x558   : > { %v4731_v58 = vpop.permute.xlu1 %4730 }
 0x559   : > { %v4766_v62 = vmul.f32 %v4731_v58, %v7714_v8  ;;  %v4789_v40 = vpop.permute.xlu0 %4788 }
 0x55a   : > { %5582 = vst.msk [vmem:[%s7799_s20 + $0x88] sm:$0xff] %vm3516_vm10, %v4789_v40 }
 0x55b   : > { %4891 = vrot.lane.b32.xlu0 %v4766_v62, %s6017_s11  ;;  %v4793_v38 = vpop.permute.xlu2 %4792 }
 0x55c   : > { %5584 = vst.msk [vmem:[%s7799_s20 + $0x98] sm:$0xff] %vm3516_vm10, %v4793_v38 }
 0x560   : > { %v3576_v12 = vpop.permute.xlu1 %3575 }
 0x561   : > { %3610 = vst.msk [vmem:[%s7948_s13 + $0x68] sm:$0xff] %vm3516_vm10, %v3576_v12  ;;  %v3580_v21 = vpop.permute.xlu0 %3579 }
 0x562   : > { %3612 = vst.msk [vmem:[%s7948_s13 + $0x78] sm:$0xff] %vm3516_vm10, %v3580_v21 }
 0x563   : > { %v4799_v56 = vpop.permute.xlu2 %4798 }
 0x564   : > { %5587 = vst.msk [vmem:[%s7799_s20 + $0xb0] sm:$0xff] %vm3516_vm10, %v4799_v56 }
 0x568   : > { %v4737_v8 = vpop.permute.xlu1 %4736 }
 0x569   : > { %v4769_v42 = vmul.f32 %v4737_v8, %v7756_v32  ;;  %v4795_v17 = vpop.permute.xlu0 %4794 }
 0x56a   : > { %5585 = vst.msk [vmem:[%s7799_s20 + $0xa0] sm:$0xff] %vm3516_vm10, %v4795_v17 }
 0x56b   : > { %4897 = vrot.lane.b32.xlu0 %v4769_v42, %s6017_s11  ;;  %v4805_v6 = vpop.permute.xlu2 %4804  ;;  %s4967_s11 = sshll.u32 %s7799_s20, 4  ;;  %s4968_s11 = int_to_ptr.vmem [resolvable:$true] %s4967_s11 }
 0x56c   : > { %5590 = vst.msk [vmem:[%s7799_s20 + $0xc8] sm:$0xff] %vm3516_vm10, %v4805_v6 }
 0x570   : > { %v4791_v31 = vpop.permute.xlu1 %4790 }
 0x571   : > { %5583 = vst.msk [vmem:[%s7799_s20 + $0x90] sm:$0xff] %vm3516_vm10, %v4791_v31  ;;  %v4801_v63 = vpop.permute.xlu0 %4800 }
 0x572   : > { %5588 = vst.msk [vmem:[%s7799_s20 + $0xb8] sm:$0xff] %vm3516_vm10, %v4801_v63 }
 0x573   : > { %v4811_v32 = vpop.permute.xlu2 %4810 }
 0x574   : > { %5593 = vst.msk [vmem:[%s7799_s20 + $0xe0] sm:$0xff] %vm3516_vm10, %v4811_v32 }
 0x578   : > { %v4797_v47 = vpop.permute.xlu1 %4796 }
 0x579   : > { %5586 = vst.msk [vmem:[%s7799_s20 + $0xa8] sm:$0xff] %vm3516_vm10, %v4797_v47  ;;  %v4807_v60 = vpop.permute.xlu0 %4806 }
 0x57a   : > { %5591 = vst.msk [vmem:[%s7799_s20 + $0xd0] sm:$0xff] %vm3516_vm10, %v4807_v60 }
 0x57b   : > { %v4817_v16 = vpop.permute.xlu2 %4816 }
 0x57c   : > { %5596 = vst.msk [vmem:[%s7799_s20 + $0xf8] sm:$0xff] %vm3516_vm10, %v4817_v16 }
 0x580   : > { %v4803_v49 = vpop.permute.xlu1 %4802 }
 0x581   : > { %5589 = vst.msk [vmem:[%s7799_s20 + $0xc0] sm:$0xff] %vm3516_vm10, %v4803_v49  ;;  %v4813_v51 = vpop.permute.xlu0 %4812 }
 0x582   : > { %5594 = vst.msk [vmem:[%s7799_s20 + $0xe8] sm:$0xff] %vm3516_vm10, %v4813_v51 }
 0x583   : > { %v4872_v28 = vpop.permute.xlu2 %4871 }
 0x584   : > { %5599 = vst.msk [vmem:[%s7948_s13 + $0x90] sm:$0xff] %vm3516_vm10, %v4872_v28 }
 0x588   : > { %v4809_v18 = vpop.permute.xlu1 %4808 }
 0x589   : > { %5592 = vst.msk [vmem:[%s7799_s20 + $0xd8] sm:$0xff] %vm3516_vm10, %v4809_v18  ;;  %v4868_v50 = vpop.permute.xlu0 %4867 }
 0x58a   : > { %5597 = vst.msk [vmem:[%s7948_s13 + $0x80] sm:$0xff] %vm3516_vm10, %v4868_v50 }
 0x58b   : > { %v4878_v23 = vpop.permute.xlu2 %4877 }
 0x58c   : > { %5602 = vst.msk [vmem:[%s7948_s13 + $0xa8] sm:$0xff] %vm3516_vm10, %v4878_v23 }
 0x590   : > { %v4815_v48 = vpop.permute.xlu1 %4814 }
 0x591   : > { %5595 = vst.msk [vmem:[%s7799_s20 + $0xf0] sm:$0xff] %vm3516_vm10, %v4815_v48  ;;  %v4874_v1 = vpop.permute.xlu0 %4873 }
 0x592   : > { %5600 = vst.msk [vmem:[%s7948_s13 + $0x98] sm:$0xff] %vm3516_vm10, %v4874_v1 }
 0x593   : > { %v4884_v52 = vpop.permute.xlu2 %4883 }
 0x594   : > { %5942 = shalt.err (!%p5939_p3)
}
 0x595   : > { %s6020_s20 = smov 128   ;;  %s6021_s26 = smov 8   ;;  %5605 = vst.msk [vmem:[%s7948_s13 + $0xc0] sm:$0xff] %vm3516_vm10, %v4884_v52 }
 0x596   : > { %5731 = dma.vmem_to_hbm [thread:$0]  (%p6095_p5), %s4968_s11, 4096, %s4970_s10, %s4938_s12, %s6020_s20, %s6020_s20, %s6021_s26  }
 0x597   : > { %s4949_s12 = scalar_lea.hbm %s8233_s5, %s5714_s28  ;;  %s4950_s14 = sshll.u32 %s7948_s13, 4  ;;  %s4951_s14 = int_to_ptr.vmem [resolvable:$true] %s4950_s14 }
 0x598   : > { %v4870_v7 = vpop.permute.xlu1 %4869  ;;  %s4952_s15 = sshll.u32 %s4949_s12, 4  ;;  %s4933_s16 = scalar_lea.sflag [#allocation5], %s7788_s18  ;;  %s4953_s15 = int_to_ptr.hbm [resolvable:$true] %s4952_s15 }
 0x599   : > { %5598 = vst.msk [vmem:[%s7948_s13 + $0x88] sm:$0xff] %vm3516_vm10, %v4870_v7  ;;  %s5957_s17 = sshra.s32 %s4953_s15, 4  ;;  %s5963_s9 = scalar_lea.hbm %s8233_s5, 512  ;;  %s5958_s17 = int_to_ptr.hbm [resolvable:$true] %s5957_s17 }
 0x59a   : > { %s5959_s19 = scalar_lea.hbm %s5958_s17, 256  ;;  %p5964_p9 = scmp.lt.s32.totalorder %s5958_s17, %s8233_s5 }
 0x59b   : > { %p5960_p4 = scmp.ne.s32.totalorder %s5958_s17, %s5959_s19  ;;  %p5965_p10 = scmp.lt.s32.totalorder %s5963_s9, %s5959_s19 }
 0x59d   : > { %p5961_p7 = pnand %p5960_p4, %p6095_p5  ;;  %p5966_p11 = por %p5965_p10, %p5964_p9 }
 0x59e   : > { %v4890_v30 = vpop.permute.xlu2 %4889 }
 0x59f   : > { %5608 = vst.msk [vmem:[%s7948_s13 + $0xd8] sm:$0xff] %vm3516_vm10, %v4890_v30  ;;  %p5962_p8 = pneg %p5961_p7 }
 0x5a0   : > { %v4876_v10 = vpop.permute.xlu1 %4875 }
 0x5a1   : > { %5601 = vst.msk [vmem:[%s7948_s13 + $0xa0] sm:$0xff] %vm3516_vm10, %v4876_v10  ;;  %p5967_p12 = pnand %p5966_p11, %p5962_p8 }
 0x5a8   : > { %v4882_v14 = vpop.permute.xlu1 %4881 }
 0x5a9   : > { %5604 = vst.msk [vmem:[%s7948_s13 + $0xb8] sm:$0xff] %vm3516_vm10, %v4882_v14 }
 0x5ae   : > { %v4896_v24 = vpop.permute.xlu2 %4895 }
 0x5af   : > { %5611 = vst.msk [vmem:[%s7948_s13 + $0xf0] sm:$0xff] %vm3516_vm10, %v4896_v24 }
 0x5b0   : > { %v4888_v3 = vpop.permute.xlu1 %4887 }
 0x5b1   : > { %5607 = vst.msk [vmem:[%s7948_s13 + $0xd0] sm:$0xff] %vm3516_vm10, %v4888_v3 }
 0x5b5   : > { %v4880_v55 = vpop.permute.xlu0 %4879 }
 0x5b6   : > { %5603 = vst.msk [vmem:[%s7948_s13 + $0xb0] sm:$0xff] %vm3516_vm10, %v4880_v55 }
 0x5b8   : > { %v4894_v37 = vpop.permute.xlu1 %4893 }
 0x5b9   : > { %5610 = vst.msk [vmem:[%s7948_s13 + $0xe8] sm:$0xff] %vm3516_vm10, %v4894_v37 }
 0x5c5   : > { %v4886_v19 = vpop.permute.xlu0 %4885 }
 0x5c6   : > { %5606 = vst.msk [vmem:[%s7948_s13 + $0xc8] sm:$0xff] %vm3516_vm10, %v4886_v19 }
 0x5cd   : > { %v4892_v22 = vpop.permute.xlu0 %4891 }
 0x5ce   : > { %5609 = vst.msk [vmem:[%s7948_s13 + $0xe0] sm:$0xff] %vm3516_vm10, %v4892_v22 }
 0x5dd   : > { %v4898_v41 = vpop.permute.xlu0 %4897 }
 0x5de   : > { %5612 = vst.msk [vmem:[%s7948_s13 + $0xf8] sm:$0xff] %vm3516_vm10, %v4898_v41 }
 0x5df   : > { %5970 = shalt.err (!%p5967_p12)
}
 0x5e0   : > { %5730 = dma.vmem_to_hbm [thread:$0]  (%p6095_p5), %s4951_s14, 4096, %s4953_s15, %s4933_s16, %s6020_s20, %s6020_s20, %s6021_s26  }
 0x5e1 PF: > { %p5741_p13 = scmp.ge.s32.totalorder %s6009_s24, 2  ;;  %s4984_s18 = sand.u32 1, %s5997_s21  }
 0x5e2   : > { %s4985_s13 = scalar_lea.sflag [#allocation5], %s4984_s18 }
 0x5e3   : > { %p5735_p0 = pnand %p5741_p13, %p6099_p6 }
 0x5e5   : > { %p5736_p1 = pneg %p5735_p0 }
 0x5e7   : > { %5988 = dma.done.wait (%p5736_p1), %s4985_s13, 4096  }
 0x5e8   : > { %5990 = vsyncadd (%p5736_p1), %s4985_s13, 4294963200  ;;  %s4995_s10 = scalar_lea.sflag [#allocation7], %s4984_s18 }
 0x5e9   : > { %5992 = dma.done.wait (%p5736_p1), %s4995_s10, 4096  }
 0x5ea   : > { %5994 = vsyncadd (%p5736_p1), %s4995_s10, 4294963200  ;;  %p20_p5 = scmp.ge.s32.totalorder %s6082_s27, 4   ;;  %s8263_s21 = smov %s6001_s22 }
 0x5eb   : > { %s8264_s22 = smov %s6005_s23  ;;  %s8265_s23 = smov %s6093_s30 }
 0x5ec   : > { %s8266_s24 = smov %s6082_s27  ;;  %22 = sbr.rel (!%p20_p5) target bundleno = 5 (0x5), region = 109 }
 0x5f1   :  { %5001 = vsyncpa [#allocation5], 1 }
 0x5f2   :  { %5003 = vsyncpa [#allocation5 + $0x1], 1 }
 0x5f3   :  { %5004 = vsyncpa [#allocation7], 1 }
 0x5f4   :  { %5006 = vsyncpa [#allocation7 + $0x1], 1 }

</bundles_post_ra>
